<compile_context>
chip_gen: v7x
topology: tpu7x:2x2x1
jax: 0.10.0
libtpu: 0.0.40
codegen_flags: <defaults>
</compile_context>

<pallas_src>
import jax
import jax.numpy as jnp
from jax.experimental import pallas as pl
from jax.experimental.pallas import tpu as pltpu

IN_SIZE = 6000
H = 100              # hidden size
G = 3 * H            # gates kept: [i, g, o]  (f gate dead since c_prev == 0)
NUM_OUT = 3          # final linear output


def _sigmoid(z):
    # tanh identity: one EUP op per gate, no exp/divide, no overflow path.
    return 0.5 * (jnp.tanh(0.5 * z) + 1.0)


def _act(gates):
    """gates: (1, 3H) pre-activations in [i, g, o] order -> h (1, H).

    With zero initial state: c = f*c_prev + i*g = i*g, h = o*tanh(c).
    """
    i = _sigmoid(gates[:, 0 * H:1 * H])
    g = jnp.tanh(gates[:, 1 * H:2 * H])
    o = _sigmoid(gates[:, 2 * H:3 * H])
    return o * jnp.tanh(i * g)


def lstm_kernel(x_ref, wih0_ref, b0_ref,
                wih1_ref, b1_ref,
                wih2_ref, b2_ref,
                wout_ref, bout_ref,
                out_ref):
    # In-kernel bf16 cast of the activation (removes a separate XLA dispatch).
    x = x_ref[...].astype(jnp.bfloat16)

    # Layer 0: (1, 6000) @ (6000, 300), bf16 operands, f32 MXU accumulation.
    g1 = jnp.dot(x, wih0_ref[...], preferred_element_type=jnp.float32) + b0_ref[...]
    h1 = _act(g1)

    # Layers 1/2 + output linear: tiny, fully resident.
    g2 = jnp.dot(h1.astype(jnp.bfloat16), wih1_ref[...],
                 preferred_element_type=jnp.float32) + b1_ref[...]
    h2 = _act(g2)
    g3 = jnp.dot(h2.astype(jnp.bfloat16), wih2_ref[...],
                 preferred_element_type=jnp.float32) + b2_ref[...]
    h3 = _act(g3)
    out_ref[...] = (jnp.dot(h3.astype(jnp.bfloat16), wout_ref[...],
                            preferred_element_type=jnp.float32)
                    + bout_ref[...])


def init_params(key):
    """Deterministic parameter init matching the PyTorch module's shapes."""
    ks = jax.random.split(key, 16)
    bound = 1.0 / jnp.sqrt(jnp.float32(H))

    def u(k, shape):
        return jax.random.uniform(k, shape, jnp.float32, -bound, bound)

    params = {}
    in_sizes = [IN_SIZE, H, H]
    idx = 0
    for layer, isz in enumerate(in_sizes):
        params[f"w_ih{layer}"] = u(ks[idx], (4 * H, isz)); idx += 1   # PyTorch: (4H, in)
        params[f"w_hh{layer}"] = u(ks[idx], (4 * H, H));   idx += 1   # PyTorch: (4H, H)
        params[f"b_ih{layer}"] = u(ks[idx], (4 * H,));     idx += 1
        params[f"b_hh{layer}"] = u(ks[idx], (4 * H,));     idx += 1
    params["w_out"] = u(ks[idx], (NUM_OUT, H)); idx += 1              # Linear: (3, 100)
    params["b_out"] = u(ks[idx], (NUM_OUT,));   idx += 1
    return params


def prepare_params(params):
    """One-time weight prep (off the per-call hot path).

    * drop w_hh and the f-gate rows (dead for seq=1 / zero initial state)
    * pre-transpose to (in, 3H) so the kernel does (1,K) @ (K,3H)
    * fuse b_ih + b_hh (kept f32)
    * cast weights to bf16 (f32 accumulation inside the kernel)
    NOTE: bf16 weight/activation rounding changes results vs. the f32 PyTorch
    module by O(1e-3) relative; keep f32 weights here if bit-level fidelity to the
    original module is required.
    """
    def strip_f(a):  # drop rows H:2H (f gate); keep [i, g, o]
        return jnp.concatenate([a[0 * H:1 * H], a[2 * H:3 * H], a[3 * H:4 * H]], axis=0)

    p = {}
    for layer in range(3):
        w = strip_f(params[f"w_ih{layer}"]).T.astype(jnp.bfloat16)        # (in, 3H)
        b = strip_f(params[f"b_ih{layer}"] + params[f"b_hh{layer}"])      # (3H,)
        p[f"w{layer}"] = w
        p[f"b{layer}"] = b.reshape(1, G).astype(jnp.float32)
    p["w_out"] = params["w_out"].T.astype(jnp.bfloat16)                   # (100, 3)
    p["b_out"] = params["b_out"].reshape(1, NUM_OUT).astype(jnp.float32)  # (1, 3)
    return p


@jax.jit
def lstm_forward(x, p):
    # x.view(1, 1, -1) equivalent: seq=1, batch=1, feature=6000.
    # Pure metadata reshape -- no pad/cast dispatch before the kernel.
    xin = x.reshape(1, IN_SIZE)

    out = pl.pallas_call(
        lstm_kernel,
        out_shape=jax.ShapeDtypeStruct((1, NUM_OUT), jnp.float32),
        # No grid / no BlockSpecs: every operand is a single full-array VMEM block,
        # single-buffered (~5 MiB total), avoiding ~1 us of per-grid-step overhead.
        compiler_params=pltpu.CompilerParams(
            vmem_limit_bytes=12 * 1024 * 1024),
        cost_estimate=pl.CostEstimate(
            flops=3_720_000,            # 2*6000*300 + 2*2*100*300 + 2*100*3
            transcendentals=1_300,      # ~4 tanh per hidden unit per layer
            bytes_accessed=3_800_000),  # dominated by the 3.6 MB bf16 w0 stream
    )(xin, p["w0"], p["b0"], p["w1"], p["b1"], p["w2"], p["b2"],
      p["w_out"], p["b_out"])

    return out.reshape(1, 1, NUM_OUT)


def reference_forward(x, params):
    """Pure-JAX reference of the original PyTorch module (seq=1, zero initial
    state), using the same bf16 weight/activation rounding the kernel uses so the
    comparison isolates kernel correctness from quantization choice."""
    q = lambda a: a.astype(jnp.bfloat16).astype(jnp.float32)
    h = q(x.reshape(1, -1).astype(jnp.float32))
    for layer in range(3):
        w_ih = q(params[f"w_ih{layer}"])
        w_hh = q(params[f"w_hh{layer}"])
        b = params[f"b_ih{layer}"] + params[f"b_hh{layer}"]
        h_prev = jnp.zeros((1, H), jnp.float32)
        c_prev = jnp.zeros((1, H), jnp.float32)
        gates = h @ w_ih.T + h_prev @ w_hh.T + b
        i = jax.nn.sigmoid(gates[:, 0 * H:1 * H])
        f = jax.nn.sigmoid(gates[:, 1 * H:2 * H])
        g = jnp.tanh(gates[:, 2 * H:3 * H])
        o = jax.nn.sigmoid(gates[:, 3 * H:4 * H])
        c = f * c_prev + i * g
        h = q(o * jnp.tanh(c))
    out = h @ q(params["w_out"]).T + params["b_out"]
    return out.reshape(1, 1, NUM_OUT)


if __name__ == "__main__":
    key = jax.random.PRNGKey(0)
    k_x, k_p = jax.random.split(key)

    # Any tensor with 6000 elements; forward flattens it via view(1, 1, -1).
    x = jax.random.normal(k_x, (IN_SIZE,), jnp.float32)
    params = init_params(k_p)
    prepped = prepare_params(params)   # one-time, off the hot path

    out = lstm_forward(x, prepped)
    out = jax.block_until_ready(out)

    ref = reference_forward(x, params)
    assert out.shape == (1, 1, NUM_OUT)
    assert jnp.allclose(out, ref, atol=2e-3, rtol=2e-3), (out, ref)

    print("KERNEL_OK")
</pallas_src>

<mosaic_0001>
module attributes {stable_mosaic.version = 11 : i64} {
  func.func @lstm_kernel(%arg0: memref<1x6000xf32, #tpu.memory_space<vmem>>, %arg1: memref<6000x300xbf16, #tpu.memory_space<vmem>>, %arg2: memref<1x300xf32, #tpu.memory_space<vmem>>, %arg3: memref<100x300xbf16, #tpu.memory_space<vmem>>, %arg4: memref<1x300xf32, #tpu.memory_space<vmem>>, %arg5: memref<100x300xbf16, #tpu.memory_space<vmem>>, %arg6: memref<1x300xf32, #tpu.memory_space<vmem>>, %arg7: memref<100x3xbf16, #tpu.memory_space<vmem>>, %arg8: memref<1x3xf32, #tpu.memory_space<vmem>>, %arg9: memref<1x3xf32, #tpu.memory_space<vmem>>) attributes {dimension_semantics = [], scalar_prefetch = 0 : i64, scratch_operands = 0 : i64, tpu.core_type = #tpu.core_type<tc>} {
    %c0 = arith.constant 0 : index
    %c0_0 = arith.constant 0 : index
    %0 = vector.load %arg0[%c0, %c0_0] : memref<1x6000xf32, #tpu.memory_space<vmem>>, vector<1x6000xf32>
    %1 = arith.truncf %0 : vector<1x6000xf32> to vector<1x6000xbf16>
    %c0_1 = arith.constant 0 : index
    %c0_2 = arith.constant 0 : index
    %2 = vector.load %arg1[%c0_1, %c0_2] : memref<6000x300xbf16, #tpu.memory_space<vmem>>, vector<6000x300xbf16>
    %cst = arith.constant dense<0.000000e+00> : vector<1x300xf32>
    %3 = tpu.matmul %1, %2, %cst {dimension_numbers = #tpu.dot_dimension_numbers<[1], [0], [0], [1], [0, 0, 1, 1], [], []>} : vector<1x6000xbf16>, vector<6000x300xbf16>, vector<1x300xf32> -> vector<1x300xf32>
    %c0_3 = arith.constant 0 : index
    %c0_4 = arith.constant 0 : index
    %4 = vector.load %arg2[%c0_3, %c0_4] : memref<1x300xf32, #tpu.memory_space<vmem>>, vector<1x300xf32>
    %5 = arith.addf %3, %4 : vector<1x300xf32>
    %6 = vector.extract_strided_slice %5 {offsets = [0, 0], sizes = [1, 100], strides = [1, 1]} : vector<1x300xf32> to vector<1x100xf32>
    %cst_5 = arith.constant 5.000000e-01 : f32
    %7 = vector.broadcast %cst_5 : f32 to vector<1x100xf32>
    %8 = arith.mulf %7, %6 : vector<1x100xf32>
    %9 = math.tanh %8 : vector<1x100xf32>
    %cst_6 = arith.constant 1.000000e+00 : f32
    %10 = vector.broadcast %cst_6 : f32 to vector<1x100xf32>
    %11 = arith.addf %9, %10 : vector<1x100xf32>
    %cst_7 = arith.constant 5.000000e-01 : f32
    %12 = vector.broadcast %cst_7 : f32 to vector<1x100xf32>
    %13 = arith.mulf %12, %11 : vector<1x100xf32>
    %14 = vector.extract_strided_slice %5 {offsets = [0, 100], sizes = [1, 100], strides = [1, 1]} : vector<1x300xf32> to vector<1x100xf32>
    %15 = math.tanh %14 : vector<1x100xf32>
    %16 = vector.extract_strided_slice %5 {offsets = [0, 200], sizes = [1, 100], strides = [1, 1]} : vector<1x300xf32> to vector<1x100xf32>
    %cst_8 = arith.constant 5.000000e-01 : f32
    %17 = vector.broadcast %cst_8 : f32 to vector<1x100xf32>
    %18 = arith.mulf %17, %16 : vector<1x100xf32>
    %19 = math.tanh %18 : vector<1x100xf32>
    %cst_9 = arith.constant 1.000000e+00 : f32
    %20 = vector.broadcast %cst_9 : f32 to vector<1x100xf32>
    %21 = arith.addf %19, %20 : vector<1x100xf32>
    %cst_10 = arith.constant 5.000000e-01 : f32
    %22 = vector.broadcast %cst_10 : f32 to vector<1x100xf32>
    %23 = arith.mulf %22, %21 : vector<1x100xf32>
    %24 = arith.mulf %13, %15 : vector<1x100xf32>
    %25 = math.tanh %24 : vector<1x100xf32>
    %26 = arith.mulf %23, %25 : vector<1x100xf32>
    %27 = arith.truncf %26 : vector<1x100xf32> to vector<1x100xbf16>
    %c0_11 = arith.constant 0 : index
    %c0_12 = arith.constant 0 : index
    %28 = vector.load %arg3[%c0_11, %c0_12] : memref<100x300xbf16, #tpu.memory_space<vmem>>, vector<100x300xbf16>
    %cst_13 = arith.constant dense<0.000000e+00> : vector<1x300xf32>
    %29 = tpu.matmul %27, %28, %cst_13 {dimension_numbers = #tpu.dot_dimension_numbers<[1], [0], [0], [1], [0, 0, 1, 1], [], []>} : vector<1x100xbf16>, vector<100x300xbf16>, vector<1x300xf32> -> vector<1x300xf32>
    %c0_14 = arith.constant 0 : index
    %c0_15 = arith.constant 0 : index
    %30 = vector.load %arg4[%c0_14, %c0_15] : memref<1x300xf32, #tpu.memory_space<vmem>>, vector<1x300xf32>
    %31 = arith.addf %29, %30 : vector<1x300xf32>
    %32 = vector.extract_strided_slice %31 {offsets = [0, 0], sizes = [1, 100], strides = [1, 1]} : vector<1x300xf32> to vector<1x100xf32>
    %cst_16 = arith.constant 5.000000e-01 : f32
    %33 = vector.broadcast %cst_16 : f32 to vector<1x100xf32>
    %34 = arith.mulf %33, %32 : vector<1x100xf32>
    %35 = math.tanh %34 : vector<1x100xf32>
    %cst_17 = arith.constant 1.000000e+00 : f32
    %36 = vector.broadcast %cst_17 : f32 to vector<1x100xf32>
    %37 = arith.addf %35, %36 : vector<1x100xf32>
    %cst_18 = arith.constant 5.000000e-01 : f32
    %38 = vector.broadcast %cst_18 : f32 to vector<1x100xf32>
    %39 = arith.mulf %38, %37 : vector<1x100xf32>
    %40 = vector.extract_strided_slice %31 {offsets = [0, 100], sizes = [1, 100], strides = [1, 1]} : vector<1x300xf32> to vector<1x100xf32>
    %41 = math.tanh %40 : vector<1x100xf32>
    %42 = vector.extract_strided_slice %31 {offsets = [0, 200], sizes = [1, 100], strides = [1, 1]} : vector<1x300xf32> to vector<1x100xf32>
    %cst_19 = arith.constant 5.000000e-01 : f32
    %43 = vector.broadcast %cst_19 : f32 to vector<1x100xf32>
    %44 = arith.mulf %43, %42 : vector<1x100xf32>
    %45 = math.tanh %44 : vector<1x100xf32>
    %cst_20 = arith.constant 1.000000e+00 : f32
    %46 = vector.broadcast %cst_20 : f32 to vector<1x100xf32>
    %47 = arith.addf %45, %46 : vector<1x100xf32>
    %cst_21 = arith.constant 5.000000e-01 : f32
    %48 = vector.broadcast %cst_21 : f32 to vector<1x100xf32>
    %49 = arith.mulf %48, %47 : vector<1x100xf32>
    %50 = arith.mulf %39, %41 : vector<1x100xf32>
    %51 = math.tanh %50 : vector<1x100xf32>
    %52 = arith.mulf %49, %51 : vector<1x100xf32>
    %53 = arith.truncf %52 : vector<1x100xf32> to vector<1x100xbf16>
    %c0_22 = arith.constant 0 : index
    %c0_23 = arith.constant 0 : index
    %54 = vector.load %arg5[%c0_22, %c0_23] : memref<100x300xbf16, #tpu.memory_space<vmem>>, vector<100x300xbf16>
    %cst_24 = arith.constant dense<0.000000e+00> : vector<1x300xf32>
    %55 = tpu.matmul %53, %54, %cst_24 {dimension_numbers = #tpu.dot_dimension_numbers<[1], [0], [0], [1], [0, 0, 1, 1], [], []>} : vector<1x100xbf16>, vector<100x300xbf16>, vector<1x300xf32> -> vector<1x300xf32>
    %c0_25 = arith.constant 0 : index
    %c0_26 = arith.constant 0 : index
    %56 = vector.load %arg6[%c0_25, %c0_26] : memref<1x300xf32, #tpu.memory_space<vmem>>, vector<1x300xf32>
    %57 = arith.addf %55, %56 : vector<1x300xf32>
    %58 = vector.extract_strided_slice %57 {offsets = [0, 0], sizes = [1, 100], strides = [1, 1]} : vector<1x300xf32> to vector<1x100xf32>
    %cst_27 = arith.constant 5.000000e-01 : f32
    %59 = vector.broadcast %cst_27 : f32 to vector<1x100xf32>
    %60 = arith.mulf %59, %58 : vector<1x100xf32>
    %61 = math.tanh %60 : vector<1x100xf32>
    %cst_28 = arith.constant 1.000000e+00 : f32
    %62 = vector.broadcast %cst_28 : f32 to vector<1x100xf32>
    %63 = arith.addf %61, %62 : vector<1x100xf32>
    %cst_29 = arith.constant 5.000000e-01 : f32
    %64 = vector.broadcast %cst_29 : f32 to vector<1x100xf32>
    %65 = arith.mulf %64, %63 : vector<1x100xf32>
    %66 = vector.extract_strided_slice %57 {offsets = [0, 100], sizes = [1, 100], strides = [1, 1]} : vector<1x300xf32> to vector<1x100xf32>
    %67 = math.tanh %66 : vector<1x100xf32>
    %68 = vector.extract_strided_slice %57 {offsets = [0, 200], sizes = [1, 100], strides = [1, 1]} : vector<1x300xf32> to vector<1x100xf32>
    %cst_30 = arith.constant 5.000000e-01 : f32
    %69 = vector.broadcast %cst_30 : f32 to vector<1x100xf32>
    %70 = arith.mulf %69, %68 : vector<1x100xf32>
    %71 = math.tanh %70 : vector<1x100xf32>
    %cst_31 = arith.constant 1.000000e+00 : f32
    %72 = vector.broadcast %cst_31 : f32 to vector<1x100xf32>
    %73 = arith.addf %71, %72 : vector<1x100xf32>
    %cst_32 = arith.constant 5.000000e-01 : f32
    %74 = vector.broadcast %cst_32 : f32 to vector<1x100xf32>
    %75 = arith.mulf %74, %73 : vector<1x100xf32>
    %76 = arith.mulf %65, %67 : vector<1x100xf32>
    %77 = math.tanh %76 : vector<1x100xf32>
    %78 = arith.mulf %75, %77 : vector<1x100xf32>
    %79 = arith.truncf %78 : vector<1x100xf32> to vector<1x100xbf16>
    %c0_33 = arith.constant 0 : index
    %c0_34 = arith.constant 0 : index
    %80 = vector.load %arg7[%c0_33, %c0_34] : memref<100x3xbf16, #tpu.memory_space<vmem>>, vector<100x3xbf16>
    %cst_35 = arith.constant dense<0.000000e+00> : vector<1x3xf32>
    %81 = tpu.matmul %79, %80, %cst_35 {dimension_numbers = #tpu.dot_dimension_numbers<[1], [0], [0], [1], [0, 0, 1, 1], [], []>} : vector<1x100xbf16>, vector<100x3xbf16>, vector<1x3xf32> -> vector<1x3xf32>
    %c0_36 = arith.constant 0 : index
    %c0_37 = arith.constant 0 : index
    %82 = vector.load %arg8[%c0_36, %c0_37] : memref<1x3xf32, #tpu.memory_space<vmem>>, vector<1x3xf32>
    %83 = arith.addf %81, %82 : vector<1x3xf32>
    %c0_38 = arith.constant 0 : index
    %c0_39 = arith.constant 0 : index
    %84 = vector.load %arg9[%c0_38, %c0_39] : memref<1x3xf32, #tpu.memory_space<vmem>>, vector<1x3xf32>
    tpu.vector_store %arg9[%c0_38, %c0_39], %83 {strides = array<i32>} : memref<1x3xf32, #tpu.memory_space<vmem>>, vector<1x3xf32>,
    return
  }
}

</mosaic_0001>

<bundles_post_ra>
// kernel: lstm_forward.1
= control target key start
LH: loop header
LB: loop body
LE: loop exit
PB: predicated region body
PF: predicated region fallthrough
CT: control target
= control target key end

     0   :  { %v46_v36 = vlaneseq  ;;  %vm7845_vm0 = vcmask 916480   ;;  %s18114_s0 = inlined_call_operand.vmem [shape: f32[1,6000], index: 0, kind: input, shape index: {}]   ;;  %s18115_s1 = inlined_call_operand.vmem [shape: bf16[6000,300], index: 1, kind: input, shape index: {}]   ;;  %s18116_s2 = inlined_call_operand.vmem [shape: f32[1,300], index: 2, kind: input, shape index: {}]   ;;  %s18117_s3 = inlined_call_operand.vmem [shape: bf16[100,300], index: 3, kind: input, shape index: {}]   ;;  %s18118_s4 = inlined_call_operand.vmem [shape: f32[1,300], index: 4, kind: input, shape index: {}]   ;;  %s18119_s5 = inlined_call_operand.vmem [shape: bf16[100,300], index: 5, kind: input, shape index: {}]   ;;  %s18120_s6 = inlined_call_operand.vmem [shape: f32[1,300], index: 6, kind: input, shape index: {}]   ;;  %s18121_s7 = inlined_call_operand.vmem [shape: bf16[100,3], index: 7, kind: input, shape index: {}]   ;;  %s18122_s8 = inlined_call_operand.vmem [shape: f32[1,3], index: 8, kind: input, shape index: {}]   ;;  %s18123_s9 = inlined_call_operand.hbm [shape: f32[1,3], index: 9, kind: output, shape index: {}]  }
   0x1   :  { %v12399_v0 = vld [vmem:[%s18115_s1 + $0x4] ss:$12 sps:$4 sm:$0xff]   ;;  %v12403_v2 = vld [vmem:[%s18115_s1] ss:$12 sps:$4 sm:$0xff]   ;;  %v12405_v4 = vld [vmem:[%s18115_s1 + $0x1c] ss:$12 sps:$4 sm:$0xff]  }
   0x2   :  { %v12401_v1 = vld [vmem:[%s18115_s1 + $0x604] ss:$12 sps:$4 sm:$0xff]   ;;  %7849 = vmatprep.subr.bf16.mxu1 %v12399_v0  ;;  %v12404_v3 = vld [vmem:[%s18115_s1 + $0x600] ss:$12 sps:$4 sm:$0xff]   ;;  %v12407_v5 = vld [vmem:[%s18115_s1 + $0x61c] ss:$12 sps:$4 sm:$0xff]  }
   0x3   :  { %8013 = vmatprep.subr.bf16.mxu0 %v12401_v1  ;;  %7850 = vmatpush1.bf16.msra.mxu1 %v12403_v2  ;;  %v12409_v6 = vld [vmem:[%s18115_s1 + $0x18] ss:$12 sps:$4 sm:$0xff]   ;;  %v12411_v8 = vld [vmem:[%s18115_s1 + $0x34] ss:$12 sps:$4 sm:$0xff]   ;;  %v12415_v10 = vld [vmem:[%s18115_s1 + $0x30] ss:$12 sps:$4 sm:$0xff]  }
   0x4   :  { %8014 = vmatpush1.bf16.msra.mxu0 %v12404_v3  ;;  %7851 = vmatprep.subr.bf16.mxu1 %v12405_v4  ;;  %v12410_v7 = vld [vmem:[%s18115_s1 + $0x618] ss:$12 sps:$4 sm:$0xff]   ;;  %v12413_v9 = vld [vmem:[%s18115_s1 + $0x634] ss:$12 sps:$4 sm:$0xff]   ;;  %v12416_v11 = vld [vmem:[%s18115_s1 + $0x630] ss:$12 sps:$4 sm:$0xff]  }
   0x5   :  { %8015 = vmatprep.subr.bf16.mxu0 %v12407_v5  ;;  %v12417_v12 = vld [vmem:[%s18115_s1 + $0x4c] ss:$12 sps:$4 sm:$0xff]   ;;  %v12421_v14 = vld [vmem:[%s18115_s1 + $0x48] ss:$12 sps:$4 sm:$0xff]   ;;  %v12423_v16 = vld [vmem:[%s18115_s1 + $0x64] ss:$12 sps:$4 sm:$0xff]  }
   0x6   :  { %v12419_v13 = vld [vmem:[%s18115_s1 + $0x64c] ss:$12 sps:$4 sm:$0xff]   ;;  %v12422_v15 = vld [vmem:[%s18115_s1 + $0x648] ss:$12 sps:$4 sm:$0xff]   ;;  %v12425_v17 = vld [vmem:[%s18115_s1 + $0x664] ss:$12 sps:$4 sm:$0xff]  }
   0x7   :  { %7852 = vmatpush1.bf16.msra.mxu1 %v12409_v6  ;;  %v12427_v18 = vld [vmem:[%s18115_s1 + $0x60] ss:$12 sps:$4 sm:$0xff]   ;;  %v12429_v20 = vld [vmem:[%s18115_s1 + $0x7c] ss:$12 sps:$4 sm:$0xff]   ;;  %v12433_v22 = vld [vmem:[%s18115_s1 + $0x78] ss:$12 sps:$4 sm:$0xff]  }
   0x8   :  { %8016 = vmatpush1.bf16.msra.mxu0 %v12410_v7  ;;  %7853 = vmatprep.subr.bf16.mxu1 %v12411_v8  ;;  %v12428_v19 = vld [vmem:[%s18115_s1 + $0x660] ss:$12 sps:$4 sm:$0xff]   ;;  %v12431_v21 = vld [vmem:[%s18115_s1 + $0x67c] ss:$12 sps:$4 sm:$0xff]   ;;  %v12434_v23 = vld [vmem:[%s18115_s1 + $0x678] ss:$12 sps:$4 sm:$0xff]  }
   0x9   :  { %8017 = vmatprep.subr.bf16.mxu0 %v12413_v9  ;;  %v12435_v24 = vld [vmem:[%s18115_s1 + $0x94] ss:$12 sps:$4 sm:$0xff]   ;;  %v12439_v26 = vld [vmem:[%s18115_s1 + $0x90] ss:$12 sps:$4 sm:$0xff]   ;;  %v12441_v28 = vld [vmem:[%s18115_s1 + $0xac] ss:$12 sps:$4 sm:$0xff]  }
   0xa   :  { %v12437_v25 = vld [vmem:[%s18115_s1 + $0x694] ss:$12 sps:$4 sm:$0xff]   ;;  %v12440_v27 = vld [vmem:[%s18115_s1 + $0x690] ss:$12 sps:$4 sm:$0xff]   ;;  %v12443_v29 = vld [vmem:[%s18115_s1 + $0x6ac] ss:$12 sps:$4 sm:$0xff]  }
   0xb   :  { %7854 = vmatpush1.bf16.msra.mxu1 %v12415_v10  ;;  %v12445_v30 = vld [vmem:[%s18115_s1 + $0xa8] ss:$12 sps:$4 sm:$0xff]   ;;  %v12447_v32 = vld [vmem:[%s18115_s1 + $0xc4] ss:$12 sps:$4 sm:$0xff]   ;;  %v12451_v34 = vld [vmem:[%s18115_s1 + $0xc0] ss:$12 sps:$4 sm:$0xff]  }
   0xc   :  { %8018 = vmatpush1.bf16.msra.mxu0 %v12416_v11  ;;  %7855 = vmatprep.subr.bf16.mxu1 %v12417_v12  ;;  %v12446_v31 = vld [vmem:[%s18115_s1 + $0x6a8] ss:$12 sps:$4 sm:$0xff]   ;;  %v12449_v33 = vld [vmem:[%s18115_s1 + $0x6c4] ss:$12 sps:$4 sm:$0xff]   ;;  %v12452_v35 = vld [vmem:[%s18115_s1 + $0x6c0] ss:$12 sps:$4 sm:$0xff]  }
   0xd   :  { %8019 = vmatprep.subr.bf16.mxu0 %v12419_v13  ;;  %v12453_v37 = vld [vmem:[%s18115_s1 + $0xdc] ss:$12 sps:$4 sm:$0xff]   ;;  %v12457_v39 = vld [vmem:[%s18115_s1 + $0xd8] ss:$12 sps:$4 sm:$0xff]   ;;  %v14203_v40 = vshrl.u32 %v46_v36, 7 }
   0xe   :  { %v12455_v38 = vld [vmem:[%s18115_s1 + $0x6dc] ss:$12 sps:$4 sm:$0xff]   ;;  %v12458_v41 = vld [vmem:[%s18115_s1 + $0x6d8] ss:$12 sps:$4 sm:$0xff]   ;;  %v12459_v42 = vld [vmem:[%s18115_s1 + $0xf4] ss:$12 sps:$4 sm:$0xff]  }
   0xf   :  { %7856 = vmatpush1.bf16.msra.mxu1 %v12421_v14  ;;  %v12461_v43 = vld [vmem:[%s18115_s1 + $0x6f4] ss:$12 sps:$4 sm:$0xff]   ;;  %v12463_v44 = vld [vmem:[%s18115_s1 + $0xf0] ss:$12 sps:$4 sm:$0xff]   ;;  %v14221_v46 = vsub.s32 1, %v14203_v40  ;;  %v14245_v53 = vld [vmem:[%s18114_s0 + $0x8] sm:$0xff] }
  0x10   :  { %8020 = vmatpush1.bf16.msra.mxu0 %v12422_v15  ;;  %7857 = vmatprep.subr.bf16.mxu1 %v12423_v16  ;;  %v12464_v45 = vld [vmem:[%s18115_s1 + $0x6f0] ss:$12 sps:$4 sm:$0xff]   ;;  %v12465_v47 = vld [vmem:[%s18115_s1 + $0x10c] ss:$12 sps:$4 sm:$0xff]   ;;  %v14232_v49 = vld [vmem:[%s18114_s0] sm:$0xff]  ;;  %v14286_v3 = vsub.s32 0, %v14203_v40 }
  0x11   :  { %8021 = vmatprep.subr.bf16.mxu0 %v12425_v17  ;;  %v12467_v48 = vld [vmem:[%s18115_s1 + $0x70c] ss:$12 sps:$4 sm:$0xff]   ;;  %v12469_v50 = vld [vmem:[%s18115_s1 + $0x108] ss:$12 sps:$4 sm:$0xff]   ;;  %v53_v51 = vrot.slane %v14232_v49, %v14221_v46  ;;  %v12471_v54 = vld [vmem:[%s18115_s1 + $0x124] ss:$12 sps:$4 sm:$0xff]   ;;  %v85_v57 = vrot.slane %v14245_v53, %v14221_v46 }
  0x12   :  { %v12470_v52 = vld [vmem:[%s18115_s1 + $0x708] ss:$12 sps:$4 sm:$0xff]   ;;  %v12473_v55 = vld [vmem:[%s18115_s1 + $0x724] ss:$12 sps:$4 sm:$0xff]   ;;  %v12475_v59 = vld [vmem:[%s18115_s1 + $0x120] ss:$12 sps:$4 sm:$0xff]   ;;  %v49_v9 = vrot.slane %v14232_v49, %v14286_v3  ;;  %v81_v10 = vrot.slane %v14245_v53, %v14286_v3 }
  0x13   :  { %7858 = vmatpush1.bf16.msra.mxu1 %v12427_v18  ;;  %v14253_v56 = vpack.c.bf16 %v53_v51, %v53_v51  ;;  %v14258_v58 = vpack.c.bf16 %v85_v57, %v85_v57  ;;  %v12476_v60 = vld [vmem:[%s18115_s1 + $0x720] ss:$12 sps:$4 sm:$0xff]   ;;  %v12477_v61 = vld [vmem:[%s18115_s1 + $0x13c] ss:$12 sps:$4 sm:$0xff]   ;;  %v12481_v63 = vld [vmem:[%s18115_s1 + $0x138] ss:$12 sps:$4 sm:$0xff]  }
  0x14   :  { %8022 = vmatpush1.bf16.msra.mxu0 %v12428_v19  ;;  %7859 = vmatprep.subr.bf16.mxu1 %v12429_v20  ;;  %v12479_v62 = vld [vmem:[%s18115_s1 + $0x73c] ss:$12 sps:$4 sm:$0xff]   ;;  %v12482_v0 = vld [vmem:[%s18115_s1 + $0x738] ss:$12 sps:$4 sm:$0xff]   ;;  %v12483_v1 = vld [vmem:[%s18115_s1 + $0x154] ss:$12 sps:$4 sm:$0xff]   ;;  %v14323_v17 = vpack.c.bf16 %v49_v9, %v49_v9  ;;  %v14325_v18 = vpack.c.bf16 %v81_v10, %v81_v10 }
  0x15   :  { %8023 = vmatprep.subr.bf16.mxu0 %v12431_v21  ;;  %7881 = vmatprep.mubr.bf16.mxu1 %v14253_v56  ;;  %v12485_v2 = vld [vmem:[%s18115_s1 + $0x754] ss:$12 sps:$4 sm:$0xff]   ;;  %v12487_v4 = vld [vmem:[%s18115_s1 + $0x150] ss:$12 sps:$4 sm:$0xff]   ;;  %v12489_v6 = vld [vmem:[%s18115_s1 + $0x16c] ss:$12 sps:$4 sm:$0xff]  }
  0x16   :  { %8045 = vmatprep.mubr.bf16.mxu0 %v14258_v58  ;;  %v12488_v5 = vld [vmem:[%s18115_s1 + $0x750] ss:$12 sps:$4 sm:$0xff]   ;;  %v12491_v7 = vld [vmem:[%s18115_s1 + $0x76c] ss:$12 sps:$4 sm:$0xff]   ;;  %v14301_v8 = vsub.s32 3, %v14203_v40 }
  0x17   :  { %7860 = vmatpush1.bf16.msra.mxu1 %v12433_v22  ;;  %v12493_v11 = vld [vmem:[%s18115_s1 + $0x168] ss:$12 sps:$4 sm:$0xff]   ;;  %v12497_v13 = vld [vmem:[%s18115_s1 + $0x184] ss:$12 sps:$4 sm:$0xff]   ;;  %v12495_v19 = vld [vmem:[%s18115_s1 + $0x180] ss:$12 sps:$4 sm:$0xff]  }
  0x18   :  { %8024 = vmatpush1.bf16.msra.mxu0 %v12434_v23  ;;  %7861 = vmatprep.subr.bf16.mxu1 %v12435_v24  ;;  %v12494_v12 = vld [vmem:[%s18115_s1 + $0x768] ss:$12 sps:$4 sm:$0xff]   ;;  %v12500_v14 = vld [vmem:[%s18115_s1 + $0x784] ss:$12 sps:$4 sm:$0xff]   ;;  %v61_v15 = vrot.slane %v14232_v49, %v14301_v8  ;;  %v93_v16 = vrot.slane %v14245_v53, %v14301_v8  ;;  %v12498_v20 = vld [vmem:[%s18115_s1 + $0x780] ss:$12 sps:$4 sm:$0xff]  }
  0x19   :  { %8025 = vmatprep.subr.bf16.mxu0 %v12437_v25  ;;  %v12503_v21 = vld [vmem:[%s18115_s1 + $0x19c] ss:$12 sps:$4 sm:$0xff]   ;;  %v12501_v25 = vld [vmem:[%s18115_s1 + $0x198] ss:$12 sps:$4 sm:$0xff]  }
  0x1a   :  { %v12506_v22 = vld [vmem:[%s18115_s1 + $0x79c] ss:$12 sps:$4 sm:$0xff]   ;;  %v14339_v23 = vpack.c.bf16 %v61_v15, %v61_v15  ;;  %v14341_v24 = vpack.c.bf16 %v93_v16, %v93_v16  ;;  %v12524_v36 = vld [vmem:[%s18115_s1 + $0x7e4] ss:$12 sps:$4 sm:$0xff]   ;;  %v12542_v51 = vld [vmem:[%s18115_s1 + $0x82c] ss:$12 sps:$4 sm:$0xff]  }
  0x1b   :  { %7862 = vmatpush1.bf16.msra.mxu1 %v12439_v26  ;;  %v12504_v26 = vld [vmem:[%s18115_s1 + $0x798] ss:$12 sps:$4 sm:$0xff]   ;;  %v12561_v9 = vld [vmem:[%s18115_s1 + $0x288] ss:$12 sps:$4 sm:$0xff]  }
  0x1c   :  { %8026 = vmatpush1.bf16.msra.mxu0 %v12440_v27  ;;  %7863 = vmatprep.subr.bf16.mxu1 %v12441_v28  ;;  %v12509_v27 = vld [vmem:[%s18115_s1 + $0x1b4] ss:$12 sps:$4 sm:$0xff]   ;;  %v12548_v57 = vld [vmem:[%s18115_s1 + $0x844] ss:$12 sps:$4 sm:$0xff]   ;;  %v12575_v15 = vld [vmem:[%s18115_s1 + $0x2bc] ss:$12 sps:$4 sm:$0xff]  }
  0x1d   :  { %8027 = vmatprep.subr.bf16.mxu0 %v12443_v29  ;;  %v12512_v28 = vld [vmem:[%s18115_s1 + $0x7b4] ss:$12 sps:$4 sm:$0xff]   ;;  %v12507_v29 = vld [vmem:[%s18115_s1 + $0x1b0] ss:$12 sps:$4 sm:$0xff]  }
  0x1e   :  { %v12564_v10 = vld [vmem:[%s18115_s1 + $0x888] ss:$12 sps:$4 sm:$0xff]  }
  0x1f   :  { %7864 = vmatpush1.bf16.msra.mxu1 %v12445_v30  ;;  %v12510_v30 = vld [vmem:[%s18115_s1 + $0x7b0] ss:$12 sps:$4 sm:$0xff]  }
  0x20   :  { %8028 = vmatpush1.bf16.msra.mxu0 %v12446_v31  ;;  %7865 = vmatprep.subr.bf16.mxu1 %v12447_v32  ;;  %v12515_v31 = vld [vmem:[%s18115_s1 + $0x1cc] ss:$12 sps:$4 sm:$0xff]   ;;  %v12578_v16 = vld [vmem:[%s18115_s1 + $0x8bc] ss:$12 sps:$4 sm:$0xff]  }
  0x21   :  { %8029 = vmatprep.subr.bf16.mxu0 %v12449_v33  ;;  %v12518_v32 = vld [vmem:[%s18115_s1 + $0x7cc] ss:$12 sps:$4 sm:$0xff]   ;;  %v12513_v33 = vld [vmem:[%s18115_s1 + $0x1c8] ss:$12 sps:$4 sm:$0xff]  }
  0x23   :  { %7866 = vmatpush1.bf16.msra.mxu1 %v12451_v34  ;;  %v12516_v34 = vld [vmem:[%s18115_s1 + $0x7c8] ss:$12 sps:$4 sm:$0xff]  }
  0x24   :  { %8030 = vmatpush1.bf16.msra.mxu0 %v12452_v35  ;;  %7867 = vmatprep.subr.bf16.mxu1 %v12453_v37  ;;  %v12521_v35 = vld [vmem:[%s18115_s1 + $0x1e4] ss:$12 sps:$4 sm:$0xff]   ;;  %v12519_v37 = vld [vmem:[%s18115_s1 + $0x1e0] ss:$12 sps:$4 sm:$0xff]  }
  0x25   :  { %8031 = vmatprep.subr.bf16.mxu0 %v12455_v38  ;;  %v12522_v38 = vld [vmem:[%s18115_s1 + $0x7e0] ss:$12 sps:$4 sm:$0xff]  }
  0x27   :  { %7868 = vmatpush1.bf16.msra.mxu1 %v12457_v39  ;;  %v12527_v39 = vld [vmem:[%s18115_s1 + $0x1fc] ss:$12 sps:$4 sm:$0xff]  }
  0x28   :  { %8032 = vmatpush1.bf16.msra.mxu0 %v12458_v41  ;;  %7869 = vmatprep.subr.bf16.mxu1 %v12459_v42  ;;  %v12530_v41 = vld [vmem:[%s18115_s1 + $0x7fc] ss:$12 sps:$4 sm:$0xff]   ;;  %v12525_v42 = vld [vmem:[%s18115_s1 + $0x1f8] ss:$12 sps:$4 sm:$0xff]  }
  0x29   :  { %8033 = vmatprep.subr.bf16.mxu0 %v12461_v43  ;;  %v12528_v43 = vld [vmem:[%s18115_s1 + $0x7f8] ss:$12 sps:$4 sm:$0xff]  }
  0x2b   :  { %7870 = vmatpush1.bf16.msra.mxu1 %v12463_v44  ;;  %v12533_v44 = vld [vmem:[%s18115_s1 + $0x214] ss:$12 sps:$4 sm:$0xff]  }
  0x2c   :  { %8034 = vmatpush1.bf16.msra.mxu0 %v12464_v45  ;;  %7871 = vmatprep.subr.bf16.mxu1 %v12465_v47  ;;  %v12536_v45 = vld [vmem:[%s18115_s1 + $0x814] ss:$12 sps:$4 sm:$0xff]   ;;  %v12531_v47 = vld [vmem:[%s18115_s1 + $0x210] ss:$12 sps:$4 sm:$0xff]  }
  0x2d   :  { %8035 = vmatprep.subr.bf16.mxu0 %v12467_v48  ;;  %v12534_v48 = vld [vmem:[%s18115_s1 + $0x810] ss:$12 sps:$4 sm:$0xff]  }
  0x2f   :  { %7872 = vmatpush1.bf16.msra.mxu1 %v12469_v50  ;;  %v12539_v50 = vld [vmem:[%s18115_s1 + $0x22c] ss:$12 sps:$4 sm:$0xff]  }
  0x30   :  { %8036 = vmatpush1.bf16.msra.mxu0 %v12470_v52  ;;  %7873 = vmatprep.subr.bf16.mxu1 %v12471_v54  ;;  %v12537_v52 = vld [vmem:[%s18115_s1 + $0x228] ss:$12 sps:$4 sm:$0xff]  }
  0x31   :  { %8037 = vmatprep.subr.bf16.mxu0 %v12473_v55  ;;  %v12540_v54 = vld [vmem:[%s18115_s1 + $0x828] ss:$12 sps:$4 sm:$0xff]   ;;  %v12545_v55 = vld [vmem:[%s18115_s1 + $0x244] ss:$12 sps:$4 sm:$0xff]  }
  0x33   :  { %7874 = vmatpush1.bf16.msra.mxu1 %v12475_v59  ;;  %v12543_v59 = vld [vmem:[%s18115_s1 + $0x240] ss:$12 sps:$4 sm:$0xff]  }
  0x34   :  { %8038 = vmatpush1.bf16.msra.mxu0 %v12476_v60  ;;  %7875 = vmatprep.subr.bf16.mxu1 %v12477_v61  ;;  %v12546_v60 = vld [vmem:[%s18115_s1 + $0x840] ss:$12 sps:$4 sm:$0xff]   ;;  %v12551_v61 = vld [vmem:[%s18115_s1 + $0x25c] ss:$12 sps:$4 sm:$0xff]  }
  0x35   :  { %8039 = vmatprep.subr.bf16.mxu0 %v12479_v62  ;;  %v12554_v62 = vld [vmem:[%s18115_s1 + $0x85c] ss:$12 sps:$4 sm:$0xff]  }
  0x37   :  { %7876 = vmatpush1.bf16.msra.mxu1 %v12481_v63  ;;  %v12549_v63 = vld [vmem:[%s18115_s1 + $0x258] ss:$12 sps:$4 sm:$0xff]  }
  0x38   :  { %8040 = vmatpush1.bf16.msra.mxu0 %v12482_v0  ;;  %7877 = vmatprep.subr.bf16.mxu1 %v12483_v1  ;;  %v12552_v0 = vld [vmem:[%s18115_s1 + $0x858] ss:$12 sps:$4 sm:$0xff]   ;;  %v12557_v1 = vld [vmem:[%s18115_s1 + $0x274] ss:$12 sps:$4 sm:$0xff]  }
  0x39   :  { %8041 = vmatprep.subr.bf16.mxu0 %v12485_v2  ;;  %v12560_v2 = vld [vmem:[%s18115_s1 + $0x874] ss:$12 sps:$4 sm:$0xff]  }
  0x3b   :  { %7878 = vmatpush1.bf16.msra.mxu1 %v12487_v4  ;;  %v12555_v4 = vld [vmem:[%s18115_s1 + $0x270] ss:$12 sps:$4 sm:$0xff]  }
  0x3c   :  { %8042 = vmatpush1.bf16.msra.mxu0 %v12488_v5  ;;  %7879 = vmatprep.subr.bf16.mxu1 %v12489_v6  ;;  %v12558_v5 = vld [vmem:[%s18115_s1 + $0x870] ss:$12 sps:$4 sm:$0xff]   ;;  %v12563_v6 = vld [vmem:[%s18115_s1 + $0x28c] ss:$12 sps:$4 sm:$0xff]  }
  0x3d   :  { %8043 = vmatprep.subr.bf16.mxu0 %v12491_v7  ;;  %v12566_v7 = vld [vmem:[%s18115_s1 + $0x88c] ss:$12 sps:$4 sm:$0xff]  }
  0x3f   :  { %7880 = vmatpush1.bf16.msra.mxu1 %v12493_v11  ;;  %v12569_v11 = vld [vmem:[%s18115_s1 + $0x2a4] ss:$12 sps:$4 sm:$0xff]  }
  0x40   :  { %8044 = vmatpush1.bf16.msra.mxu0 %v12494_v12  ;;  %7890 = vmatprep.subr.bf16.mxu1 %v12497_v13  ;;  %v12572_v12 = vld [vmem:[%s18115_s1 + $0x8a4] ss:$12 sps:$4 sm:$0xff]   ;;  %v12567_v13 = vld [vmem:[%s18115_s1 + $0x2a0] ss:$12 sps:$4 sm:$0xff]  }
  0x41   :  { %8054 = vmatprep.subr.bf16.mxu0 %v12500_v14  ;;  %v12570_v14 = vld [vmem:[%s18115_s1 + $0x8a0] ss:$12 sps:$4 sm:$0xff]  }
  0x42   :  { %7882 = vmatmul.mubr.bf16.vlgmr.msra.gmra.mrb[0].mxu1 %v14323_v17 }
  0x43   :  { %8046 = vmatmul.mubr.bf16.vlgmr.msra.gmra.mrb[0].mxu0 %v14325_v18  ;;  %7891 = vmatpush1.bf16.msra.mxu1 %v12495_v19  ;;  %v12573_v19 = vld [vmem:[%s18115_s1 + $0x2b8] ss:$12 sps:$4 sm:$0xff]  }
  0x44   :  { %8055 = vmatpush1.bf16.msra.mxu0 %v12498_v20  ;;  %7892 = vmatprep.subr.bf16.mxu1 %v12503_v21  ;;  %v12576_v20 = vld [vmem:[%s18115_s1 + $0x8b8] ss:$12 sps:$4 sm:$0xff]   ;;  %v12581_v21 = vld [vmem:[%s18115_s1 + $0x2d4] ss:$12 sps:$4 sm:$0xff]  }
  0x45   :  { %8056 = vmatprep.subr.bf16.mxu0 %v12506_v22  ;;  %7922 = vmatprep.mubr.bf16.mxu1 %v14339_v23  ;;  %v12584_v22 = vld [vmem:[%s18115_s1 + $0x8d4] ss:$12 sps:$4 sm:$0xff]  }
  0x46   :  { %8086 = vmatprep.mubr.bf16.mxu0 %v14341_v24 }
  0x47   :  { %7893 = vmatpush1.bf16.msra.mxu1 %v12501_v25  ;;  %v14504_v25 = vsub.s32 2, %v14203_v40 }
  0x48   :  { %8057 = vmatpush1.bf16.msra.mxu0 %v12504_v26  ;;  %7894 = vmatprep.subr.bf16.mxu1 %v12509_v27  ;;  %v12579_v26 = vld [vmem:[%s18115_s1 + $0x2d0] ss:$12 sps:$4 sm:$0xff]  }
  0x49   :  { %8058 = vmatprep.subr.bf16.mxu0 %v12512_v28  ;;  %v12582_v27 = vld [vmem:[%s18115_s1 + $0x8d0] ss:$12 sps:$4 sm:$0xff]   ;;  %v12587_v28 = vld [vmem:[%s18115_s1 + $0x2ec] ss:$12 sps:$4 sm:$0xff]  }
  0x4b   :  { %7895 = vmatpush1.bf16.msra.mxu1 %v12507_v29  ;;  %v12590_v29 = vld [vmem:[%s18115_s1 + $0x8ec] ss:$12 sps:$4 sm:$0xff]  }
  0x4c   :  { %8059 = vmatpush1.bf16.msra.mxu0 %v12510_v30  ;;  %7896 = vmatprep.subr.bf16.mxu1 %v12515_v31  ;;  %v14519_v30 = vsub.s32 5, %v14203_v40  ;;  %v57_v31 = vrot.slane %v14232_v49, %v14504_v25 }
  0x4d   :  { %8060 = vmatprep.subr.bf16.mxu0 %v12518_v32  ;;  %v89_v32 = vrot.slane %v14245_v53, %v14504_v25 }
  0x4f   :  { %7897 = vmatpush1.bf16.msra.mxu1 %v12513_v33  ;;  %v12585_v33 = vld [vmem:[%s18115_s1 + $0x2e8] ss:$12 sps:$4 sm:$0xff]  }
  0x50   :  { %8061 = vmatpush1.bf16.msra.mxu0 %v12516_v34  ;;  %7898 = vmatprep.subr.bf16.mxu1 %v12521_v35  ;;  %v12588_v34 = vld [vmem:[%s18115_s1 + $0x8e8] ss:$12 sps:$4 sm:$0xff]   ;;  %v12593_v35 = vld [vmem:[%s18115_s1 + $0x304] ss:$12 sps:$4 sm:$0xff]  }
  0x51   :  { %8062 = vmatprep.subr.bf16.mxu0 %v12524_v36  ;;  %v12596_v36 = vld [vmem:[%s18115_s1 + $0x904] ss:$12 sps:$4 sm:$0xff]  }
  0x53   :  { %7899 = vmatpush1.bf16.msra.mxu1 %v12519_v37  ;;  %v69_v37 = vrot.slane %v14232_v49, %v14519_v30  ;;  %v12599_v49 = vld [vmem:[%s18115_s1 + $0x31c] ss:$12 sps:$4 sm:$0xff]  }
  0x54   :  { %8063 = vmatpush1.bf16.msra.mxu0 %v12522_v38  ;;  %7900 = vmatprep.subr.bf16.mxu1 %v12527_v39  ;;  %v101_v38 = vrot.slane %v14245_v53, %v14519_v30  ;;  %v14541_v39 = vpack.c.bf16 %v57_v31, %v57_v31  ;;  %v12602_v53 = vld [vmem:[%s18115_s1 + $0x91c] ss:$12 sps:$4 sm:$0xff]  }
  0x55   :  { %8064 = vmatprep.subr.bf16.mxu0 %v12530_v41  ;;  %v14543_v41 = vpack.c.bf16 %v89_v32, %v89_v32  ;;  %v12651_v31 = vld [vmem:[%s18115_s1 + $0x3f0] ss:$12 sps:$4 sm:$0xff]  }
  0x56   :  { %v12654_v32 = vld [vmem:[%s18115_s1 + $0x9f0] ss:$12 sps:$4 sm:$0xff]  }
  0x57   :  { %7901 = vmatpush1.bf16.msra.mxu1 %v12525_v42  ;;  %v12591_v42 = vld [vmem:[%s18115_s1 + $0x300] ss:$12 sps:$4 sm:$0xff]  }
  0x58   :  { %8065 = vmatpush1.bf16.msra.mxu0 %v12528_v43  ;;  %7902 = vmatprep.subr.bf16.mxu1 %v12533_v44  ;;  %v12594_v43 = vld [vmem:[%s18115_s1 + $0x900] ss:$12 sps:$4 sm:$0xff]   ;;  %v14557_v44 = vpack.c.bf16 %v69_v37, %v69_v37  ;;  %v12665_v37 = vld [vmem:[%s18115_s1 + $0x424] ss:$12 sps:$4 sm:$0xff]  }
  0x59   :  { %8066 = vmatprep.subr.bf16.mxu0 %v12536_v45  ;;  %v14559_v45 = vpack.c.bf16 %v101_v38, %v101_v38  ;;  %v12668_v38 = vld [vmem:[%s18115_s1 + $0xa24] ss:$12 sps:$4 sm:$0xff]  }
  0x5b   :  { %7903 = vmatpush1.bf16.msra.mxu1 %v12531_v47  ;;  %v12597_v47 = vld [vmem:[%s18115_s1 + $0x318] ss:$12 sps:$4 sm:$0xff]  }
  0x5c   :  { %8067 = vmatpush1.bf16.msra.mxu0 %v12534_v48  ;;  %7904 = vmatprep.subr.bf16.mxu1 %v12539_v50  ;;  %v12600_v48 = vld [vmem:[%s18115_s1 + $0x918] ss:$12 sps:$4 sm:$0xff]   ;;  %v12605_v50 = vld [vmem:[%s18115_s1 + $0x334] ss:$12 sps:$4 sm:$0xff]  }
  0x5d   :  { %8068 = vmatprep.subr.bf16.mxu0 %v12542_v51  ;;  %v12608_v51 = vld [vmem:[%s18115_s1 + $0x934] ss:$12 sps:$4 sm:$0xff]  }
  0x5f   :  { %7905 = vmatpush1.bf16.msra.mxu1 %v12537_v52  ;;  %v12603_v52 = vld [vmem:[%s18115_s1 + $0x330] ss:$12 sps:$4 sm:$0xff]  }
  0x60   :  { %8069 = vmatpush1.bf16.msra.mxu0 %v12540_v54  ;;  %7906 = vmatprep.subr.bf16.mxu1 %v12545_v55  ;;  %v12606_v54 = vld [vmem:[%s18115_s1 + $0x930] ss:$12 sps:$4 sm:$0xff]   ;;  %v12611_v55 = vld [vmem:[%s18115_s1 + $0x34c] ss:$12 sps:$4 sm:$0xff]  }
  0x61   :  { %8070 = vmatprep.subr.bf16.mxu0 %v12548_v57  ;;  %v12614_v57 = vld [vmem:[%s18115_s1 + $0x94c] ss:$12 sps:$4 sm:$0xff]  }
  0x63   :  { %7907 = vmatpush1.bf16.msra.mxu1 %v12543_v59  ;;  %v12609_v59 = vld [vmem:[%s18115_s1 + $0x348] ss:$12 sps:$4 sm:$0xff]  }
  0x64   :  { %8071 = vmatpush1.bf16.msra.mxu0 %v12546_v60  ;;  %7908 = vmatprep.subr.bf16.mxu1 %v12551_v61  ;;  %v12612_v60 = vld [vmem:[%s18115_s1 + $0x948] ss:$12 sps:$4 sm:$0xff]   ;;  %v12617_v61 = vld [vmem:[%s18115_s1 + $0x364] ss:$12 sps:$4 sm:$0xff]  }
  0x65   :  { %8072 = vmatprep.subr.bf16.mxu0 %v12554_v62  ;;  %v12620_v62 = vld [vmem:[%s18115_s1 + $0x964] ss:$12 sps:$4 sm:$0xff]  }
  0x67   :  { %7909 = vmatpush1.bf16.msra.mxu1 %v12549_v63  ;;  %v12615_v63 = vld [vmem:[%s18115_s1 + $0x360] ss:$12 sps:$4 sm:$0xff]  }
  0x68   :  { %8073 = vmatpush1.bf16.msra.mxu0 %v12552_v0  ;;  %7910 = vmatprep.subr.bf16.mxu1 %v12557_v1  ;;  %v12618_v0 = vld [vmem:[%s18115_s1 + $0x960] ss:$12 sps:$4 sm:$0xff]   ;;  %v12623_v1 = vld [vmem:[%s18115_s1 + $0x37c] ss:$12 sps:$4 sm:$0xff]  }
  0x69   :  { %8074 = vmatprep.subr.bf16.mxu0 %v12560_v2  ;;  %v12626_v2 = vld [vmem:[%s18115_s1 + $0x97c] ss:$12 sps:$4 sm:$0xff]  }
  0x6b   :  { %7911 = vmatpush1.bf16.msra.mxu1 %v12555_v4  ;;  %v12621_v4 = vld [vmem:[%s18115_s1 + $0x378] ss:$12 sps:$4 sm:$0xff]  }
  0x6c   :  { %8075 = vmatpush1.bf16.msra.mxu0 %v12558_v5  ;;  %7912 = vmatprep.subr.bf16.mxu1 %v12563_v6  ;;  %v12624_v5 = vld [vmem:[%s18115_s1 + $0x978] ss:$12 sps:$4 sm:$0xff]   ;;  %v12629_v6 = vld [vmem:[%s18115_s1 + $0x394] ss:$12 sps:$4 sm:$0xff]  }
  0x6d   :  { %8076 = vmatprep.subr.bf16.mxu0 %v12566_v7  ;;  %v12632_v7 = vld [vmem:[%s18115_s1 + $0x994] ss:$12 sps:$4 sm:$0xff]  }
  0x6f   :  { %7913 = vmatpush1.bf16.msra.mxu1 %v12561_v9  ;;  %v12627_v9 = vld [vmem:[%s18115_s1 + $0x390] ss:$12 sps:$4 sm:$0xff]  }
  0x70   :  { %8077 = vmatpush1.bf16.msra.mxu0 %v12564_v10  ;;  %7914 = vmatprep.subr.bf16.mxu1 %v12569_v11  ;;  %v12630_v10 = vld [vmem:[%s18115_s1 + $0x990] ss:$12 sps:$4 sm:$0xff]   ;;  %v12635_v11 = vld [vmem:[%s18115_s1 + $0x3ac] ss:$12 sps:$4 sm:$0xff]  }
  0x71   :  { %8078 = vmatprep.subr.bf16.mxu0 %v12572_v12  ;;  %v12638_v12 = vld [vmem:[%s18115_s1 + $0x9ac] ss:$12 sps:$4 sm:$0xff]  }
  0x73   :  { %7915 = vmatpush1.bf16.msra.mxu1 %v12567_v13  ;;  %v12633_v13 = vld [vmem:[%s18115_s1 + $0x3a8] ss:$12 sps:$4 sm:$0xff]  }
  0x74   :  { %8079 = vmatpush1.bf16.msra.mxu0 %v12570_v14  ;;  %7916 = vmatprep.subr.bf16.mxu1 %v12575_v15  ;;  %v12636_v14 = vld [vmem:[%s18115_s1 + $0x9a8] ss:$12 sps:$4 sm:$0xff]   ;;  %v12641_v15 = vld [vmem:[%s18115_s1 + $0x3c4] ss:$12 sps:$4 sm:$0xff]  }
  0x75   :  { %8080 = vmatprep.subr.bf16.mxu0 %v12578_v16  ;;  %v12644_v16 = vld [vmem:[%s18115_s1 + $0x9c4] ss:$12 sps:$4 sm:$0xff]  }
  0x77   :  { %7917 = vmatpush1.bf16.msra.mxu1 %v12573_v19  ;;  %v12639_v19 = vld [vmem:[%s18115_s1 + $0x3c0] ss:$12 sps:$4 sm:$0xff]  }
  0x78   :  { %8081 = vmatpush1.bf16.msra.mxu0 %v12576_v20  ;;  %7918 = vmatprep.subr.bf16.mxu1 %v12581_v21  ;;  %v12642_v20 = vld [vmem:[%s18115_s1 + $0x9c0] ss:$12 sps:$4 sm:$0xff]   ;;  %v12647_v21 = vld [vmem:[%s18115_s1 + $0x3dc] ss:$12 sps:$4 sm:$0xff]  }
  0x79   :  { %8082 = vmatprep.subr.bf16.mxu0 %v12584_v22  ;;  %v12650_v22 = vld [vmem:[%s18115_s1 + $0x9dc] ss:$12 sps:$4 sm:$0xff]  }
  0x7b   :  { %7919 = vmatpush1.bf16.msra.mxu1 %v12579_v26  ;;  %v12645_v26 = vld [vmem:[%s18115_s1 + $0x3d8] ss:$12 sps:$4 sm:$0xff]  }
  0x7c   :  { %8083 = vmatpush1.bf16.msra.mxu0 %v12582_v27  ;;  %7920 = vmatprep.subr.bf16.mxu1 %v12587_v28  ;;  %v12648_v27 = vld [vmem:[%s18115_s1 + $0x9d8] ss:$12 sps:$4 sm:$0xff]   ;;  %v12653_v28 = vld [vmem:[%s18115_s1 + $0x3f4] ss:$12 sps:$4 sm:$0xff]  }
  0x7d   :  { %8084 = vmatprep.subr.bf16.mxu0 %v12590_v29  ;;  %v12656_v29 = vld [vmem:[%s18115_s1 + $0x9f4] ss:$12 sps:$4 sm:$0xff]  }
  0x7f   :  { %7921 = vmatpush1.bf16.msra.mxu1 %v12585_v33  ;;  %v12659_v33 = vld [vmem:[%s18115_s1 + $0x40c] ss:$12 sps:$4 sm:$0xff]  }
  0x80   :  { %8085 = vmatpush1.bf16.msra.mxu0 %v12588_v34  ;;  %7931 = vmatprep.subr.bf16.mxu1 %v12593_v35  ;;  %v12662_v34 = vld [vmem:[%s18115_s1 + $0xa0c] ss:$12 sps:$4 sm:$0xff]   ;;  %v12657_v35 = vld [vmem:[%s18115_s1 + $0x408] ss:$12 sps:$4 sm:$0xff]  }
  0x81   :  { %8095 = vmatprep.subr.bf16.mxu0 %v12596_v36  ;;  %v12660_v36 = vld [vmem:[%s18115_s1 + $0xa08] ss:$12 sps:$4 sm:$0xff]  }
  0x82   :  { %7923 = vmatmul.mubr.bf16.vlgmr.msra.gmra.mrb[0].mxu1 %v14541_v39 }
  0x83   :  { %8087 = vmatmul.mubr.bf16.vlgmr.msra.gmra.mrb[0].mxu0 %v14543_v41  ;;  %7932 = vmatpush1.bf16.msra.mxu1 %v12591_v42  ;;  %v12663_v42 = vld [vmem:[%s18115_s1 + $0x420] ss:$12 sps:$4 sm:$0xff]  }
  0x84   :  { %8096 = vmatpush1.bf16.msra.mxu0 %v12594_v43  ;;  %7933 = vmatprep.subr.bf16.mxu1 %v12599_v49  ;;  %v12666_v43 = vld [vmem:[%s18115_s1 + $0xa20] ss:$12 sps:$4 sm:$0xff]   ;;  %v12671_v49 = vld [vmem:[%s18115_s1 + $0x43c] ss:$12 sps:$4 sm:$0xff]  }
  0x85   :  { %8097 = vmatprep.subr.bf16.mxu0 %v12602_v53  ;;  %7963 = vmatprep.mubr.bf16.mxu1 %v14557_v44  ;;  %v12674_v53 = vld [vmem:[%s18115_s1 + $0xa3c] ss:$12 sps:$4 sm:$0xff]  }
  0x86   :  { %8127 = vmatprep.mubr.bf16.mxu0 %v14559_v45 }
  0x87   :  { %7934 = vmatpush1.bf16.msra.mxu1 %v12597_v47  ;;  %v12669_v47 = vld [vmem:[%s18115_s1 + $0x438] ss:$12 sps:$4 sm:$0xff]  }
  0x88   :  { %8098 = vmatpush1.bf16.msra.mxu0 %v12600_v48  ;;  %7935 = vmatprep.subr.bf16.mxu1 %v12605_v50  ;;  %v12672_v48 = vld [vmem:[%s18115_s1 + $0xa38] ss:$12 sps:$4 sm:$0xff]   ;;  %v12677_v50 = vld [vmem:[%s18115_s1 + $0x454] ss:$12 sps:$4 sm:$0xff]  }
  0x89   :  { %8099 = vmatprep.subr.bf16.mxu0 %v12608_v51  ;;  %v12680_v51 = vld [vmem:[%s18115_s1 + $0xa54] ss:$12 sps:$4 sm:$0xff]  }
  0x8b   :  { %7936 = vmatpush1.bf16.msra.mxu1 %v12603_v52  ;;  %v14722_v52 = vsub.s32 4, %v14203_v40 }
  0x8c   :  { %8100 = vmatpush1.bf16.msra.mxu0 %v12606_v54  ;;  %7937 = vmatprep.subr.bf16.mxu1 %v12611_v55  ;;  %v12675_v54 = vld [vmem:[%s18115_s1 + $0x450] ss:$12 sps:$4 sm:$0xff]  }
  0x8d   :  { %8101 = vmatprep.subr.bf16.mxu0 %v12614_v57  ;;  %v12678_v55 = vld [vmem:[%s18115_s1 + $0xa50] ss:$12 sps:$4 sm:$0xff]   ;;  %v12683_v57 = vld [vmem:[%s18115_s1 + $0x46c] ss:$12 sps:$4 sm:$0xff]  }
  0x8f   :  { %7938 = vmatpush1.bf16.msra.mxu1 %v12609_v59  ;;  %v12686_v59 = vld [vmem:[%s18115_s1 + $0xa6c] ss:$12 sps:$4 sm:$0xff]  }
  0x90   :  { %8102 = vmatpush1.bf16.msra.mxu0 %v12612_v60  ;;  %7939 = vmatprep.subr.bf16.mxu1 %v12617_v61  ;;  %v14737_v60 = vsub.s32 7, %v14203_v40  ;;  %v14742_v61 = vld [vmem:[%s18114_s0] sm:$0xff] }
  0x91   :  { %8103 = vmatprep.subr.bf16.mxu0 %v12620_v62  ;;  %v65_v62 = vrot.slane %v14742_v61, %v14722_v52 }
  0x93   :  { %7940 = vmatpush1.bf16.msra.mxu1 %v12615_v63  ;;  %v14749_v63 = vld [vmem:[%s18114_s0 + $0x8] sm:$0xff] }
  0x94   :  { %8104 = vmatpush1.bf16.msra.mxu0 %v12618_v0  ;;  %7941 = vmatprep.subr.bf16.mxu1 %v12623_v1  ;;  %v97_v0 = vrot.slane %v14749_v63, %v14722_v52  ;;  %v12681_v1 = vld [vmem:[%s18115_s1 + $0x468] ss:$12 sps:$4 sm:$0xff]  }
  0x95   :  { %8105 = vmatprep.subr.bf16.mxu0 %v12626_v2  ;;  %v12684_v2 = vld [vmem:[%s18115_s1 + $0xa68] ss:$12 sps:$4 sm:$0xff]  }
  0x97   :  { %7942 = vmatpush1.bf16.msra.mxu1 %v12621_v4  ;;  %v12689_v4 = vld [vmem:[%s18115_s1 + $0x484] ss:$12 sps:$4 sm:$0xff]  }
  0x98   :  { %8106 = vmatpush1.bf16.msra.mxu0 %v12624_v5  ;;  %7943 = vmatprep.subr.bf16.mxu1 %v12629_v6  ;;  %v12692_v5 = vld [vmem:[%s18115_s1 + $0xa84] ss:$12 sps:$4 sm:$0xff]   ;;  %v77_v6 = vrot.slane %v14742_v61, %v14737_v60 }
  0x99   :  { %8107 = vmatprep.subr.bf16.mxu0 %v12632_v7  ;;  %v109_v7 = vrot.slane %v14749_v63, %v14737_v60 }
  0x9b   :  { %7944 = vmatpush1.bf16.msra.mxu1 %v12627_v9  ;;  %v12687_v9 = vld [vmem:[%s18115_s1 + $0x480] ss:$12 sps:$4 sm:$0xff]  }
  0x9c   :  { %8108 = vmatpush1.bf16.msra.mxu0 %v12630_v10  ;;  %7945 = vmatprep.subr.bf16.mxu1 %v12635_v11  ;;  %v14772_v10 = vpack.c.bf16 %v65_v62, %v65_v62  ;;  %v14774_v11 = vpack.c.bf16 %v97_v0, %v97_v0  ;;  %v12735_v62 = vld [vmem:[%s18115_s1 + $0x540] ss:$12 sps:$4 sm:$0xff]  }
  0x9d   :  { %8109 = vmatprep.subr.bf16.mxu0 %v12638_v12  ;;  %v12690_v12 = vld [vmem:[%s18115_s1 + $0xa80] ss:$12 sps:$4 sm:$0xff]  }
  0x9e   :  { %v12738_v0 = vld [vmem:[%s18115_s1 + $0xb40] ss:$12 sps:$4 sm:$0xff]  }
  0x9f   :  { %7946 = vmatpush1.bf16.msra.mxu1 %v12633_v13  ;;  %v12695_v13 = vld [vmem:[%s18115_s1 + $0x49c] ss:$12 sps:$4 sm:$0xff]  }
  0xa0   :  { %8110 = vmatpush1.bf16.msra.mxu0 %v12636_v14  ;;  %7947 = vmatprep.subr.bf16.mxu1 %v12641_v15  ;;  %v12698_v14 = vld [vmem:[%s18115_s1 + $0xa9c] ss:$12 sps:$4 sm:$0xff]   ;;  %v12693_v15 = vld [vmem:[%s18115_s1 + $0x498] ss:$12 sps:$4 sm:$0xff]  }
  0xa1   :  { %8111 = vmatprep.subr.bf16.mxu0 %v12644_v16  ;;  %v14788_v16 = vpack.c.bf16 %v77_v6, %v77_v6  ;;  %v12749_v6 = vld [vmem:[%s18115_s1 + $0x574] ss:$12 sps:$4 sm:$0xff]  }
  0xa3   :  { %7948 = vmatpush1.bf16.msra.mxu1 %v12639_v19  ;;  %v14790_v19 = vpack.c.bf16 %v109_v7, %v109_v7  ;;  %v12752_v7 = vld [vmem:[%s18115_s1 + $0xb74] ss:$12 sps:$4 sm:$0xff]  }
  0xa4   :  { %8112 = vmatpush1.bf16.msra.mxu0 %v12642_v20  ;;  %7949 = vmatprep.subr.bf16.mxu1 %v12647_v21  ;;  %v12696_v20 = vld [vmem:[%s18115_s1 + $0xa98] ss:$12 sps:$4 sm:$0xff]   ;;  %v12701_v21 = vld [vmem:[%s18115_s1 + $0x4b4] ss:$12 sps:$4 sm:$0xff]  }
  0xa5   :  { %8113 = vmatprep.subr.bf16.mxu0 %v12650_v22  ;;  %v12704_v22 = vld [vmem:[%s18115_s1 + $0xab4] ss:$12 sps:$4 sm:$0xff]  }
  0xa7   :  { %7950 = vmatpush1.bf16.msra.mxu1 %v12645_v26  ;;  %v12699_v26 = vld [vmem:[%s18115_s1 + $0x4b0] ss:$12 sps:$4 sm:$0xff]  }
  0xa8   :  { %8114 = vmatpush1.bf16.msra.mxu0 %v12648_v27  ;;  %7951 = vmatprep.subr.bf16.mxu1 %v12653_v28  ;;  %v12702_v27 = vld [vmem:[%s18115_s1 + $0xab0] ss:$12 sps:$4 sm:$0xff]   ;;  %v12707_v28 = vld [vmem:[%s18115_s1 + $0x4cc] ss:$12 sps:$4 sm:$0xff]  }
  0xa9   :  { %8115 = vmatprep.subr.bf16.mxu0 %v12656_v29  ;;  %v12710_v29 = vld [vmem:[%s18115_s1 + $0xacc] ss:$12 sps:$4 sm:$0xff]  }
  0xab   :  { %7952 = vmatpush1.bf16.msra.mxu1 %v12651_v31  ;;  %v12705_v31 = vld [vmem:[%s18115_s1 + $0x4c8] ss:$12 sps:$4 sm:$0xff]  }
  0xac   :  { %8116 = vmatpush1.bf16.msra.mxu0 %v12654_v32  ;;  %7953 = vmatprep.subr.bf16.mxu1 %v12659_v33  ;;  %v12708_v32 = vld [vmem:[%s18115_s1 + $0xac8] ss:$12 sps:$4 sm:$0xff]   ;;  %v12713_v33 = vld [vmem:[%s18115_s1 + $0x4e4] ss:$12 sps:$4 sm:$0xff]  }
  0xad   :  { %8117 = vmatprep.subr.bf16.mxu0 %v12662_v34  ;;  %v12716_v34 = vld [vmem:[%s18115_s1 + $0xae4] ss:$12 sps:$4 sm:$0xff]  }
  0xaf   :  { %7954 = vmatpush1.bf16.msra.mxu1 %v12657_v35  ;;  %v12711_v35 = vld [vmem:[%s18115_s1 + $0x4e0] ss:$12 sps:$4 sm:$0xff]  }
  0xb0   :  { %8118 = vmatpush1.bf16.msra.mxu0 %v12660_v36  ;;  %7955 = vmatprep.subr.bf16.mxu1 %v12665_v37  ;;  %v12714_v36 = vld [vmem:[%s18115_s1 + $0xae0] ss:$12 sps:$4 sm:$0xff]   ;;  %v12719_v37 = vld [vmem:[%s18115_s1 + $0x4fc] ss:$12 sps:$4 sm:$0xff]  }
  0xb1   :  { %8119 = vmatprep.subr.bf16.mxu0 %v12668_v38  ;;  %v12722_v38 = vld [vmem:[%s18115_s1 + $0xafc] ss:$12 sps:$4 sm:$0xff]  }
  0xb3   :  { %7956 = vmatpush1.bf16.msra.mxu1 %v12663_v42  ;;  %v12717_v42 = vld [vmem:[%s18115_s1 + $0x4f8] ss:$12 sps:$4 sm:$0xff]  }
  0xb4   :  { %8120 = vmatpush1.bf16.msra.mxu0 %v12666_v43  ;;  %7957 = vmatprep.subr.bf16.mxu1 %v12671_v49  ;;  %v12720_v43 = vld [vmem:[%s18115_s1 + $0xaf8] ss:$12 sps:$4 sm:$0xff]   ;;  %v12725_v49 = vld [vmem:[%s18115_s1 + $0x514] ss:$12 sps:$4 sm:$0xff]  }
  0xb5   :  { %8121 = vmatprep.subr.bf16.mxu0 %v12674_v53  ;;  %v12728_v53 = vld [vmem:[%s18115_s1 + $0xb14] ss:$12 sps:$4 sm:$0xff]  }
  0xb7   :  { %7958 = vmatpush1.bf16.msra.mxu1 %v12669_v47  ;;  %v12723_v47 = vld [vmem:[%s18115_s1 + $0x510] ss:$12 sps:$4 sm:$0xff]  }
  0xb8   :  { %8122 = vmatpush1.bf16.msra.mxu0 %v12672_v48  ;;  %7959 = vmatprep.subr.bf16.mxu1 %v12677_v50  ;;  %v12726_v48 = vld [vmem:[%s18115_s1 + $0xb10] ss:$12 sps:$4 sm:$0xff]   ;;  %v12731_v50 = vld [vmem:[%s18115_s1 + $0x52c] ss:$12 sps:$4 sm:$0xff]  }
  0xb9   :  { %8123 = vmatprep.subr.bf16.mxu0 %v12680_v51  ;;  %v12734_v51 = vld [vmem:[%s18115_s1 + $0xb2c] ss:$12 sps:$4 sm:$0xff]  }
  0xbb   :  { %7960 = vmatpush1.bf16.msra.mxu1 %v12675_v54  ;;  %v12729_v54 = vld [vmem:[%s18115_s1 + $0x528] ss:$12 sps:$4 sm:$0xff]  }
  0xbc   :  { %8124 = vmatpush1.bf16.msra.mxu0 %v12678_v55  ;;  %7961 = vmatprep.subr.bf16.mxu1 %v12683_v57  ;;  %v12732_v55 = vld [vmem:[%s18115_s1 + $0xb28] ss:$12 sps:$4 sm:$0xff]   ;;  %v12737_v57 = vld [vmem:[%s18115_s1 + $0x544] ss:$12 sps:$4 sm:$0xff]  }
  0xbd   :  { %8125 = vmatprep.subr.bf16.mxu0 %v12686_v59  ;;  %v12740_v59 = vld [vmem:[%s18115_s1 + $0xb44] ss:$12 sps:$4 sm:$0xff]  }
  0xbf   :  { %7962 = vmatpush1.bf16.msra.mxu1 %v12681_v1  ;;  %v12743_v1 = vld [vmem:[%s18115_s1 + $0x55c] ss:$12 sps:$4 sm:$0xff]  }
  0xc0   :  { %8126 = vmatpush1.bf16.msra.mxu0 %v12684_v2  ;;  %7972 = vmatprep.subr.bf16.mxu1 %v12689_v4  ;;  %v12746_v2 = vld [vmem:[%s18115_s1 + $0xb5c] ss:$12 sps:$4 sm:$0xff]   ;;  %v12741_v4 = vld [vmem:[%s18115_s1 + $0x558] ss:$12 sps:$4 sm:$0xff]  }
  0xc1   :  { %8136 = vmatprep.subr.bf16.mxu0 %v12692_v5  ;;  %v12744_v5 = vld [vmem:[%s18115_s1 + $0xb58] ss:$12 sps:$4 sm:$0xff]  }
  0xc2   :  { %7964 = vmatmul.mubr.bf16.vlgmr.msra.gmra.mrb[0].mxu1 %v14772_v10 }
  0xc3   :  { %8128 = vmatmul.mubr.bf16.vlgmr.msra.gmra.mrb[0].mxu0 %v14774_v11  ;;  %7973 = vmatpush1.bf16.msra.mxu1 %v12687_v9  ;;  %v12747_v9 = vld [vmem:[%s18115_s1 + $0x570] ss:$12 sps:$4 sm:$0xff]  }
  0xc4   :  { %8137 = vmatpush1.bf16.msra.mxu0 %v12690_v12  ;;  %7974 = vmatprep.subr.bf16.mxu1 %v12695_v13  ;;  %v12750_v12 = vld [vmem:[%s18115_s1 + $0xb70] ss:$12 sps:$4 sm:$0xff]   ;;  %v12755_v13 = vld [vmem:[%s18115_s1 + $0x58c] ss:$12 sps:$4 sm:$0xff]  }
  0xc5   :  { %8138 = vmatprep.subr.bf16.mxu0 %v12698_v14  ;;  %8004 = vmatprep.mubr.bf16.mxu1 %v14788_v16  ;;  %v12758_v14 = vld [vmem:[%s18115_s1 + $0xb8c] ss:$12 sps:$4 sm:$0xff]  }
  0xc6   :  { %8168 = vmatprep.mubr.bf16.mxu0 %v14790_v19 }
  0xc7   :  { %7975 = vmatpush1.bf16.msra.mxu1 %v12693_v15  ;;  %v12753_v15 = vld [vmem:[%s18115_s1 + $0x588] ss:$12 sps:$4 sm:$0xff]  }
  0xc8   :  { %8139 = vmatpush1.bf16.msra.mxu0 %v12696_v20  ;;  %7976 = vmatprep.subr.bf16.mxu1 %v12701_v21  ;;  %v12756_v20 = vld [vmem:[%s18115_s1 + $0xb88] ss:$12 sps:$4 sm:$0xff]   ;;  %v12761_v21 = vld [vmem:[%s18115_s1 + $0x5a4] ss:$12 sps:$4 sm:$0xff]  }
  0xc9   :  { %8140 = vmatprep.subr.bf16.mxu0 %v12704_v22  ;;  %v12764_v22 = vld [vmem:[%s18115_s1 + $0xba4] ss:$12 sps:$4 sm:$0xff]  }
  0xcb   :  { %7977 = vmatpush1.bf16.msra.mxu1 %v12699_v26  ;;  %v12759_v26 = vld [vmem:[%s18115_s1 + $0x5a0] ss:$12 sps:$4 sm:$0xff]  }
  0xcc   :  { %8141 = vmatpush1.bf16.msra.mxu0 %v12702_v27  ;;  %7978 = vmatprep.subr.bf16.mxu1 %v12707_v28  ;;  %v12762_v27 = vld [vmem:[%s18115_s1 + $0xba0] ss:$12 sps:$4 sm:$0xff]   ;;  %v12767_v28 = vld [vmem:[%s18115_s1 + $0x5bc] ss:$12 sps:$4 sm:$0xff]  }
  0xcd   :  { %8142 = vmatprep.subr.bf16.mxu0 %v12710_v29  ;;  %v12770_v29 = vld [vmem:[%s18115_s1 + $0xbbc] ss:$12 sps:$4 sm:$0xff]  }
  0xcf   :  { %7979 = vmatpush1.bf16.msra.mxu1 %v12705_v31  ;;  %v12765_v31 = vld [vmem:[%s18115_s1 + $0x5b8] ss:$12 sps:$4 sm:$0xff]  }
  0xd0   :  { %8143 = vmatpush1.bf16.msra.mxu0 %v12708_v32  ;;  %7980 = vmatprep.subr.bf16.mxu1 %v12713_v33  ;;  %v12768_v32 = vld [vmem:[%s18115_s1 + $0xbb8] ss:$12 sps:$4 sm:$0xff]   ;;  %v12773_v33 = vld [vmem:[%s18115_s1 + $0x5d4] ss:$12 sps:$4 sm:$0xff]  }
  0xd1   :  { %8144 = vmatprep.subr.bf16.mxu0 %v12716_v34  ;;  %v12776_v34 = vld [vmem:[%s18115_s1 + $0xbd4] ss:$12 sps:$4 sm:$0xff]  }
  0xd3   :  { %7981 = vmatpush1.bf16.msra.mxu1 %v12711_v35  ;;  %v12771_v35 = vld [vmem:[%s18115_s1 + $0x5d0] ss:$12 sps:$4 sm:$0xff]  }
  0xd4   :  { %8145 = vmatpush1.bf16.msra.mxu0 %v12714_v36  ;;  %7982 = vmatprep.subr.bf16.mxu1 %v12719_v37  ;;  %v14953_v36 = vsub.s32 6, %v14203_v40  ;;  %v12774_v37 = vld [vmem:[%s18115_s1 + $0xbd0] ss:$12 sps:$4 sm:$0xff]   ;;  %v12777_v40 = vld [vmem:[%s18115_s1 + $0x5e8] ss:$12 sps:$4 sm:$0xff]  }
  0xd5   :  { %8146 = vmatprep.subr.bf16.mxu0 %v12722_v38  ;;  %v12779_v38 = vld [vmem:[%s18115_s1 + $0x5ec] ss:$12 sps:$4 sm:$0xff]  }
  0xd7   :  { %7983 = vmatpush1.bf16.msra.mxu1 %v12717_v42  ;;  %v12782_v42 = vld [vmem:[%s18115_s1 + $0xbec] ss:$12 sps:$4 sm:$0xff]  }
  0xd8   :  { %8147 = vmatpush1.bf16.msra.mxu0 %v12720_v43  ;;  %7984 = vmatprep.subr.bf16.mxu1 %v12725_v49  ;;  %v12780_v43 = vld [vmem:[%s18115_s1 + $0xbe8] ss:$12 sps:$4 sm:$0xff]   ;;  %v73_v49 = vrot.slane %v14742_v61, %v14953_v36  ;;  %v12788_v61 = vld [vmem:[%s18115_s1 + $0x2284] ss:$12 sps:$4 sm:$0xff]  }
  0xd9   :  { %8148 = vmatprep.subr.bf16.mxu0 %v12728_v53  ;;  %v105_v53 = vrot.slane %v14749_v63, %v14953_v36  ;;  %v12783_v63 = vld [vmem:[%s18115_s1 + $0xc00] ss:$12 sps:$4 sm:$0xff]  }
  0xdb   :  { %7985 = vmatpush1.bf16.msra.mxu1 %v12723_v47  ;;  %v14977_v47 = vld [vmem:[%s18114_s0 + $0x10] sm:$0xff] }
  0xdc   :  { %8149 = vmatpush1.bf16.msra.mxu0 %v12726_v48  ;;  %7986 = vmatprep.subr.bf16.mxu1 %v12731_v50  ;;  %v12785_v48 = vld [vmem:[%s18115_s1 + $0xc04] ss:$12 sps:$4 sm:$0xff]   ;;  %v117_v50 = vrot.slane %v14977_v47, %v14221_v46 }
  0xdd   :  { %8150 = vmatprep.subr.bf16.mxu0 %v12734_v51  ;;  %v12786_v51 = vld [vmem:[%s18115_s1 + $0x2280] ss:$12 sps:$4 sm:$0xff]  }
  0xdf   :  { %7987 = vmatpush1.bf16.msra.mxu1 %v12729_v54  ;;  %v14993_v54 = vpack.c.bf16 %v73_v49, %v73_v49  ;;  %v12829_v49 = vld [vmem:[%s18115_s1 + $0x8] ss:$12 sps:$4 sm:$0xff]  }
  0xe0   :  { %8151 = vmatpush1.bf16.msra.mxu0 %v12732_v55  ;;  %7988 = vmatprep.subr.bf16.mxu1 %v12737_v57  ;;  %v14995_v55 = vpack.c.bf16 %v105_v53, %v105_v53  ;;  %v12791_v57 = vld [vmem:[%s18115_s1 + $0xc1c] ss:$12 sps:$4 sm:$0xff]   ;;  %v12832_v53 = vld [vmem:[%s18115_s1 + $0xcc4] ss:$12 sps:$4 sm:$0xff]  }
  0xe1   :  { %8152 = vmatprep.subr.bf16.mxu0 %v12740_v59  ;;  %v12794_v59 = vld [vmem:[%s18115_s1 + $0x229c] ss:$12 sps:$4 sm:$0xff]  }
  0xe3   :  { %7989 = vmatpush1.bf16.msra.mxu1 %v12735_v62  ;;  %v15003_v62 = vpack.c.bf16 %v117_v50, %v117_v50  ;;  %v12837_v50 = vld [vmem:[%s18115_s1 + $0xcdc] ss:$12 sps:$4 sm:$0xff]  }
  0xe4   :  { %8153 = vmatpush1.bf16.msra.mxu0 %v12738_v0  ;;  %7990 = vmatprep.subr.bf16.mxu1 %v12743_v1  ;;  %v12789_v0 = vld [vmem:[%s18115_s1 + $0xc18] ss:$12 sps:$4 sm:$0xff]  }
  0xe5   :  { %8154 = vmatprep.subr.bf16.mxu0 %v12746_v2  ;;  %v12792_v1 = vld [vmem:[%s18115_s1 + $0x2298] ss:$12 sps:$4 sm:$0xff]   ;;  %v12797_v2 = vld [vmem:[%s18115_s1 + $0xc34] ss:$12 sps:$4 sm:$0xff]  }
  0xe7   :  { %7991 = vmatpush1.bf16.msra.mxu1 %v12741_v4  ;;  %v12800_v4 = vld [vmem:[%s18115_s1 + $0x22b4] ss:$12 sps:$4 sm:$0xff]  }
  0xe8   :  { %8155 = vmatpush1.bf16.msra.mxu0 %v12744_v5  ;;  %7992 = vmatprep.subr.bf16.mxu1 %v12749_v6  ;;  %v12795_v5 = vld [vmem:[%s18115_s1 + $0xc30] ss:$12 sps:$4 sm:$0xff]   ;;  %v14029_v6 = vmov 0  }
  0xe9   :  { %8156 = vmatprep.subr.bf16.mxu0 %v12752_v7  ;;  %v12798_v7 = vld [vmem:[%s18115_s1 + $0x22b0] ss:$12 sps:$4 sm:$0xff]  }
  0xeb   :  { %7993 = vmatpush1.bf16.msra.mxu1 %v12747_v9  ;;  %v12803_v9 = vld [vmem:[%s18115_s1 + $0xc4c] ss:$12 sps:$4 sm:$0xff]  }
  0xec   :  { %8157 = vmatpush1.bf16.msra.mxu0 %v12750_v12  ;;  %7994 = vmatprep.subr.bf16.mxu1 %v12755_v13  ;;  %v12806_v12 = vld [vmem:[%s18115_s1 + $0x22cc] ss:$12 sps:$4 sm:$0xff]   ;;  %v12801_v13 = vld [vmem:[%s18115_s1 + $0xc48] ss:$12 sps:$4 sm:$0xff]  }
  0xed   :  { %8158 = vmatprep.subr.bf16.mxu0 %v12758_v14  ;;  %v12804_v14 = vld [vmem:[%s18115_s1 + $0x22c8] ss:$12 sps:$4 sm:$0xff]  }
  0xef   :  { %7995 = vmatpush1.bf16.msra.mxu1 %v12753_v15  ;;  %v12809_v15 = vld [vmem:[%s18115_s1 + $0xc64] ss:$12 sps:$4 sm:$0xff]  }
  0xf0   :  { %8159 = vmatpush1.bf16.msra.mxu0 %v12756_v20  ;;  %7996 = vmatprep.subr.bf16.mxu1 %v12761_v21  ;;  %v12812_v20 = vld [vmem:[%s18115_s1 + $0x22e4] ss:$12 sps:$4 sm:$0xff]   ;;  %v12807_v21 = vld [vmem:[%s18115_s1 + $0xc60] ss:$12 sps:$4 sm:$0xff]  }
  0xf1   :  { %8160 = vmatprep.subr.bf16.mxu0 %v12764_v22  ;;  %v12810_v22 = vld [vmem:[%s18115_s1 + $0x22e0] ss:$12 sps:$4 sm:$0xff]  }
  0xf3   :  { %7997 = vmatpush1.bf16.msra.mxu1 %v12759_v26  ;;  %v12815_v26 = vld [vmem:[%s18115_s1 + $0xc7c] ss:$12 sps:$4 sm:$0xff]  }
  0xf4   :  { %8161 = vmatpush1.bf16.msra.mxu0 %v12762_v27  ;;  %7998 = vmatprep.subr.bf16.mxu1 %v12767_v28  ;;  %v12818_v27 = vld [vmem:[%s18115_s1 + $0x22fc] ss:$12 sps:$4 sm:$0xff]   ;;  %v12813_v28 = vld [vmem:[%s18115_s1 + $0xc78] ss:$12 sps:$4 sm:$0xff]  }
  0xf5   :  { %8162 = vmatprep.subr.bf16.mxu0 %v12770_v29  ;;  %v12816_v29 = vld [vmem:[%s18115_s1 + $0x22f8] ss:$12 sps:$4 sm:$0xff]  }
  0xf7   :  { %7999 = vmatpush1.bf16.msra.mxu1 %v12765_v31  ;;  %v12821_v31 = vld [vmem:[%s18115_s1 + $0xc94] ss:$12 sps:$4 sm:$0xff]  }
  0xf8   :  { %8163 = vmatpush1.bf16.msra.mxu0 %v12768_v32  ;;  %8000 = vmatprep.subr.bf16.mxu1 %v12773_v33  ;;  %v39_v32 = vld [vmem:[%s18114_s0 + $0x28] sm:$0x7f]  ;;  %v12824_v33 = vld [vmem:[%s18115_s1 + $0x2314] ss:$12 sps:$4 sm:$0xff]  }
  0xf9   :  { %8164 = vmatprep.subr.bf16.mxu0 %v12776_v34  ;;  %v12819_v34 = vld [vmem:[%s18115_s1 + $0xc90] ss:$12 sps:$4 sm:$0xff]  }
  0xfb   :  { %8001 = vmatpush1.bf16.msra.mxu1 %v12771_v35  ;;  %v233_v35 = vrot.slane %v39_v32, %v14953_v36  ;;  %v12867_v32 = vld [vmem:[%s18115_s1 + $0xd6c] ss:$12 sps:$4 sm:$0xff]  }
  0xfc   :  { %8165 = vmatpush1.bf16.msra.mxu0 %v12774_v37  ;;  %8002 = vmatprep.subr.bf16.mxu1 %v12779_v38  ;;  %v12822_v37 = vld [vmem:[%s18115_s1 + $0x2310] ss:$12 sps:$4 sm:$0xff]   ;;  %v12827_v38 = vld [vmem:[%s18115_s1 + $0xcac] ss:$12 sps:$4 sm:$0xff]  }
  0xfd   :  { %8166 = vmatprep.subr.bf16.mxu0 %v12782_v42  ;;  %v12828_v42 = vld [vmem:[%s18115_s1 + $0xc8] ss:$12 sps:$4 sm:$0xff]  }
  0xff   :  { %8003 = vmatpush1.bf16.msra.mxu1 %v12777_v40  ;;  %v12825_v40 = vld [vmem:[%s18115_s1 + $0xca8] ss:$12 sps:$4 sm:$0xff]  }
 0x100   :  { %8167 = vmatpush1.bf16.msra.mxu0 %v12780_v43  ;;  %8792 = vmatprep.subr.bf16.mxu1 %v12788_v61  ;;  %v15088_v43 = vpack.c.bf16 %v233_v35, %v233_v35  ;;  %v12830_v61 = vld [vmem:[%s18115_s1 + $0xcc0] ss:$12 sps:$4 sm:$0xff]   ;;  %v12869_v35 = vld [vmem:[%s18115_s1 + $0x188] ss:$12 sps:$4 sm:$0xff]  }
 0x101   :  { %8177 = vmatprep.subr.bf16.mxu0 %v12785_v48  ;;  %v12833_v48 = vld [vmem:[%s18115_s1 + $0xe0] ss:$12 sps:$4 sm:$0xff]  }
 0x102   :  { %8005 = vmatmul.mubr.bf16.vlgmr.msra.gmra.mrb[0].mxu1 %v14993_v54 }
 0x103   :  { %8169 = vmatmul.mubr.bf16.vlgmr.msra.gmra.mrb[0].mxu0 %v14995_v55  ;;  %8793 = vmatpush1.bf16.msra.mxu1 %v12786_v51  ;;  %v12838_v51 = vld [vmem:[%s18115_s1 + $0xf8] ss:$12 sps:$4 sm:$0xff]  }
 0x104   :  { %8178 = vmatpush1.bf16.msra.mxu0 %v12783_v63  ;;  %8794 = vmatprep.subr.bf16.mxu1 %v12794_v59  ;;  %v12834_v63 = vld [vmem:[%s18115_s1 + $0x20] ss:$12 sps:$4 sm:$0xff]   ;;  %v12839_v59 = vld [vmem:[%s18115_s1 + $0x38] ss:$12 sps:$4 sm:$0xff]  }
 0x105   :  { %8179 = vmatprep.subr.bf16.mxu0 %v12791_v57  ;;  %8824 = vmatprep.mubr.bf16.mxu1 %v14029_v6  ;;  %v12835_v57 = vld [vmem:[%s18115_s1 + $0xcd8] ss:$12 sps:$4 sm:$0xff]  }
 0x106   :  { %8209 = vmatprep.mubr.bf16.mxu0 %v15003_v62 }
 0x107   :  { %8795 = vmatpush1.bf16.msra.mxu1 %v12792_v1  ;;  %v12840_v1 = vld [vmem:[%s18115_s1 + $0xcf0] ss:$12 sps:$4 sm:$0xff]  }
 0x108   :  { %8180 = vmatpush1.bf16.msra.mxu0 %v12789_v0  ;;  %8796 = vmatprep.subr.bf16.mxu1 %v12800_v4  ;;  %v12842_v0 = vld [vmem:[%s18115_s1 + $0xcf4] ss:$12 sps:$4 sm:$0xff]   ;;  %v12847_v4 = vld [vmem:[%s18115_s1 + $0xd0c] ss:$12 sps:$4 sm:$0xff]  }
 0x109   :  { %8181 = vmatprep.subr.bf16.mxu0 %v12797_v2  ;;  %v12844_v2 = vld [vmem:[%s18115_s1 + $0x50] ss:$12 sps:$4 sm:$0xff]  }
 0x10b   :  { %8797 = vmatpush1.bf16.msra.mxu1 %v12798_v7  ;;  %v12845_v7 = vld [vmem:[%s18115_s1 + $0xd08] ss:$12 sps:$4 sm:$0xff]  }
 0x10c   :  { %8182 = vmatpush1.bf16.msra.mxu0 %v12795_v5  ;;  %8798 = vmatprep.subr.bf16.mxu1 %v12806_v12  ;;  %v12848_v5 = vld [vmem:[%s18115_s1 + $0x128] ss:$12 sps:$4 sm:$0xff]   ;;  %v12852_v12 = vld [vmem:[%s18115_s1 + $0xd24] ss:$12 sps:$4 sm:$0xff]  }
 0x10d   :  { %8183 = vmatprep.subr.bf16.mxu0 %v12803_v9  ;;  %v12849_v9 = vld [vmem:[%s18115_s1 + $0x68] ss:$12 sps:$4 sm:$0xff]  }
 0x10f   :  { %8799 = vmatpush1.bf16.msra.mxu1 %v12804_v14  ;;  %v12850_v14 = vld [vmem:[%s18115_s1 + $0xd20] ss:$12 sps:$4 sm:$0xff]  }
 0x110   :  { %8184 = vmatpush1.bf16.msra.mxu0 %v12801_v13  ;;  %8800 = vmatprep.subr.bf16.mxu1 %v12812_v20  ;;  %v12853_v13 = vld [vmem:[%s18115_s1 + $0x140] ss:$12 sps:$4 sm:$0xff]   ;;  %v12857_v20 = vld [vmem:[%s18115_s1 + $0xd3c] ss:$12 sps:$4 sm:$0xff]  }
 0x111   :  { %8185 = vmatprep.subr.bf16.mxu0 %v12809_v15  ;;  %v12854_v15 = vld [vmem:[%s18115_s1 + $0x80] ss:$12 sps:$4 sm:$0xff]  }
 0x113   :  { %8801 = vmatpush1.bf16.msra.mxu1 %v12810_v22  ;;  %v12855_v22 = vld [vmem:[%s18115_s1 + $0xd38] ss:$12 sps:$4 sm:$0xff]  }
 0x114   :  { %8186 = vmatpush1.bf16.msra.mxu0 %v12807_v21  ;;  %8802 = vmatprep.subr.bf16.mxu1 %v12818_v27  ;;  %v12858_v21 = vld [vmem:[%s18115_s1 + $0x158] ss:$12 sps:$4 sm:$0xff]   ;;  %v12862_v27 = vld [vmem:[%s18115_s1 + $0xd54] ss:$12 sps:$4 sm:$0xff]  }
 0x115   :  { %8187 = vmatprep.subr.bf16.mxu0 %v12815_v26  ;;  %v12859_v26 = vld [vmem:[%s18115_s1 + $0x98] ss:$12 sps:$4 sm:$0xff]  }
 0x117   :  { %8803 = vmatpush1.bf16.msra.mxu1 %v12816_v29  ;;  %v12860_v29 = vld [vmem:[%s18115_s1 + $0xd50] ss:$12 sps:$4 sm:$0xff]  }
 0x118   :  { %8188 = vmatpush1.bf16.msra.mxu0 %v12813_v28  ;;  %8804 = vmatprep.subr.bf16.mxu1 %v12824_v33  ;;  %v12863_v28 = vld [vmem:[%s18115_s1 + $0x170] ss:$12 sps:$4 sm:$0xff]   ;;  %v12868_v33 = vld [vmem:[%s18115_s1 + $0x248] ss:$12 sps:$4 sm:$0xff]  }
 0x119   :  { %8189 = vmatprep.subr.bf16.mxu0 %v12821_v31  ;;  %v12864_v31 = vld [vmem:[%s18115_s1 + $0xb0] ss:$12 sps:$4 sm:$0xff]  }
 0x11b   :  { %8805 = vmatpush1.bf16.msra.mxu1 %v12822_v37  ;;  %v113_v37 = vrot.slane %v14977_v47, %v14286_v3 }
 0x11c   :  { %8190 = vmatpush1.bf16.msra.mxu0 %v12819_v34  ;;  %11692 = vmatprep.subr.bf16.mxu1 %v12828_v42  ;;  %v12865_v34 = vld [vmem:[%s18115_s1 + $0xd68] ss:$12 sps:$4 sm:$0xff]   ;;  %v12873_v42 = vld [vmem:[%s18115_s1 + $0x260] ss:$12 sps:$4 sm:$0xff]  }
 0x11d   :  { %8191 = vmatprep.subr.bf16.mxu0 %v12827_v38  ;;  %v12872_v38 = vld [vmem:[%s18115_s1 + $0xd84] ss:$12 sps:$4 sm:$0xff]  }
 0x11e   :  { %11634 = vmatmul.mubr.msk.bf16.vlgmr.msra.gmra.mrb[4].mxu1 %vm7845_vm0, %v15088_v43 }
 0x11f   :  { %11693 = vmatpush3.bf16.msra.mxu1 %v12829_v49  ;;  %8865 = vmatprep.mubr.bf16.mxu1 %v14253_v56  ;;  %v12843_v56 = vld [vmem:[%s18115_s1 + $0x110] ss:$12 sps:$4 sm:$0xff]   ;;  %v12870_v49 = vld [vmem:[%s18115_s1 + $0xd80] ss:$12 sps:$4 sm:$0xff]  }
 0x120   :  { %8192 = vmatpush1.bf16.msra.mxu0 %v12825_v40  ;;  %11694 = vmatprep.subr.bf16.mxu1 %v12833_v48  ;;  %v125_v40 = vrot.slane %v14977_v47, %v14301_v8  ;;  %v12874_v48 = vld [vmem:[%s18115_s1 + $0x1a0] ss:$12 sps:$4 sm:$0xff]   ;;  %v12877_v47 = vld [vmem:[%s18115_s1 + $0xd9c] ss:$12 sps:$4 sm:$0xff]  }
 0x121   :  { %8193 = vmatprep.subr.bf16.mxu0 %v12832_v53  ;;  %v15206_v53 = vpack.c.bf16 %v113_v37, %v113_v37  ;;  %v12917_v37 = vld [vmem:[%s18115_s1 + $0xe5c] ss:$12 sps:$4 sm:$0xff]  }
 0x123   :  { %11695 = vmatpush3.bf16.msra.mxu1 %v12834_v63  ;;  %v15221_v63 = vpack.c.bf16 %v125_v40, %v125_v40  ;;  %v12922_v40 = vld [vmem:[%s18115_s1 + $0xe74] ss:$12 sps:$4 sm:$0xff]  }
 0x124   :  { %8194 = vmatpush1.bf16.msra.mxu0 %v12830_v61  ;;  %11696 = vmatprep.subr.bf16.mxu1 %v12838_v51  ;;  %v12875_v61 = vld [vmem:[%s18115_s1 + $0xd98] ss:$12 sps:$4 sm:$0xff]   ;;  %v12882_v51 = vld [vmem:[%s18115_s1 + $0xdb4] ss:$12 sps:$4 sm:$0xff]  }
 0x125   :  { %8195 = vmatprep.subr.bf16.mxu0 %v12837_v50  ;;  %v12879_v50 = vld [vmem:[%s18115_s1 + $0x1b8] ss:$12 sps:$4 sm:$0xff]  }
 0x127   :  { %11697 = vmatpush3.bf16.msra.mxu1 %v12839_v59  ;;  %v12884_v59 = vld [vmem:[%s18115_s1 + $0x1d0] ss:$12 sps:$4 sm:$0xff]  }
 0x128   :  { %8196 = vmatpush1.bf16.msra.mxu0 %v12835_v57  ;;  %11698 = vmatprep.subr.bf16.mxu1 %v12843_v56  ;;  %v12880_v57 = vld [vmem:[%s18115_s1 + $0xdb0] ss:$12 sps:$4 sm:$0xff]   ;;  %v12888_v56 = vld [vmem:[%s18115_s1 + $0x2a8] ss:$12 sps:$4 sm:$0xff]  }
 0x129   :  { %8197 = vmatprep.subr.bf16.mxu0 %v12842_v0  ;;  %v12887_v0 = vld [vmem:[%s18115_s1 + $0xdcc] ss:$12 sps:$4 sm:$0xff]  }
 0x12b   :  { %11699 = vmatpush3.bf16.msra.mxu1 %v12844_v2  ;;  %v12889_v2 = vld [vmem:[%s18115_s1 + $0x1e8] ss:$12 sps:$4 sm:$0xff]  }
 0x12c   :  { %8198 = vmatpush1.bf16.msra.mxu0 %v12840_v1  ;;  %11700 = vmatprep.subr.bf16.mxu1 %v12848_v5  ;;  %v12885_v1 = vld [vmem:[%s18115_s1 + $0xdc8] ss:$12 sps:$4 sm:$0xff]   ;;  %v12893_v5 = vld [vmem:[%s18115_s1 + $0x2c0] ss:$12 sps:$4 sm:$0xff]  }
 0x12d   :  { %8199 = vmatprep.subr.bf16.mxu0 %v12847_v4  ;;  %v12892_v4 = vld [vmem:[%s18115_s1 + $0xde4] ss:$12 sps:$4 sm:$0xff]  }
 0x12f   :  { %11701 = vmatpush3.bf16.msra.mxu1 %v12849_v9  ;;  %v12894_v9 = vld [vmem:[%s18115_s1 + $0x200] ss:$12 sps:$4 sm:$0xff]  }
 0x130   :  { %8200 = vmatpush1.bf16.msra.mxu0 %v12845_v7  ;;  %11702 = vmatprep.subr.bf16.mxu1 %v12853_v13  ;;  %v12890_v7 = vld [vmem:[%s18115_s1 + $0xde0] ss:$12 sps:$4 sm:$0xff]   ;;  %v12898_v13 = vld [vmem:[%s18115_s1 + $0x2d8] ss:$12 sps:$4 sm:$0xff]  }
 0x131   :  { %8201 = vmatprep.subr.bf16.mxu0 %v12852_v12  ;;  %v12897_v12 = vld [vmem:[%s18115_s1 + $0xdfc] ss:$12 sps:$4 sm:$0xff]  }
 0x133   :  { %11703 = vmatpush3.bf16.msra.mxu1 %v12854_v15  ;;  %v12899_v15 = vld [vmem:[%s18115_s1 + $0x218] ss:$12 sps:$4 sm:$0xff]  }
 0x134   :  { %8202 = vmatpush1.bf16.msra.mxu0 %v12850_v14  ;;  %11704 = vmatprep.subr.bf16.mxu1 %v12858_v21  ;;  %v12895_v14 = vld [vmem:[%s18115_s1 + $0xdf8] ss:$12 sps:$4 sm:$0xff]   ;;  %v12903_v21 = vld [vmem:[%s18115_s1 + $0x2f0] ss:$12 sps:$4 sm:$0xff]  }
 0x135   :  { %8203 = vmatprep.subr.bf16.mxu0 %v12857_v20  ;;  %v12902_v20 = vld [vmem:[%s18115_s1 + $0xe14] ss:$12 sps:$4 sm:$0xff]  }
 0x137   :  { %11705 = vmatpush3.bf16.msra.mxu1 %v12859_v26  ;;  %v12904_v26 = vld [vmem:[%s18115_s1 + $0x230] ss:$12 sps:$4 sm:$0xff]  }
 0x138   :  { %8204 = vmatpush1.bf16.msra.mxu0 %v12855_v22  ;;  %11706 = vmatprep.subr.bf16.mxu1 %v12863_v28  ;;  %v12900_v22 = vld [vmem:[%s18115_s1 + $0xe10] ss:$12 sps:$4 sm:$0xff]   ;;  %v12908_v28 = vld [vmem:[%s18115_s1 + $0x3c8] ss:$12 sps:$4 sm:$0xff]  }
 0x139   :  { %8205 = vmatprep.subr.bf16.mxu0 %v12862_v27  ;;  %v12907_v27 = vld [vmem:[%s18115_s1 + $0xe2c] ss:$12 sps:$4 sm:$0xff]  }
 0x13b   :  { %11707 = vmatpush3.bf16.msra.mxu1 %v12864_v31  ;;  %v12909_v31 = vld [vmem:[%s18115_s1 + $0x308] ss:$12 sps:$4 sm:$0xff]  }
 0x13c   :  { %8206 = vmatpush1.bf16.msra.mxu0 %v12860_v29  ;;  %11714 = vmatprep.subr.bf16.mxu1 %v12868_v33  ;;  %v12905_v29 = vld [vmem:[%s18115_s1 + $0xe28] ss:$12 sps:$4 sm:$0xff]   ;;  %v12913_v33 = vld [vmem:[%s18115_s1 + $0x3e0] ss:$12 sps:$4 sm:$0xff]  }
 0x13d   :  { %8207 = vmatprep.subr.bf16.mxu0 %v12867_v32  ;;  %v12912_v32 = vld [vmem:[%s18115_s1 + $0xe44] ss:$12 sps:$4 sm:$0xff]  }
 0x13e   :  { %8866 = vmatmul.mubr.bf16.vlgmr.msra.gmra.mrb[8].mxu1 %v14323_v17  ;;  %v12878_v17 = vld [vmem:[%s18115_s1 + $0x278] ss:$12 sps:$4 sm:$0xff]  }
 0x13f   :  { %11715 = vmatpush3.bf16.msra.mxu1 %v12869_v35  ;;  %8905 = vmatprep.mubr.bf16.mxu1 %v14339_v23  ;;  %v12883_v23 = vld [vmem:[%s18115_s1 + $0x290] ss:$12 sps:$4 sm:$0xff]   ;;  %v12914_v35 = vld [vmem:[%s18115_s1 + $0x320] ss:$12 sps:$4 sm:$0xff]  }
 0x140   :  { %8208 = vmatpush1.bf16.msra.mxu0 %v12865_v34  ;;  %11716 = vmatprep.subr.bf16.mxu1 %v12873_v42  ;;  %v12910_v34 = vld [vmem:[%s18115_s1 + $0xe40] ss:$12 sps:$4 sm:$0xff]   ;;  %v12919_v42 = vld [vmem:[%s18115_s1 + $0x338] ss:$12 sps:$4 sm:$0xff]  }
 0x141   :  { %8218 = vmatprep.subr.bf16.mxu0 %v12872_v38  ;;  %v12915_v38 = vld [vmem:[%s18115_s1 + $0xe58] ss:$12 sps:$4 sm:$0xff]  }
 0x143   :  { %8210 = vmatmul.mubr.bf16.vlgmr.msra.gmra.mrb[0].mxu0 %v15206_v53  ;;  %11717 = vmatpush3.bf16.msra.mxu1 %v12874_v48  ;;  %v12924_v48 = vld [vmem:[%s18115_s1 + $0x350] ss:$12 sps:$4 sm:$0xff]  }
 0x144   :  { %8219 = vmatpush1.bf16.msra.mxu0 %v12870_v49  ;;  %11718 = vmatprep.subr.bf16.mxu1 %v12878_v17  ;;  %v12923_v49 = vld [vmem:[%s18115_s1 + $0x410] ss:$12 sps:$4 sm:$0xff]   ;;  %v12928_v17 = vld [vmem:[%s18115_s1 + $0x428] ss:$12 sps:$4 sm:$0xff]  }
 0x145   :  { %8220 = vmatprep.subr.bf16.mxu0 %v12877_v47  ;;  %8250 = vmatprep.mubr.bf16.mxu0 %v15221_v63  ;;  %v12927_v47 = vld [vmem:[%s18115_s1 + $0xe8c] ss:$12 sps:$4 sm:$0xff]  }
 0x147   :  { %11719 = vmatpush3.bf16.msra.mxu1 %v12879_v50  ;;  %v12929_v50 = vld [vmem:[%s18115_s1 + $0x368] ss:$12 sps:$4 sm:$0xff]  }
 0x148   :  { %8221 = vmatpush1.bf16.msra.mxu0 %v12875_v61  ;;  %11720 = vmatprep.subr.bf16.mxu1 %v12883_v23  ;;  %v12925_v61 = vld [vmem:[%s18115_s1 + $0xe88] ss:$12 sps:$4 sm:$0xff]   ;;  %v12933_v23 = vld [vmem:[%s18115_s1 + $0x440] ss:$12 sps:$4 sm:$0xff]  }
 0x149   :  { %8222 = vmatprep.subr.bf16.mxu0 %v12882_v51  ;;  %v12932_v51 = vld [vmem:[%s18115_s1 + $0xea4] ss:$12 sps:$4 sm:$0xff]  }
 0x14b   :  { %11721 = vmatpush3.bf16.msra.mxu1 %v12884_v59  ;;  %v12934_v59 = vld [vmem:[%s18115_s1 + $0x380] ss:$12 sps:$4 sm:$0xff]  }
 0x14c   :  { %8223 = vmatpush1.bf16.msra.mxu0 %v12880_v57  ;;  %11722 = vmatprep.subr.bf16.mxu1 %v12888_v56  ;;  %v12930_v57 = vld [vmem:[%s18115_s1 + $0xea0] ss:$12 sps:$4 sm:$0xff]   ;;  %v12938_v56 = vld [vmem:[%s18115_s1 + $0x458] ss:$12 sps:$4 sm:$0xff]  }
 0x14d   :  { %8224 = vmatprep.subr.bf16.mxu0 %v12887_v0  ;;  %v12937_v0 = vld [vmem:[%s18115_s1 + $0xebc] ss:$12 sps:$4 sm:$0xff]  }
 0x14f   :  { %11723 = vmatpush3.bf16.msra.mxu1 %v12889_v2  ;;  %v12939_v2 = vld [vmem:[%s18115_s1 + $0x398] ss:$12 sps:$4 sm:$0xff]  }
 0x150   :  { %8225 = vmatpush1.bf16.msra.mxu0 %v12885_v1  ;;  %11724 = vmatprep.subr.bf16.mxu1 %v12893_v5  ;;  %v12935_v1 = vld [vmem:[%s18115_s1 + $0xeb8] ss:$12 sps:$4 sm:$0xff]   ;;  %v12943_v5 = vld [vmem:[%s18115_s1 + $0x470] ss:$12 sps:$4 sm:$0xff]  }
 0x151   :  { %8226 = vmatprep.subr.bf16.mxu0 %v12892_v4  ;;  %v12942_v4 = vld [vmem:[%s18115_s1 + $0xed4] ss:$12 sps:$4 sm:$0xff]  }
 0x153   :  { %11725 = vmatpush3.bf16.msra.mxu1 %v12894_v9  ;;  %v12944_v9 = vld [vmem:[%s18115_s1 + $0x3b0] ss:$12 sps:$4 sm:$0xff]  }
 0x154   :  { %8227 = vmatpush1.bf16.msra.mxu0 %v12890_v7  ;;  %11726 = vmatprep.subr.bf16.mxu1 %v12898_v13  ;;  %v12940_v7 = vld [vmem:[%s18115_s1 + $0xed0] ss:$12 sps:$4 sm:$0xff]   ;;  %v12948_v13 = vld [vmem:[%s18115_s1 + $0x548] ss:$12 sps:$4 sm:$0xff]  }
 0x155   :  { %8228 = vmatprep.subr.bf16.mxu0 %v12897_v12  ;;  %v12947_v12 = vld [vmem:[%s18115_s1 + $0xeec] ss:$12 sps:$4 sm:$0xff]  }
 0x157   :  { %11727 = vmatpush3.bf16.msra.mxu1 %v12899_v15  ;;  %v15398_v15 = vld [vmem:[%s18114_s0 + $0x10] sm:$0xff] }
 0x158   :  { %8229 = vmatpush1.bf16.msra.mxu0 %v12895_v14  ;;  %11728 = vmatprep.subr.bf16.mxu1 %v12903_v21  ;;  %v12945_v14 = vld [vmem:[%s18115_s1 + $0xee8] ss:$12 sps:$4 sm:$0xff]  }
 0x159   :  { %8230 = vmatprep.subr.bf16.mxu0 %v12902_v20  ;;  %v121_v20 = vrot.slane %v15398_v15, %v14504_v25  ;;  %v12949_v21 = vld [vmem:[%s18115_s1 + $0x488] ss:$12 sps:$4 sm:$0xff]  }
 0x15b   :  { %11729 = vmatpush3.bf16.msra.mxu1 %v12904_v26  ;;  %v12953_v26 = vld [vmem:[%s18115_s1 + $0x560] ss:$12 sps:$4 sm:$0xff]  }
 0x15c   :  { %8231 = vmatpush1.bf16.msra.mxu0 %v12900_v22  ;;  %11736 = vmatprep.subr.bf16.mxu1 %v12908_v28  ;;  %v12952_v22 = vld [vmem:[%s18115_s1 + $0xf04] ss:$12 sps:$4 sm:$0xff]   ;;  %v133_v28 = vrot.slane %v15398_v15, %v14519_v30 }
 0x15d   :  { %8232 = vmatprep.subr.bf16.mxu0 %v12907_v27  ;;  %v12950_v27 = vld [vmem:[%s18115_s1 + $0xf00] ss:$12 sps:$4 sm:$0xff]  }
 0x15e   :  { %8906 = vmatmul.mubr.bf16.vlgmr.msra.gmra.mrb[12].mxu1 %v14541_v39  ;;  %v12918_v39 = vld [vmem:[%s18115_s1 + $0x3f8] ss:$12 sps:$4 sm:$0xff]  }
 0x15f   :  { %11737 = vmatpush3.bf16.msra.mxu1 %v12909_v31  ;;  %8945 = vmatprep.mubr.bf16.mxu1 %v14557_v44  ;;  %v12920_v44 = vld [vmem:[%s18115_s1 + $0xe70] ss:$12 sps:$4 sm:$0xff]   ;;  %v12954_v31 = vld [vmem:[%s18115_s1 + $0x4a0] ss:$12 sps:$4 sm:$0xff]  }
 0x160   :  { %8233 = vmatpush1.bf16.msra.mxu0 %v12905_v29  ;;  %11738 = vmatprep.subr.bf16.mxu1 %v12913_v33  ;;  %v15417_v29 = vpack.c.bf16 %v121_v20, %v121_v20  ;;  %v12958_v33 = vld [vmem:[%s18115_s1 + $0x578] ss:$12 sps:$4 sm:$0xff]   ;;  %v12997_v20 = vld [vmem:[%s18115_s1 + $0xfdc] ss:$12 sps:$4 sm:$0xff]  }
 0x161   :  { %8234 = vmatprep.subr.bf16.mxu0 %v12912_v32  ;;  %v12957_v32 = vld [vmem:[%s18115_s1 + $0xf1c] ss:$12 sps:$4 sm:$0xff]  }
 0x163   :  { %11739 = vmatpush3.bf16.msra.mxu1 %v12914_v35  ;;  %v12959_v35 = vld [vmem:[%s18115_s1 + $0x4b8] ss:$12 sps:$4 sm:$0xff]  }
 0x164   :  { %8235 = vmatpush1.bf16.msra.mxu0 %v12910_v34  ;;  %11740 = vmatprep.subr.bf16.mxu1 %v12918_v39  ;;  %v15432_v34 = vpack.c.bf16 %v133_v28, %v133_v28  ;;  %v12960_v39 = vld [vmem:[%s18115_s1 + $0xf30] ss:$12 sps:$4 sm:$0xff]  }
 0x165   :  { %8236 = vmatprep.subr.bf16.mxu0 %v12917_v37  ;;  %v12962_v37 = vld [vmem:[%s18115_s1 + $0xf34] ss:$12 sps:$4 sm:$0xff]   ;;  %v13004_v28 = vld [vmem:[%s18115_s1 + $0x650] ss:$12 sps:$4 sm:$0xff]  }
 0x167   :  { %11741 = vmatpush3.bf16.msra.mxu1 %v12919_v42  ;;  %v12967_v42 = vld [vmem:[%s18115_s1 + $0xf4c] ss:$12 sps:$4 sm:$0xff]  }
 0x168   :  { %8237 = vmatpush1.bf16.msra.mxu0 %v12915_v38  ;;  %11742 = vmatprep.subr.bf16.mxu1 %v12923_v49  ;;  %v12964_v38 = vld [vmem:[%s18115_s1 + $0x4d0] ss:$12 sps:$4 sm:$0xff]   ;;  %v12965_v49 = vld [vmem:[%s18115_s1 + $0xf48] ss:$12 sps:$4 sm:$0xff]  }
 0x169   :  { %8238 = vmatprep.subr.bf16.mxu0 %v12922_v40  ;;  %v12968_v40 = vld [vmem:[%s18115_s1 + $0x5a8] ss:$12 sps:$4 sm:$0xff]  }
 0x16b   :  { %11743 = vmatpush3.bf16.msra.mxu1 %v12924_v48  ;;  %v12972_v48 = vld [vmem:[%s18115_s1 + $0xf64] ss:$12 sps:$4 sm:$0xff]  }
 0x16c   :  { %8239 = vmatpush1.bf16.msra.mxu0 %v12920_v44  ;;  %11744 = vmatprep.subr.bf16.mxu1 %v12928_v17  ;;  %v12969_v44 = vld [vmem:[%s18115_s1 + $0x4e8] ss:$12 sps:$4 sm:$0xff]   ;;  %v12970_v17 = vld [vmem:[%s18115_s1 + $0xf60] ss:$12 sps:$4 sm:$0xff]  }
 0x16d   :  { %8240 = vmatprep.subr.bf16.mxu0 %v12927_v47  ;;  %v12973_v47 = vld [vmem:[%s18115_s1 + $0x5c0] ss:$12 sps:$4 sm:$0xff]  }
 0x16f   :  { %11745 = vmatpush3.bf16.msra.mxu1 %v12929_v50  ;;  %v12977_v50 = vld [vmem:[%s18115_s1 + $0xf7c] ss:$12 sps:$4 sm:$0xff]  }
 0x170   :  { %8241 = vmatpush1.bf16.msra.mxu0 %v12925_v61  ;;  %11746 = vmatprep.subr.bf16.mxu1 %v12933_v23  ;;  %v12974_v61 = vld [vmem:[%s18115_s1 + $0x500] ss:$12 sps:$4 sm:$0xff]   ;;  %v12975_v23 = vld [vmem:[%s18115_s1 + $0xf78] ss:$12 sps:$4 sm:$0xff]  }
 0x171   :  { %8242 = vmatprep.subr.bf16.mxu0 %v12932_v51  ;;  %v12978_v51 = vld [vmem:[%s18115_s1 + $0x5d8] ss:$12 sps:$4 sm:$0xff]  }
 0x173   :  { %11747 = vmatpush3.bf16.msra.mxu1 %v12934_v59  ;;  %v12982_v59 = vld [vmem:[%s18115_s1 + $0xf94] ss:$12 sps:$4 sm:$0xff]  }
 0x174   :  { %8243 = vmatpush1.bf16.msra.mxu0 %v12930_v57  ;;  %11748 = vmatprep.subr.bf16.mxu1 %v12938_v56  ;;  %v12979_v57 = vld [vmem:[%s18115_s1 + $0x518] ss:$12 sps:$4 sm:$0xff]   ;;  %v12980_v56 = vld [vmem:[%s18115_s1 + $0xf90] ss:$12 sps:$4 sm:$0xff]  }
 0x175   :  { %8244 = vmatprep.subr.bf16.mxu0 %v12937_v0  ;;  %v12983_v0 = vld [vmem:[%s18115_s1 + $0x5f0] ss:$12 sps:$4 sm:$0xff]  }
 0x177   :  { %11749 = vmatpush3.bf16.msra.mxu1 %v12939_v2  ;;  %v12987_v2 = vld [vmem:[%s18115_s1 + $0xfac] ss:$12 sps:$4 sm:$0xff]  }
 0x178   :  { %8245 = vmatpush1.bf16.msra.mxu0 %v12935_v1  ;;  %11750 = vmatprep.subr.bf16.mxu1 %v12943_v5  ;;  %v12984_v1 = vld [vmem:[%s18115_s1 + $0x530] ss:$12 sps:$4 sm:$0xff]   ;;  %v12985_v5 = vld [vmem:[%s18115_s1 + $0xfa8] ss:$12 sps:$4 sm:$0xff]  }
 0x179   :  { %8246 = vmatprep.subr.bf16.mxu0 %v12942_v4  ;;  %v12988_v4 = vld [vmem:[%s18115_s1 + $0x6c8] ss:$12 sps:$4 sm:$0xff]  }
 0x17b   :  { %11751 = vmatpush3.bf16.msra.mxu1 %v12944_v9  ;;  %v12992_v9 = vld [vmem:[%s18115_s1 + $0xfc4] ss:$12 sps:$4 sm:$0xff]  }
 0x17c   :  { %8247 = vmatpush1.bf16.msra.mxu0 %v12940_v7  ;;  %11758 = vmatprep.subr.bf16.mxu1 %v12948_v13  ;;  %v12989_v7 = vld [vmem:[%s18115_s1 + $0x608] ss:$12 sps:$4 sm:$0xff]   ;;  %v12990_v13 = vld [vmem:[%s18115_s1 + $0xfc0] ss:$12 sps:$4 sm:$0xff]  }
 0x17d   :  { %8248 = vmatprep.subr.bf16.mxu0 %v12947_v12  ;;  %v12993_v12 = vld [vmem:[%s18115_s1 + $0x6e0] ss:$12 sps:$4 sm:$0xff]  }
 0x17e   :  { %8946 = vmatmul.mubr.bf16.vlgmr.msra.gmra.mrb[16].mxu1 %v14772_v10  ;;  %v12955_v10 = vld [vmem:[%s18115_s1 + $0xf18] ss:$12 sps:$4 sm:$0xff]  }
 0x17f   :  { %11759 = vmatpush3.bf16.msra.mxu1 %v12949_v21  ;;  %8985 = vmatprep.mubr.bf16.mxu1 %v14788_v16  ;;  %v12963_v16 = vld [vmem:[%s18115_s1 + $0x590] ss:$12 sps:$4 sm:$0xff]   ;;  %v12998_v21 = vld [vmem:[%s18115_s1 + $0x6f8] ss:$12 sps:$4 sm:$0xff]  }
 0x180   :  { %8249 = vmatpush1.bf16.msra.mxu0 %v12945_v14  ;;  %11760 = vmatprep.subr.bf16.mxu1 %v12953_v26  ;;  %v12994_v14 = vld [vmem:[%s18115_s1 + $0x620] ss:$12 sps:$4 sm:$0xff]  }
 0x181   :  { %8259 = vmatprep.subr.bf16.mxu0 %v12952_v22  ;;  %v12999_v22 = vld [vmem:[%s18115_s1 + $0x638] ss:$12 sps:$4 sm:$0xff]   ;;  %v13002_v26 = vld [vmem:[%s18115_s1 + $0xff4] ss:$12 sps:$4 sm:$0xff]  }
 0x183   :  { %8251 = vmatmul.mubr.bf16.vlgmr.msra.gmra.mrb[0].mxu0 %v15417_v29  ;;  %11761 = vmatpush3.bf16.msra.mxu1 %v12954_v31  ;;  %v13007_v31 = vld [vmem:[%s18115_s1 + $0x100c] ss:$12 sps:$4 sm:$0xff]  }
 0x184   :  { %8260 = vmatpush1.bf16.msra.mxu0 %v12950_v27  ;;  %11762 = vmatprep.subr.bf16.mxu1 %v12958_v33  ;;  %v13003_v27 = vld [vmem:[%s18115_s1 + $0x710] ss:$12 sps:$4 sm:$0xff]   ;;  %v13005_v33 = vld [vmem:[%s18115_s1 + $0x1008] ss:$12 sps:$4 sm:$0xff]  }
 0x185   :  { %8261 = vmatprep.subr.bf16.mxu0 %v12957_v32  ;;  %8291 = vmatprep.mubr.bf16.mxu0 %v15432_v34  ;;  %v13008_v32 = vld [vmem:[%s18115_s1 + $0x728] ss:$12 sps:$4 sm:$0xff]  }
 0x187   :  { %11763 = vmatpush3.bf16.msra.mxu1 %v12959_v35  ;;  %v13012_v35 = vld [vmem:[%s18115_s1 + $0x1024] ss:$12 sps:$4 sm:$0xff]  }
 0x188   :  { %8262 = vmatpush1.bf16.msra.mxu0 %v12955_v10  ;;  %11764 = vmatprep.subr.bf16.mxu1 %v12963_v16  ;;  %v13009_v10 = vld [vmem:[%s18115_s1 + $0x668] ss:$12 sps:$4 sm:$0xff]   ;;  %v13010_v16 = vld [vmem:[%s18115_s1 + $0x1020] ss:$12 sps:$4 sm:$0xff]  }
 0x189   :  { %8263 = vmatprep.subr.bf16.mxu0 %v12962_v37  ;;  %v13013_v37 = vld [vmem:[%s18115_s1 + $0x740] ss:$12 sps:$4 sm:$0xff]  }
 0x18b   :  { %11765 = vmatpush3.bf16.msra.mxu1 %v12964_v38  ;;  %v13017_v38 = vld [vmem:[%s18115_s1 + $0x103c] ss:$12 sps:$4 sm:$0xff]  }
 0x18c   :  { %8264 = vmatpush1.bf16.msra.mxu0 %v12960_v39  ;;  %11766 = vmatprep.subr.bf16.mxu1 %v12968_v40  ;;  %v13014_v39 = vld [vmem:[%s18115_s1 + $0x680] ss:$12 sps:$4 sm:$0xff]   ;;  %v13015_v40 = vld [vmem:[%s18115_s1 + $0x1038] ss:$12 sps:$4 sm:$0xff]  }
 0x18d   :  { %8265 = vmatprep.subr.bf16.mxu0 %v12967_v42  ;;  %v13018_v42 = vld [vmem:[%s18115_s1 + $0x758] ss:$12 sps:$4 sm:$0xff]  }
 0x18f   :  { %11767 = vmatpush3.bf16.msra.mxu1 %v12969_v44  ;;  %v13022_v44 = vld [vmem:[%s18115_s1 + $0x1054] ss:$12 sps:$4 sm:$0xff]  }
 0x190   :  { %8266 = vmatpush1.bf16.msra.mxu0 %v12965_v49  ;;  %11768 = vmatprep.subr.bf16.mxu1 %v12973_v47  ;;  %v13019_v49 = vld [vmem:[%s18115_s1 + $0x698] ss:$12 sps:$4 sm:$0xff]   ;;  %v13020_v47 = vld [vmem:[%s18115_s1 + $0x1050] ss:$12 sps:$4 sm:$0xff]  }
 0x191   :  { %8267 = vmatprep.subr.bf16.mxu0 %v12972_v48  ;;  %v13023_v48 = vld [vmem:[%s18115_s1 + $0x770] ss:$12 sps:$4 sm:$0xff]  }
 0x193   :  { %11769 = vmatpush3.bf16.msra.mxu1 %v12974_v61  ;;  %v13027_v61 = vld [vmem:[%s18115_s1 + $0x106c] ss:$12 sps:$4 sm:$0xff]  }
 0x194   :  { %8268 = vmatpush1.bf16.msra.mxu0 %v12970_v17  ;;  %11770 = vmatprep.subr.bf16.mxu1 %v12978_v51  ;;  %v13024_v17 = vld [vmem:[%s18115_s1 + $0x6b0] ss:$12 sps:$4 sm:$0xff]   ;;  %v13025_v51 = vld [vmem:[%s18115_s1 + $0x1068] ss:$12 sps:$4 sm:$0xff]  }
 0x195   :  { %8269 = vmatprep.subr.bf16.mxu0 %v12977_v50  ;;  %v13028_v50 = vld [vmem:[%s18115_s1 + $0x848] ss:$12 sps:$4 sm:$0xff]  }
 0x197   :  { %11771 = vmatpush3.bf16.msra.mxu1 %v12979_v57  ;;  %v13029_v57 = vld [vmem:[%s18115_s1 + $0x788] ss:$12 sps:$4 sm:$0xff]  }
 0x198   :  { %8270 = vmatpush1.bf16.msra.mxu0 %v12975_v23  ;;  %11772 = vmatprep.subr.bf16.mxu1 %v12983_v0  ;;  %v129_v23 = vrot.slane %v15398_v15, %v14722_v52  ;;  %v13033_v0 = vld [vmem:[%s18115_s1 + $0x860] ss:$12 sps:$4 sm:$0xff]  }
 0x199   :  { %8271 = vmatprep.subr.bf16.mxu0 %v12982_v59  ;;  %v13032_v59 = vld [vmem:[%s18115_s1 + $0x1084] ss:$12 sps:$4 sm:$0xff]  }
 0x19b   :  { %11773 = vmatpush3.bf16.msra.mxu1 %v12984_v1  ;;  %v141_v1 = vrot.slane %v15398_v15, %v14737_v60  ;;  %v13038_v15 = vld [vmem:[%s18115_s1 + $0x878] ss:$12 sps:$4 sm:$0xff]  }
 0x19c   :  { %8272 = vmatpush1.bf16.msra.mxu0 %v12980_v56  ;;  %11780 = vmatprep.subr.bf16.mxu1 %v12988_v4  ;;  %v13030_v56 = vld [vmem:[%s18115_s1 + $0x1080] ss:$12 sps:$4 sm:$0xff]  }
 0x19d   :  { %8273 = vmatprep.subr.bf16.mxu0 %v12987_v2  ;;  %v15623_v2 = vpack.c.bf16 %v129_v23, %v129_v23  ;;  %v13034_v4 = vld [vmem:[%s18115_s1 + $0x7a0] ss:$12 sps:$4 sm:$0xff]  }
 0x19e   :  { %8986 = vmatmul.mubr.bf16.vlgmr.msra.gmra.mrb[20].mxu1 %v14993_v54  ;;  %v12995_v54 = vld [vmem:[%s18115_s1 + $0xfd8] ss:$12 sps:$4 sm:$0xff]   ;;  %v13082_v23 = vld [vmem:[%s18115_s1 + $0x1174] ss:$12 sps:$4 sm:$0xff]  }
 0x19f   :  { %11781 = vmatpush3.bf16.msra.mxu1 %v12989_v7  ;;  %9025 = vmatprep.mubr.bf16.mxu1 %v14258_v58  ;;  %v13000_v58 = vld [vmem:[%s18115_s1 + $0xff0] ss:$12 sps:$4 sm:$0xff]   ;;  %v15638_v7 = vpack.c.bf16 %v141_v1, %v141_v1  ;;  %v13085_v1 = vld [vmem:[%s18115_s1 + $0x1188] ss:$12 sps:$4 sm:$0xff]  }
 0x1a0   :  { %8274 = vmatpush1.bf16.msra.mxu0 %v12985_v5  ;;  %11782 = vmatprep.subr.bf16.mxu1 %v12993_v12  ;;  %v13037_v5 = vld [vmem:[%s18115_s1 + $0x109c] ss:$12 sps:$4 sm:$0xff]   ;;  %v13042_v12 = vld [vmem:[%s18115_s1 + $0x10b4] ss:$12 sps:$4 sm:$0xff]  }
 0x1a1   :  { %8275 = vmatprep.subr.bf16.mxu0 %v12992_v9  ;;  %v13039_v9 = vld [vmem:[%s18115_s1 + $0x7b8] ss:$12 sps:$4 sm:$0xff]  }
 0x1a3   :  { %11783 = vmatpush3.bf16.msra.mxu1 %v12994_v14  ;;  %v13044_v14 = vld [vmem:[%s18115_s1 + $0x7d0] ss:$12 sps:$4 sm:$0xff]  }
 0x1a4   :  { %8276 = vmatpush1.bf16.msra.mxu0 %v12990_v13  ;;  %11784 = vmatprep.subr.bf16.mxu1 %v12998_v21  ;;  %v13040_v13 = vld [vmem:[%s18115_s1 + $0x10b0] ss:$12 sps:$4 sm:$0xff]   ;;  %v13048_v21 = vld [vmem:[%s18115_s1 + $0x8a8] ss:$12 sps:$4 sm:$0xff]  }
 0x1a5   :  { %8277 = vmatprep.subr.bf16.mxu0 %v12997_v20  ;;  %v13047_v20 = vld [vmem:[%s18115_s1 + $0x10cc] ss:$12 sps:$4 sm:$0xff]  }
 0x1a7   :  { %11785 = vmatpush3.bf16.msra.mxu1 %v12999_v22  ;;  %v13049_v22 = vld [vmem:[%s18115_s1 + $0x7e8] ss:$12 sps:$4 sm:$0xff]  }
 0x1a8   :  { %8278 = vmatpush1.bf16.msra.mxu0 %v12995_v54  ;;  %11786 = vmatprep.subr.bf16.mxu1 %v13003_v27  ;;  %v13045_v54 = vld [vmem:[%s18115_s1 + $0x10c8] ss:$12 sps:$4 sm:$0xff]   ;;  %v13053_v27 = vld [vmem:[%s18115_s1 + $0x8c0] ss:$12 sps:$4 sm:$0xff]  }
 0x1a9   :  { %8279 = vmatprep.subr.bf16.mxu0 %v13002_v26  ;;  %v13052_v26 = vld [vmem:[%s18115_s1 + $0x10e4] ss:$12 sps:$4 sm:$0xff]  }
 0x1ab   :  { %11787 = vmatpush3.bf16.msra.mxu1 %v13004_v28  ;;  %v13054_v28 = vld [vmem:[%s18115_s1 + $0x800] ss:$12 sps:$4 sm:$0xff]  }
 0x1ac   :  { %8280 = vmatpush1.bf16.msra.mxu0 %v13000_v58  ;;  %11788 = vmatprep.subr.bf16.mxu1 %v13008_v32  ;;  %v13050_v58 = vld [vmem:[%s18115_s1 + $0x10e0] ss:$12 sps:$4 sm:$0xff]   ;;  %v13058_v32 = vld [vmem:[%s18115_s1 + $0x8d8] ss:$12 sps:$4 sm:$0xff]  }
 0x1ad   :  { %8281 = vmatprep.subr.bf16.mxu0 %v13007_v31  ;;  %v13057_v31 = vld [vmem:[%s18115_s1 + $0x10fc] ss:$12 sps:$4 sm:$0xff]  }
 0x1af   :  { %11789 = vmatpush3.bf16.msra.mxu1 %v13009_v10  ;;  %v13059_v10 = vld [vmem:[%s18115_s1 + $0x818] ss:$12 sps:$4 sm:$0xff]  }
 0x1b0   :  { %8282 = vmatpush1.bf16.msra.mxu0 %v13005_v33  ;;  %11790 = vmatprep.subr.bf16.mxu1 %v13013_v37  ;;  %v13055_v33 = vld [vmem:[%s18115_s1 + $0x10f8] ss:$12 sps:$4 sm:$0xff]   ;;  %v13063_v37 = vld [vmem:[%s18115_s1 + $0x8f0] ss:$12 sps:$4 sm:$0xff]  }
 0x1b1   :  { %8283 = vmatprep.subr.bf16.mxu0 %v13012_v35  ;;  %v13062_v35 = vld [vmem:[%s18115_s1 + $0x1114] ss:$12 sps:$4 sm:$0xff]  }
 0x1b3   :  { %11791 = vmatpush3.bf16.msra.mxu1 %v13014_v39  ;;  %v13064_v39 = vld [vmem:[%s18115_s1 + $0x830] ss:$12 sps:$4 sm:$0xff]  }
 0x1b4   :  { %8284 = vmatpush1.bf16.msra.mxu0 %v13010_v16  ;;  %11792 = vmatprep.subr.bf16.mxu1 %v13018_v42  ;;  %v13060_v16 = vld [vmem:[%s18115_s1 + $0x1110] ss:$12 sps:$4 sm:$0xff]   ;;  %v13068_v42 = vld [vmem:[%s18115_s1 + $0x9c8] ss:$12 sps:$4 sm:$0xff]  }
 0x1b5   :  { %8285 = vmatprep.subr.bf16.mxu0 %v13017_v38  ;;  %v13067_v38 = vld [vmem:[%s18115_s1 + $0x112c] ss:$12 sps:$4 sm:$0xff]  }
 0x1b7   :  { %11793 = vmatpush3.bf16.msra.mxu1 %v13019_v49  ;;  %v13069_v49 = vld [vmem:[%s18115_s1 + $0x908] ss:$12 sps:$4 sm:$0xff]  }
 0x1b8   :  { %8286 = vmatpush1.bf16.msra.mxu0 %v13015_v40  ;;  %11794 = vmatprep.subr.bf16.mxu1 %v13023_v48  ;;  %v13065_v40 = vld [vmem:[%s18115_s1 + $0x1128] ss:$12 sps:$4 sm:$0xff]   ;;  %v13073_v48 = vld [vmem:[%s18115_s1 + $0x9e0] ss:$12 sps:$4 sm:$0xff]  }
 0x1b9   :  { %8287 = vmatprep.subr.bf16.mxu0 %v13022_v44  ;;  %v13072_v44 = vld [vmem:[%s18115_s1 + $0x1144] ss:$12 sps:$4 sm:$0xff]  }
 0x1bb   :  { %11795 = vmatpush3.bf16.msra.mxu1 %v13024_v17  ;;  %v13074_v17 = vld [vmem:[%s18115_s1 + $0x920] ss:$12 sps:$4 sm:$0xff]  }
 0x1bc   :  { %8288 = vmatpush1.bf16.msra.mxu0 %v13020_v47  ;;  %11802 = vmatprep.subr.bf16.mxu1 %v13028_v50  ;;  %v13070_v47 = vld [vmem:[%s18115_s1 + $0x1140] ss:$12 sps:$4 sm:$0xff]   ;;  %v13078_v50 = vld [vmem:[%s18115_s1 + $0x9f8] ss:$12 sps:$4 sm:$0xff]  }
 0x1bd   :  { %8289 = vmatprep.subr.bf16.mxu0 %v13027_v61  ;;  %v13077_v61 = vld [vmem:[%s18115_s1 + $0x115c] ss:$12 sps:$4 sm:$0xff]  }
 0x1be   :  { %9026 = vmatmul.mubr.bf16.vlgmr.msra.gmra.mrb[24].mxu1 %v14325_v18  ;;  %v13035_v18 = vld [vmem:[%s18115_s1 + $0x1098] ss:$12 sps:$4 sm:$0xff]  }
 0x1bf   :  { %11803 = vmatpush3.bf16.msra.mxu1 %v13029_v57  ;;  %9065 = vmatprep.mubr.bf16.mxu1 %v14341_v24  ;;  %v13043_v24 = vld [vmem:[%s18115_s1 + $0x890] ss:$12 sps:$4 sm:$0xff]  }
 0x1c0   :  { %8290 = vmatpush1.bf16.msra.mxu0 %v13025_v51  ;;  %11804 = vmatprep.subr.bf16.mxu1 %v13033_v0  ;;  %v13079_v51 = vld [vmem:[%s18115_s1 + $0x938] ss:$12 sps:$4 sm:$0xff]   ;;  %v13083_v57 = vld [vmem:[%s18115_s1 + $0xa10] ss:$12 sps:$4 sm:$0xff]  }
 0x1c1   :  { %8300 = vmatprep.subr.bf16.mxu0 %v13032_v59  ;;  %v13084_v59 = vld [vmem:[%s18115_s1 + $0x950] ss:$12 sps:$4 sm:$0xff]   ;;  %v13087_v0 = vld [vmem:[%s18115_s1 + $0x118c] ss:$12 sps:$4 sm:$0xff]  }
 0x1c3   :  { %8292 = vmatmul.mubr.bf16.vlgmr.msra.gmra.mrb[0].mxu0 %v15623_v2  ;;  %11805 = vmatpush3.bf16.msra.mxu1 %v13034_v4  ;;  %v13089_v4 = vld [vmem:[%s18115_s1 + $0x968] ss:$12 sps:$4 sm:$0xff]  }
 0x1c4   :  { %8301 = vmatpush1.bf16.msra.mxu0 %v13030_v56  ;;  %11806 = vmatprep.subr.bf16.mxu1 %v13038_v15  ;;  %v13088_v56 = vld [vmem:[%s18115_s1 + $0xa28] ss:$12 sps:$4 sm:$0xff]   ;;  %v13093_v15 = vld [vmem:[%s18115_s1 + $0xa40] ss:$12 sps:$4 sm:$0xff]  }
 0x1c5   :  { %8302 = vmatprep.subr.bf16.mxu0 %v13037_v5  ;;  %8332 = vmatprep.mubr.bf16.mxu0 %v15638_v7  ;;  %v13092_v5 = vld [vmem:[%s18115_s1 + $0x11a4] ss:$12 sps:$4 sm:$0xff]  }
 0x1c7   :  { %11807 = vmatpush3.bf16.msra.mxu1 %v13039_v9  ;;  %v13094_v9 = vld [vmem:[%s18115_s1 + $0x980] ss:$12 sps:$4 sm:$0xff]  }
 0x1c8   :  { %8303 = vmatpush1.bf16.msra.mxu0 %v13035_v18  ;;  %11808 = vmatprep.subr.bf16.mxu1 %v13043_v24  ;;  %v13090_v18 = vld [vmem:[%s18115_s1 + $0x11a0] ss:$12 sps:$4 sm:$0xff]   ;;  %v13098_v24 = vld [vmem:[%s18115_s1 + $0xa58] ss:$12 sps:$4 sm:$0xff]  }
 0x1c9   :  { %8304 = vmatprep.subr.bf16.mxu0 %v13042_v12  ;;  %v13097_v12 = vld [vmem:[%s18115_s1 + $0x11bc] ss:$12 sps:$4 sm:$0xff]  }
 0x1cb   :  { %11809 = vmatpush3.bf16.msra.mxu1 %v13044_v14  ;;  %v13099_v14 = vld [vmem:[%s18115_s1 + $0x998] ss:$12 sps:$4 sm:$0xff]  }
 0x1cc   :  { %8305 = vmatpush1.bf16.msra.mxu0 %v13040_v13  ;;  %11810 = vmatprep.subr.bf16.mxu1 %v13048_v21  ;;  %v13095_v13 = vld [vmem:[%s18115_s1 + $0x11b8] ss:$12 sps:$4 sm:$0xff]   ;;  %v13103_v21 = vld [vmem:[%s18115_s1 + $0xa70] ss:$12 sps:$4 sm:$0xff]  }
 0x1cd   :  { %8306 = vmatprep.subr.bf16.mxu0 %v13047_v20  ;;  %v13102_v20 = vld [vmem:[%s18115_s1 + $0x11d4] ss:$12 sps:$4 sm:$0xff]  }
 0x1cf   :  { %11811 = vmatpush3.bf16.msra.mxu1 %v13049_v22  ;;  %v13104_v22 = vld [vmem:[%s18115_s1 + $0x9b0] ss:$12 sps:$4 sm:$0xff]  }
 0x1d0   :  { %8307 = vmatpush1.bf16.msra.mxu0 %v13045_v54  ;;  %11812 = vmatprep.subr.bf16.mxu1 %v13053_v27  ;;  %v13100_v54 = vld [vmem:[%s18115_s1 + $0x11d0] ss:$12 sps:$4 sm:$0xff]   ;;  %v13108_v27 = vld [vmem:[%s18115_s1 + $0xb48] ss:$12 sps:$4 sm:$0xff]  }
 0x1d1   :  { %8308 = vmatprep.subr.bf16.mxu0 %v13052_v26  ;;  %v13107_v26 = vld [vmem:[%s18115_s1 + $0x11ec] ss:$12 sps:$4 sm:$0xff]  }
 0x1d3   :  { %11813 = vmatpush3.bf16.msra.mxu1 %v13054_v28  ;;  %v15815_v28 = vld [vmem:[%s18114_s0 + $0x18] sm:$0xff] }
 0x1d4   :  { %8309 = vmatpush1.bf16.msra.mxu0 %v13050_v58  ;;  %11814 = vmatprep.subr.bf16.mxu1 %v13058_v32  ;;  %v13105_v58 = vld [vmem:[%s18115_s1 + $0x11e8] ss:$12 sps:$4 sm:$0xff]  }
 0x1d5   :  { %8310 = vmatprep.subr.bf16.mxu0 %v13057_v31  ;;  %v13999_v31 = vld [vmem:[%s18114_s0 + $0x10] sm:$0xff] }
 0x1d6   :  { %v137_v32 = vrot.slane %v13999_v31, %v14953_v36  ;;  %v13162_v31 = vld [vmem:[%s18115_s1 + $0x12f4] ss:$12 sps:$4 sm:$0xff]  }
 0x1d7   :  { %11815 = vmatpush3.bf16.msra.mxu1 %v13059_v10  ;;  %v13112_v10 = vld [vmem:[%s18115_s1 + $0x1204] ss:$12 sps:$4 sm:$0xff]  }
 0x1d8   :  { %8311 = vmatpush1.bf16.msra.mxu0 %v13055_v33  ;;  %11816 = vmatprep.subr.bf16.mxu1 %v13063_v37  ;;  %v13109_v33 = vld [vmem:[%s18115_s1 + $0xa88] ss:$12 sps:$4 sm:$0xff]   ;;  %v13110_v37 = vld [vmem:[%s18115_s1 + $0x1200] ss:$12 sps:$4 sm:$0xff]  }
 0x1d9   :  { %8312 = vmatprep.subr.bf16.mxu0 %v13062_v35  ;;  %v13113_v35 = vld [vmem:[%s18115_s1 + $0xb60] ss:$12 sps:$4 sm:$0xff]  }
 0x1db   :  { %11817 = vmatpush3.bf16.msra.mxu1 %v13064_v39  ;;  %v15836_v39 = vpack.c.bf16 %v137_v32, %v137_v32  ;;  %v13163_v32 = vld [vmem:[%s18115_s1 + $0xd10] ss:$12 sps:$4 sm:$0xff]  }
 0x1dc   :  { %8313 = vmatpush1.bf16.msra.mxu0 %v13060_v16  ;;  %11824 = vmatprep.subr.bf16.mxu1 %v13068_v42  ;;  %v149_v16 = vrot.slane %v15815_v28, %v14221_v46  ;;  %v13117_v42 = vld [vmem:[%s18115_s1 + $0x121c] ss:$12 sps:$4 sm:$0xff]  }
 0x1dd   :  { %8314 = vmatprep.subr.bf16.mxu0 %v13067_v38  ;;  %v13114_v38 = vld [vmem:[%s18115_s1 + $0xaa0] ss:$12 sps:$4 sm:$0xff]  }
 0x1de   :  { %9066 = vmatmul.mubr.bf16.vlgmr.msra.gmra.mrb[28].mxu1 %v14543_v41  ;;  %v13075_v41 = vld [vmem:[%s18115_s1 + $0x1158] ss:$12 sps:$4 sm:$0xff]  }
 0x1df   :  { %11825 = vmatpush3.bf16.msra.mxu1 %v13069_v49  ;;  %9105 = vmatprep.mubr.bf16.mxu1 %v14559_v45  ;;  %v13080_v45 = vld [vmem:[%s18115_s1 + $0x1170] ss:$12 sps:$4 sm:$0xff]   ;;  %v15851_v49 = vpack.c.bf16 %v149_v16, %v149_v16  ;;  %v13169_v16 = vld [vmem:[%s18115_s1 + $0xc68] ss:$12 sps:$4 sm:$0xff]  }
 0x1e0   :  { %8315 = vmatpush1.bf16.msra.mxu0 %v13065_v40  ;;  %11826 = vmatprep.subr.bf16.mxu1 %v13073_v48  ;;  %v13118_v40 = vld [vmem:[%s18115_s1 + $0xb78] ss:$12 sps:$4 sm:$0xff]   ;;  %v13122_v48 = vld [vmem:[%s18115_s1 + $0x1234] ss:$12 sps:$4 sm:$0xff]  }
 0x1e1   :  { %8316 = vmatprep.subr.bf16.mxu0 %v13072_v44  ;;  %v13119_v44 = vld [vmem:[%s18115_s1 + $0xab8] ss:$12 sps:$4 sm:$0xff]  }
 0x1e3   :  { %11827 = vmatpush3.bf16.msra.mxu1 %v13074_v17  ;;  %v13124_v17 = vld [vmem:[%s18115_s1 + $0xad0] ss:$12 sps:$4 sm:$0xff]  }
 0x1e4   :  { %8317 = vmatpush1.bf16.msra.mxu0 %v13070_v47  ;;  %11828 = vmatprep.subr.bf16.mxu1 %v13078_v50  ;;  %v13120_v47 = vld [vmem:[%s18115_s1 + $0x1230] ss:$12 sps:$4 sm:$0xff]   ;;  %v13128_v50 = vld [vmem:[%s18115_s1 + $0xba8] ss:$12 sps:$4 sm:$0xff]  }
 0x1e5   :  { %8318 = vmatprep.subr.bf16.mxu0 %v13077_v61  ;;  %v13127_v61 = vld [vmem:[%s18115_s1 + $0x124c] ss:$12 sps:$4 sm:$0xff]  }
 0x1e7   :  { %11829 = vmatpush3.bf16.msra.mxu1 %v13079_v51  ;;  %v13129_v51 = vld [vmem:[%s18115_s1 + $0xae8] ss:$12 sps:$4 sm:$0xff]  }
 0x1e8   :  { %8319 = vmatpush1.bf16.msra.mxu0 %v13075_v41  ;;  %11830 = vmatprep.subr.bf16.mxu1 %v13083_v57  ;;  %v13125_v41 = vld [vmem:[%s18115_s1 + $0x1248] ss:$12 sps:$4 sm:$0xff]   ;;  %v13133_v57 = vld [vmem:[%s18115_s1 + $0xbc0] ss:$12 sps:$4 sm:$0xff]  }
 0x1e9   :  { %8320 = vmatprep.subr.bf16.mxu0 %v13082_v23  ;;  %v13132_v23 = vld [vmem:[%s18115_s1 + $0x1264] ss:$12 sps:$4 sm:$0xff]  }
 0x1eb   :  { %11831 = vmatpush3.bf16.msra.mxu1 %v13084_v59  ;;  %v13134_v59 = vld [vmem:[%s18115_s1 + $0xb00] ss:$12 sps:$4 sm:$0xff]  }
 0x1ec   :  { %8321 = vmatpush1.bf16.msra.mxu0 %v13080_v45  ;;  %11832 = vmatprep.subr.bf16.mxu1 %v13088_v56  ;;  %v13130_v45 = vld [vmem:[%s18115_s1 + $0x1260] ss:$12 sps:$4 sm:$0xff]   ;;  %v13138_v56 = vld [vmem:[%s18115_s1 + $0xbd8] ss:$12 sps:$4 sm:$0xff]  }
 0x1ed   :  { %8322 = vmatprep.subr.bf16.mxu0 %v13087_v0  ;;  %v13137_v0 = vld [vmem:[%s18115_s1 + $0x127c] ss:$12 sps:$4 sm:$0xff]  }
 0x1ef   :  { %11833 = vmatpush3.bf16.msra.mxu1 %v13089_v4  ;;  %v13139_v4 = vld [vmem:[%s18115_s1 + $0xb18] ss:$12 sps:$4 sm:$0xff]  }
 0x1f0   :  { %8323 = vmatpush1.bf16.msra.mxu0 %v13085_v1  ;;  %11834 = vmatprep.subr.bf16.mxu1 %v13093_v15  ;;  %v13135_v1 = vld [vmem:[%s18115_s1 + $0x1278] ss:$12 sps:$4 sm:$0xff]   ;;  %v13143_v15 = vld [vmem:[%s18115_s1 + $0xbf0] ss:$12 sps:$4 sm:$0xff]  }
 0x1f1   :  { %8324 = vmatprep.subr.bf16.mxu0 %v13092_v5  ;;  %v13142_v5 = vld [vmem:[%s18115_s1 + $0x1294] ss:$12 sps:$4 sm:$0xff]  }
 0x1f3   :  { %11835 = vmatpush3.bf16.msra.mxu1 %v13094_v9  ;;  %v13144_v9 = vld [vmem:[%s18115_s1 + $0xb30] ss:$12 sps:$4 sm:$0xff]  }
 0x1f4   :  { %8325 = vmatpush1.bf16.msra.mxu0 %v13090_v18  ;;  %11836 = vmatprep.subr.bf16.mxu1 %v13098_v24  ;;  %v13140_v18 = vld [vmem:[%s18115_s1 + $0x1290] ss:$12 sps:$4 sm:$0xff]   ;;  %v13148_v24 = vld [vmem:[%s18115_s1 + $0xcc8] ss:$12 sps:$4 sm:$0xff]  }
 0x1f5   :  { %8326 = vmatprep.subr.bf16.mxu0 %v13097_v12  ;;  %v13147_v12 = vld [vmem:[%s18115_s1 + $0x12ac] ss:$12 sps:$4 sm:$0xff]  }
 0x1f7   :  { %11837 = vmatpush3.bf16.msra.mxu1 %v13099_v14  ;;  %v13149_v14 = vld [vmem:[%s18115_s1 + $0xc08] ss:$12 sps:$4 sm:$0xff]  }
 0x1f8   :  { %8327 = vmatpush1.bf16.msra.mxu0 %v13095_v13  ;;  %11838 = vmatprep.subr.bf16.mxu1 %v13103_v21  ;;  %v13145_v13 = vld [vmem:[%s18115_s1 + $0x12a8] ss:$12 sps:$4 sm:$0xff]   ;;  %v13153_v21 = vld [vmem:[%s18115_s1 + $0xce0] ss:$12 sps:$4 sm:$0xff]  }
 0x1f9   :  { %8328 = vmatprep.subr.bf16.mxu0 %v13102_v20  ;;  %v13152_v20 = vld [vmem:[%s18115_s1 + $0x12c4] ss:$12 sps:$4 sm:$0xff]  }
 0x1fb   :  { %11839 = vmatpush3.bf16.msra.mxu1 %v13104_v22  ;;  %v13154_v22 = vld [vmem:[%s18115_s1 + $0xc20] ss:$12 sps:$4 sm:$0xff]  }
 0x1fc   :  { %8329 = vmatpush1.bf16.msra.mxu0 %v13100_v54  ;;  %11846 = vmatprep.subr.bf16.mxu1 %v13108_v27  ;;  %v13150_v54 = vld [vmem:[%s18115_s1 + $0x12c0] ss:$12 sps:$4 sm:$0xff]   ;;  %v13158_v27 = vld [vmem:[%s18115_s1 + $0xcf8] ss:$12 sps:$4 sm:$0xff]  }
 0x1fd   :  { %8330 = vmatprep.subr.bf16.mxu0 %v13107_v26  ;;  %v13157_v26 = vld [vmem:[%s18115_s1 + $0x12dc] ss:$12 sps:$4 sm:$0xff]  }
 0x1fe   :  { %9106 = vmatmul.mubr.bf16.vlgmr.msra.gmra.mrb[32].mxu1 %v14774_v11  ;;  %v13115_v11 = vld [vmem:[%s18115_s1 + $0x1218] ss:$12 sps:$4 sm:$0xff]  }
 0x1ff   :  { %11847 = vmatpush3.bf16.msra.mxu1 %v13109_v33  ;;  %9145 = vmatprep.mubr.bf16.mxu1 %v14790_v19  ;;  %v13123_v19 = vld [vmem:[%s18115_s1 + $0xb90] ss:$12 sps:$4 sm:$0xff]  }
 0x200   :  { %8331 = vmatpush1.bf16.msra.mxu0 %v13105_v58  ;;  %11848 = vmatprep.subr.bf16.mxu1 %v13113_v35  ;;  %v13159_v58 = vld [vmem:[%s18115_s1 + $0xc38] ss:$12 sps:$4 sm:$0xff]   ;;  %v13164_v33 = vld [vmem:[%s18115_s1 + $0xc50] ss:$12 sps:$4 sm:$0xff]   ;;  %v13168_v35 = vld [vmem:[%s18115_s1 + $0xd28] ss:$12 sps:$4 sm:$0xff]  }
 0x201   :  { %8341 = vmatprep.subr.bf16.mxu0 %v13112_v10  ;;  %v13167_v10 = vld [vmem:[%s18115_s1 + $0x130c] ss:$12 sps:$4 sm:$0xff]  }
 0x203   :  { %8333 = vmatmul.mubr.bf16.vlgmr.msra.gmra.mrb[0].mxu0 %v15836_v39  ;;  %11849 = vmatpush3.bf16.msra.mxu1 %v13114_v38  ;;  %v13172_v38 = vld [vmem:[%s18115_s1 + $0x1324] ss:$12 sps:$4 sm:$0xff]  }
 0x204   :  { %8342 = vmatpush1.bf16.msra.mxu0 %v13110_v37  ;;  %11850 = vmatprep.subr.bf16.mxu1 %v13118_v40  ;;  %v13165_v37 = vld [vmem:[%s18115_s1 + $0x1308] ss:$12 sps:$4 sm:$0xff]   ;;  %v15986_v40 = vpop.f32.mrb[0].mxu1 }
 0x205   :  { %8343 = vmatprep.subr.bf16.mxu0 %v13117_v42  ;;  %8373 = vmatprep.mubr.bf16.mxu0 %v15851_v49  ;;  %v13173_v42 = vld [vmem:[%s18115_s1 + $0xd40] ss:$12 sps:$4 sm:$0xff]  }
 0x207   :  { %11851 = vmatpush3.bf16.msra.mxu1 %v13119_v44  ;;  %v13174_v44 = vld [vmem:[%s18115_s1 + $0xc80] ss:$12 sps:$4 sm:$0xff]  }
 0x208   :  { %8344 = vmatpush1.bf16.msra.mxu0 %v13115_v11  ;;  %11852 = vmatprep.subr.bf16.mxu1 %v13123_v19  ;;  %v13170_v11 = vld [vmem:[%s18115_s1 + $0x1320] ss:$12 sps:$4 sm:$0xff]   ;;  %v15997_v19 = vpop.f32.mrb[1].mxu1 }
 0x209   :  { %8345 = vmatprep.subr.bf16.mxu0 %v13122_v48  ;;  %v13177_v48 = vld [vmem:[%s18115_s1 + $0x133c] ss:$12 sps:$4 sm:$0xff]  }
 0x20b   :  { %11853 = vmatpush3.bf16.msra.mxu1 %v13124_v17  ;;  %v8010_v17 = vpop.f32.mrb[2].mxu1 }
 0x20c   :  { %8346 = vmatpush1.bf16.msra.mxu0 %v13120_v47  ;;  %11854 = vmatprep.subr.bf16.mxu1 %v13128_v50  ;;  %v13178_v47 = vld [vmem:[%s18115_s1 + $0xd58] ss:$12 sps:$4 sm:$0xff]   ;;  %v8011_v50 = vpop.f32.mrb[3].mxu1  ;;  %v13225_v17 = vld [vmem:[%s18115_s1 + $0x1428] ss:$12 sps:$4 sm:$0xff]  }
 0x20d   :  { %8347 = vmatprep.subr.bf16.mxu0 %v13127_v61  ;;  %v13175_v61 = vld [vmem:[%s18115_s1 + $0x1338] ss:$12 sps:$4 sm:$0xff]  }
 0x20e   :  { %v13232_v50 = vld [vmem:[%s18115_s1 + $0x1444] ss:$12 sps:$4 sm:$0xff]  }
 0x20f   :  { %11855 = vmatpush3.bf16.msra.mxu1 %v13129_v51  ;;  %v13182_v51 = vld [vmem:[%s18115_s1 + $0x1354] ss:$12 sps:$4 sm:$0xff]  }
 0x210   :  { %8348 = vmatpush1.bf16.msra.mxu0 %v13125_v41  ;;  %11856 = vmatprep.subr.bf16.mxu1 %v13133_v57  ;;  %v13179_v41 = vld [vmem:[%s18115_s1 + $0xc98] ss:$12 sps:$4 sm:$0xff]   ;;  %v13180_v57 = vld [vmem:[%s18115_s1 + $0x1350] ss:$12 sps:$4 sm:$0xff]  }
 0x211   :  { %8349 = vmatprep.subr.bf16.mxu0 %v13132_v23  ;;  %v13183_v23 = vld [vmem:[%s18115_s1 + $0xd70] ss:$12 sps:$4 sm:$0xff]  }
 0x213   :  { %11857 = vmatpush3.bf16.msra.mxu1 %v13134_v59  ;;  %v13187_v59 = vld [vmem:[%s18115_s1 + $0x136c] ss:$12 sps:$4 sm:$0xff]  }
 0x214   :  { %8350 = vmatpush1.bf16.msra.mxu0 %v13130_v45  ;;  %11858 = vmatprep.subr.bf16.mxu1 %v13138_v56  ;;  %v13184_v45 = vld [vmem:[%s18115_s1 + $0xcb0] ss:$12 sps:$4 sm:$0xff]   ;;  %v13185_v56 = vld [vmem:[%s18115_s1 + $0x1368] ss:$12 sps:$4 sm:$0xff]  }
 0x215   :  { %8351 = vmatprep.subr.bf16.mxu0 %v13137_v0  ;;  %v13188_v0 = vld [vmem:[%s18115_s1 + $0xe48] ss:$12 sps:$4 sm:$0xff]  }
 0x217   :  { %11859 = vmatpush3.bf16.msra.mxu1 %v13139_v4  ;;  %v13189_v4 = vld [vmem:[%s18115_s1 + $0xd88] ss:$12 sps:$4 sm:$0xff]  }
 0x218   :  { %8352 = vmatpush1.bf16.msra.mxu0 %v13135_v1  ;;  %11860 = vmatprep.subr.bf16.mxu1 %v13143_v15  ;;  %v145_v1 = vrot.slane %v15815_v28, %v14286_v3  ;;  %v13193_v15 = vld [vmem:[%s18115_s1 + $0xe60] ss:$12 sps:$4 sm:$0xff]  }
 0x219   :  { %8353 = vmatprep.subr.bf16.mxu0 %v13142_v5  ;;  %v13192_v5 = vld [vmem:[%s18115_s1 + $0x1384] ss:$12 sps:$4 sm:$0xff]  }
 0x21b   :  { %11861 = vmatpush3.bf16.msra.mxu1 %v13144_v9  ;;  %v157_v9 = vrot.slane %v15815_v28, %v14301_v8  ;;  %v13198_v28 = vld [vmem:[%s18115_s1 + $0xe78] ss:$12 sps:$4 sm:$0xff]  }
 0x21c   :  { %8354 = vmatpush1.bf16.msra.mxu0 %v13140_v18  ;;  %11868 = vmatprep.subr.bf16.mxu1 %v13148_v24  ;;  %v13190_v18 = vld [vmem:[%s18115_s1 + $0x1380] ss:$12 sps:$4 sm:$0xff]  }
 0x21d   :  { %8355 = vmatprep.subr.bf16.mxu0 %v13147_v12  ;;  %v16046_v12 = vpack.c.bf16 %v145_v1, %v145_v1  ;;  %v13194_v24 = vld [vmem:[%s18115_s1 + $0xda0] ss:$12 sps:$4 sm:$0xff]   ;;  %v13244_v1 = vld [vmem:[%s18115_s1 + $0xf50] ss:$12 sps:$4 sm:$0xff]  }
 0x21e   :  { %9146 = vmatmul.mubr.bf16.vlgmr.msra.gmra.mrb[36].mxu1 %v14995_v55  ;;  %v13155_v55 = vld [vmem:[%s18115_s1 + $0x12d8] ss:$12 sps:$4 sm:$0xff]  }
 0x21f   :  { %11869 = vmatpush3.bf16.msra.mxu1 %v13149_v14  ;;  %9185 = vmatprep.mubr.bf16.mxu1 %v15003_v62  ;;  %v13160_v62 = vld [vmem:[%s18115_s1 + $0x12f0] ss:$12 sps:$4 sm:$0xff]   ;;  %v16061_v14 = vpack.c.bf16 %v157_v9, %v157_v9 }
 0x220   :  { %8356 = vmatpush1.bf16.msra.mxu0 %v13145_v13  ;;  %11870 = vmatprep.subr.bf16.mxu1 %v13153_v21  ;;  %v13197_v13 = vld [vmem:[%s18115_s1 + $0x139c] ss:$12 sps:$4 sm:$0xff]   ;;  %v13202_v21 = vld [vmem:[%s18115_s1 + $0x13b4] ss:$12 sps:$4 sm:$0xff]   ;;  %v13252_v9 = vld [vmem:[%s18115_s1 + $0x14a4] ss:$12 sps:$4 sm:$0xff]  }
 0x221   :  { %8357 = vmatprep.subr.bf16.mxu0 %v13152_v20  ;;  %v13199_v20 = vld [vmem:[%s18115_s1 + $0xdb8] ss:$12 sps:$4 sm:$0xff]  }
 0x223   :  { %11871 = vmatpush3.bf16.msra.mxu1 %v13154_v22  ;;  %v13204_v22 = vld [vmem:[%s18115_s1 + $0xdd0] ss:$12 sps:$4 sm:$0xff]  }
 0x224   :  { %8358 = vmatpush1.bf16.msra.mxu0 %v13150_v54  ;;  %11872 = vmatprep.subr.bf16.mxu1 %v13158_v27  ;;  %v13200_v54 = vld [vmem:[%s18115_s1 + $0x13b0] ss:$12 sps:$4 sm:$0xff]   ;;  %v13208_v27 = vld [vmem:[%s18115_s1 + $0xea8] ss:$12 sps:$4 sm:$0xff]  }
 0x225   :  { %8359 = vmatprep.subr.bf16.mxu0 %v13157_v26  ;;  %v13207_v26 = vld [vmem:[%s18115_s1 + $0x13cc] ss:$12 sps:$4 sm:$0xff]  }
 0x227   :  { %11873 = vmatpush3.bf16.msra.mxu1 %v13159_v58  ;;  %v13209_v58 = vld [vmem:[%s18115_s1 + $0xde8] ss:$12 sps:$4 sm:$0xff]  }
 0x228   :  { %8360 = vmatpush1.bf16.msra.mxu0 %v13155_v55  ;;  %11874 = vmatprep.subr.bf16.mxu1 %v13163_v32  ;;  %v13205_v55 = vld [vmem:[%s18115_s1 + $0x13c8] ss:$12 sps:$4 sm:$0xff]   ;;  %v13213_v32 = vld [vmem:[%s18115_s1 + $0xec0] ss:$12 sps:$4 sm:$0xff]  }
 0x229   :  { %8361 = vmatprep.subr.bf16.mxu0 %v13162_v31  ;;  %v13212_v31 = vld [vmem:[%s18115_s1 + $0x13e4] ss:$12 sps:$4 sm:$0xff]  }
 0x22b   :  { %11875 = vmatpush3.bf16.msra.mxu1 %v13164_v33  ;;  %v13214_v33 = vld [vmem:[%s18115_s1 + $0xe00] ss:$12 sps:$4 sm:$0xff]  }
 0x22c   :  { %8362 = vmatpush1.bf16.msra.mxu0 %v13160_v62  ;;  %11876 = vmatprep.subr.bf16.mxu1 %v13168_v35  ;;  %v13210_v62 = vld [vmem:[%s18115_s1 + $0x13e0] ss:$12 sps:$4 sm:$0xff]   ;;  %v13218_v35 = vld [vmem:[%s18115_s1 + $0xed8] ss:$12 sps:$4 sm:$0xff]  }
 0x22d   :  { %8363 = vmatprep.subr.bf16.mxu0 %v13167_v10  ;;  %v13217_v10 = vld [vmem:[%s18115_s1 + $0x13fc] ss:$12 sps:$4 sm:$0xff]  }
 0x22f   :  { %11877 = vmatpush3.bf16.msra.mxu1 %v13169_v16  ;;  %v13219_v16 = vld [vmem:[%s18115_s1 + $0xe18] ss:$12 sps:$4 sm:$0xff]  }
 0x230   :  { %8364 = vmatpush1.bf16.msra.mxu0 %v13165_v37  ;;  %11878 = vmatprep.subr.bf16.mxu1 %v13173_v42  ;;  %v13215_v37 = vld [vmem:[%s18115_s1 + $0x13f8] ss:$12 sps:$4 sm:$0xff]   ;;  %v13223_v42 = vld [vmem:[%s18115_s1 + $0xef0] ss:$12 sps:$4 sm:$0xff]  }
 0x231   :  { %8365 = vmatprep.subr.bf16.mxu0 %v13172_v38  ;;  %v13222_v38 = vld [vmem:[%s18115_s1 + $0x1414] ss:$12 sps:$4 sm:$0xff]  }
 0x233   :  { %11879 = vmatpush3.bf16.msra.mxu1 %v13174_v44  ;;  %v13224_v44 = vld [vmem:[%s18115_s1 + $0xe30] ss:$12 sps:$4 sm:$0xff]  }
 0x234   :  { %8366 = vmatpush1.bf16.msra.mxu0 %v13170_v11  ;;  %11880 = vmatprep.subr.bf16.mxu1 %v13178_v47  ;;  %v13220_v11 = vld [vmem:[%s18115_s1 + $0x1410] ss:$12 sps:$4 sm:$0xff]   ;;  %v13228_v47 = vld [vmem:[%s18115_s1 + $0xfc8] ss:$12 sps:$4 sm:$0xff]  }
 0x235   :  { %8367 = vmatprep.subr.bf16.mxu0 %v13177_v48  ;;  %v13227_v48 = vld [vmem:[%s18115_s1 + $0x142c] ss:$12 sps:$4 sm:$0xff]  }
 0x237   :  { %11881 = vmatpush3.bf16.msra.mxu1 %v13179_v41  ;;  %v13233_v41 = vld [vmem:[%s18115_s1 + $0xfe0] ss:$12 sps:$4 sm:$0xff]  }
 0x238   :  { %8368 = vmatpush1.bf16.msra.mxu0 %v13175_v61  ;;  %11882 = vmatprep.subr.bf16.mxu1 %v13183_v23  ;;  %v13229_v61 = vld [vmem:[%s18115_s1 + $0xf08] ss:$12 sps:$4 sm:$0xff]   ;;  %v13234_v23 = vld [vmem:[%s18115_s1 + $0xf20] ss:$12 sps:$4 sm:$0xff]  }
 0x239   :  { %8369 = vmatprep.subr.bf16.mxu0 %v13182_v51  ;;  %v13230_v51 = vld [vmem:[%s18115_s1 + $0x1440] ss:$12 sps:$4 sm:$0xff]  }
 0x23b   :  { %11883 = vmatpush3.bf16.msra.mxu1 %v13184_v45  ;;  %v13238_v45 = vld [vmem:[%s18115_s1 + $0xff8] ss:$12 sps:$4 sm:$0xff]  }
 0x23c   :  { %8370 = vmatpush1.bf16.msra.mxu0 %v13180_v57  ;;  %11890 = vmatprep.subr.bf16.mxu1 %v13188_v0  ;;  %v13237_v57 = vld [vmem:[%s18115_s1 + $0x145c] ss:$12 sps:$4 sm:$0xff]   ;;  %v13242_v0 = vld [vmem:[%s18115_s1 + $0x1474] ss:$12 sps:$4 sm:$0xff]  }
 0x23d   :  { %8371 = vmatprep.subr.bf16.mxu0 %v13187_v59  ;;  %v13239_v59 = vld [vmem:[%s18115_s1 + $0xf38] ss:$12 sps:$4 sm:$0xff]  }
 0x23e   :  { %9186 = vmatmul.mubr.bf16.vlgmr.msra.gmra.mrb[40].mxu1 %v15206_v53  ;;  %v13195_v53 = vld [vmem:[%s18115_s1 + $0x1398] ss:$12 sps:$4 sm:$0xff]  }
 0x23f   :  { %11891 = vmatpush3.bf16.msra.mxu1 %v13189_v4  ;;  %9225 = vmatprep.mubr.bf16.mxu1 %v15221_v63  ;;  %v13203_v63 = vld [vmem:[%s18115_s1 + $0xe90] ss:$12 sps:$4 sm:$0xff]   ;;  %v13247_v4 = vld [vmem:[%s18115_s1 + $0x148c] ss:$12 sps:$4 sm:$0xff]  }
 0x240   :  { %8372 = vmatpush1.bf16.msra.mxu0 %v13185_v56  ;;  %11892 = vmatprep.subr.bf16.mxu1 %v13193_v15  ;;  %v13243_v56 = vld [vmem:[%s18115_s1 + $0x1010] ss:$12 sps:$4 sm:$0xff]   ;;  %v13245_v15 = vld [vmem:[%s18115_s1 + $0x1488] ss:$12 sps:$4 sm:$0xff]  }
 0x241   :  { %8382 = vmatprep.subr.bf16.mxu0 %v13192_v5  ;;  %v13248_v5 = vld [vmem:[%s18115_s1 + $0x1028] ss:$12 sps:$4 sm:$0xff]  }
 0x243   :  { %8374 = vmatmul.mubr.bf16.vlgmr.msra.gmra.mrb[0].mxu0 %v16046_v12  ;;  %11893 = vmatpush3.bf16.msra.mxu1 %v13194_v24  ;;  %v13253_v24 = vld [vmem:[%s18115_s1 + $0x1040] ss:$12 sps:$4 sm:$0xff]  }
 0x244   :  { %8383 = vmatpush1.bf16.msra.mxu0 %v13190_v18  ;;  %11894 = vmatprep.subr.bf16.mxu1 %v13198_v28  ;;  %v13249_v18 = vld [vmem:[%s18115_s1 + $0xf68] ss:$12 sps:$4 sm:$0xff]   ;;  %v13254_v28 = vld [vmem:[%s18115_s1 + $0xf80] ss:$12 sps:$4 sm:$0xff]  }
 0x245   :  { %8384 = vmatprep.subr.bf16.mxu0 %v13197_v13  ;;  %8414 = vmatprep.mubr.bf16.mxu0 %v16061_v14  ;;  %v13250_v13 = vld [vmem:[%s18115_s1 + $0x14a0] ss:$12 sps:$4 sm:$0xff]  }
 0x247   :  { %11895 = vmatpush3.bf16.msra.mxu1 %v13199_v20  ;;  %v13258_v20 = vld [vmem:[%s18115_s1 + $0x1058] ss:$12 sps:$4 sm:$0xff]  }
 0x248   :  { %8385 = vmatpush1.bf16.msra.mxu0 %v13195_v53  ;;  %11896 = vmatprep.subr.bf16.mxu1 %v13203_v63  ;;  %v13257_v53 = vld [vmem:[%s18115_s1 + $0x14bc] ss:$12 sps:$4 sm:$0xff]   ;;  %v13259_v63 = vld [vmem:[%s18115_s1 + $0xf98] ss:$12 sps:$4 sm:$0xff]  }
 0x249   :  { %8386 = vmatprep.subr.bf16.mxu0 %v13202_v21  ;;  %v13255_v21 = vld [vmem:[%s18115_s1 + $0x14b8] ss:$12 sps:$4 sm:$0xff]  }
 0x24b   :  { %11897 = vmatpush3.bf16.msra.mxu1 %v13204_v22  ;;  %v13263_v22 = vld [vmem:[%s18115_s1 + $0x1070] ss:$12 sps:$4 sm:$0xff]  }
 0x24c   :  { %8387 = vmatpush1.bf16.msra.mxu0 %v13200_v54  ;;  %11898 = vmatprep.subr.bf16.mxu1 %v13208_v27  ;;  %v13262_v54 = vld [vmem:[%s18115_s1 + $0x14d4] ss:$12 sps:$4 sm:$0xff]   ;;  %v13264_v27 = vld [vmem:[%s18115_s1 + $0xfb0] ss:$12 sps:$4 sm:$0xff]  }
 0x24d   :  { %8388 = vmatprep.subr.bf16.mxu0 %v13207_v26  ;;  %v13260_v26 = vld [vmem:[%s18115_s1 + $0x14d0] ss:$12 sps:$4 sm:$0xff]  }
 0x24f   :  { %11899 = vmatpush3.bf16.msra.mxu1 %v13209_v58  ;;  %v13268_v58 = vld [vmem:[%s18115_s1 + $0x1148] ss:$12 sps:$4 sm:$0xff]  }
 0x250   :  { %8389 = vmatpush1.bf16.msra.mxu0 %v13205_v55  ;;  %11900 = vmatprep.subr.bf16.mxu1 %v13213_v32  ;;  %v13267_v55 = vld [vmem:[%s18115_s1 + $0x14ec] ss:$12 sps:$4 sm:$0xff]  }
 0x251   :  { %8390 = vmatprep.subr.bf16.mxu0 %v13212_v31  ;;  %v13265_v31 = vld [vmem:[%s18115_s1 + $0x14e8] ss:$12 sps:$4 sm:$0xff]   ;;  %v16238_v32 = vld [vmem:[%s18114_s0 + $0x18] sm:$0xff] }
 0x253   :  { %11901 = vmatpush3.bf16.msra.mxu1 %v13214_v33  ;;  %v13269_v33 = vld [vmem:[%s18115_s1 + $0x1088] ss:$12 sps:$4 sm:$0xff]  }
 0x254   :  { %8391 = vmatpush1.bf16.msra.mxu0 %v13210_v62  ;;  %11902 = vmatprep.subr.bf16.mxu1 %v13218_v35  ;;  %v153_v62 = vrot.slane %v16238_v32, %v14504_v25  ;;  %v13273_v35 = vld [vmem:[%s18115_s1 + $0x1160] ss:$12 sps:$4 sm:$0xff]  }
 0x255   :  { %8392 = vmatprep.subr.bf16.mxu0 %v13217_v10  ;;  %v13272_v10 = vld [vmem:[%s18115_s1 + $0x1504] ss:$12 sps:$4 sm:$0xff]  }
 0x257   :  { %11903 = vmatpush3.bf16.msra.mxu1 %v13219_v16  ;;  %v165_v16 = vrot.slane %v16238_v32, %v14519_v30 }
 0x258   :  { %8393 = vmatpush1.bf16.msra.mxu0 %v13215_v37  ;;  %11904 = vmatprep.subr.bf16.mxu1 %v13223_v42  ;;  %v13270_v37 = vld [vmem:[%s18115_s1 + $0x1500] ss:$12 sps:$4 sm:$0xff]  }
 0x259   :  { %8394 = vmatprep.subr.bf16.mxu0 %v13222_v38  ;;  %v16257_v38 = vpack.c.bf16 %v153_v62, %v153_v62  ;;  %v13274_v42 = vld [vmem:[%s18115_s1 + $0x10a0] ss:$12 sps:$4 sm:$0xff]  }
 0x25a   :  { %v13327_v62 = vld [vmem:[%s18115_s1 + $0x160c] ss:$12 sps:$4 sm:$0xff]  }
 0x25b   :  { %11905 = vmatpush3.bf16.msra.mxu1 %v13224_v44  ;;  %v13278_v44 = vld [vmem:[%s18115_s1 + $0x1178] ss:$12 sps:$4 sm:$0xff]  }
 0x25c   :  { %8395 = vmatpush1.bf16.msra.mxu0 %v13220_v11  ;;  %11912 = vmatprep.subr.bf16.mxu1 %v13228_v47  ;;  %v13277_v11 = vld [vmem:[%s18115_s1 + $0x151c] ss:$12 sps:$4 sm:$0xff]   ;;  %v13279_v47 = vld [vmem:[%s18115_s1 + $0x10b8] ss:$12 sps:$4 sm:$0xff]  }
 0x25d   :  { %8396 = vmatprep.subr.bf16.mxu0 %v13227_v48  ;;  %v16272_v48 = vpack.c.bf16 %v165_v16, %v165_v16  ;;  %v13333_v16 = vld [vmem:[%s18115_s1 + $0x1340] ss:$12 sps:$4 sm:$0xff]  }
 0x25e   :  { %9226 = vmatmul.mubr.bf16.vlgmr.msra.gmra.mrb[44].mxu1 %v15417_v29  ;;  %v13235_v29 = vld [vmem:[%s18115_s1 + $0x1458] ss:$12 sps:$4 sm:$0xff]  }
 0x25f   :  { %11913 = vmatpush3.bf16.msra.mxu1 %v13229_v61  ;;  %9265 = vmatprep.mubr.bf16.mxu1 %v15432_v34  ;;  %v13240_v34 = vld [vmem:[%s18115_s1 + $0x1470] ss:$12 sps:$4 sm:$0xff]  }
 0x260   :  { %8397 = vmatpush1.bf16.msra.mxu0 %v13225_v17  ;;  %11914 = vmatprep.subr.bf16.mxu1 %v13233_v41  ;;  %v13282_v17 = vld [vmem:[%s18115_s1 + $0x1534] ss:$12 sps:$4 sm:$0xff]   ;;  %v13280_v61 = vld [vmem:[%s18115_s1 + $0x1530] ss:$12 sps:$4 sm:$0xff]   ;;  %v13287_v41 = vld [vmem:[%s18115_s1 + $0x154c] ss:$12 sps:$4 sm:$0xff]  }
 0x261   :  { %8398 = vmatprep.subr.bf16.mxu0 %v13232_v50  ;;  %v13284_v50 = vld [vmem:[%s18115_s1 + $0x10d0] ss:$12 sps:$4 sm:$0xff]  }
 0x263   :  { %11915 = vmatpush3.bf16.msra.mxu1 %v13234_v23  ;;  %v13285_v23 = vld [vmem:[%s18115_s1 + $0x1548] ss:$12 sps:$4 sm:$0xff]  }
 0x264   :  { %8399 = vmatpush1.bf16.msra.mxu0 %v13230_v51  ;;  %11916 = vmatprep.subr.bf16.mxu1 %v13238_v45  ;;  %v13288_v51 = vld [vmem:[%s18115_s1 + $0x11a8] ss:$12 sps:$4 sm:$0xff]   ;;  %v13292_v45 = vld [vmem:[%s18115_s1 + $0x1564] ss:$12 sps:$4 sm:$0xff]  }
 0x265   :  { %8400 = vmatprep.subr.bf16.mxu0 %v13237_v57  ;;  %v13289_v57 = vld [vmem:[%s18115_s1 + $0x10e8] ss:$12 sps:$4 sm:$0xff]  }
 0x267   :  { %11917 = vmatpush3.bf16.msra.mxu1 %v13239_v59  ;;  %v13290_v59 = vld [vmem:[%s18115_s1 + $0x1560] ss:$12 sps:$4 sm:$0xff]  }
 0x268   :  { %8401 = vmatpush1.bf16.msra.mxu0 %v13235_v29  ;;  %11918 = vmatprep.subr.bf16.mxu1 %v13243_v56  ;;  %v13293_v29 = vld [vmem:[%s18115_s1 + $0x11c0] ss:$12 sps:$4 sm:$0xff]   ;;  %v13297_v56 = vld [vmem:[%s18115_s1 + $0x157c] ss:$12 sps:$4 sm:$0xff]  }
 0x269   :  { %8402 = vmatprep.subr.bf16.mxu0 %v13242_v0  ;;  %v13294_v0 = vld [vmem:[%s18115_s1 + $0x1100] ss:$12 sps:$4 sm:$0xff]  }
 0x26b   :  { %11919 = vmatpush3.bf16.msra.mxu1 %v13244_v1  ;;  %v13295_v1 = vld [vmem:[%s18115_s1 + $0x1578] ss:$12 sps:$4 sm:$0xff]  }
 0x26c   :  { %8403 = vmatpush1.bf16.msra.mxu0 %v13240_v34  ;;  %11920 = vmatprep.subr.bf16.mxu1 %v13248_v5  ;;  %v13298_v34 = vld [vmem:[%s18115_s1 + $0x11d8] ss:$12 sps:$4 sm:$0xff]   ;;  %v13302_v5 = vld [vmem:[%s18115_s1 + $0x1594] ss:$12 sps:$4 sm:$0xff]  }
 0x26d   :  { %8404 = vmatprep.subr.bf16.mxu0 %v13247_v4  ;;  %v13299_v4 = vld [vmem:[%s18115_s1 + $0x1118] ss:$12 sps:$4 sm:$0xff]  }
 0x26f   :  { %11921 = vmatpush3.bf16.msra.mxu1 %v13249_v18  ;;  %v13300_v18 = vld [vmem:[%s18115_s1 + $0x1590] ss:$12 sps:$4 sm:$0xff]  }
 0x270   :  { %8405 = vmatpush1.bf16.msra.mxu0 %v13245_v15  ;;  %11922 = vmatprep.subr.bf16.mxu1 %v13253_v24  ;;  %v13303_v15 = vld [vmem:[%s18115_s1 + $0x11f0] ss:$12 sps:$4 sm:$0xff]   ;;  %v13307_v24 = vld [vmem:[%s18115_s1 + $0x15ac] ss:$12 sps:$4 sm:$0xff]  }
 0x271   :  { %8406 = vmatprep.subr.bf16.mxu0 %v13252_v9  ;;  %v13304_v9 = vld [vmem:[%s18115_s1 + $0x1130] ss:$12 sps:$4 sm:$0xff]  }
 0x273   :  { %11923 = vmatpush3.bf16.msra.mxu1 %v13254_v28  ;;  %v13305_v28 = vld [vmem:[%s18115_s1 + $0x15a8] ss:$12 sps:$4 sm:$0xff]  }
 0x274   :  { %8407 = vmatpush1.bf16.msra.mxu0 %v13250_v13  ;;  %11924 = vmatprep.subr.bf16.mxu1 %v13258_v20  ;;  %v13308_v13 = vld [vmem:[%s18115_s1 + $0x12c8] ss:$12 sps:$4 sm:$0xff]   ;;  %v13312_v20 = vld [vmem:[%s18115_s1 + $0x15c4] ss:$12 sps:$4 sm:$0xff]  }
 0x275   :  { %8408 = vmatprep.subr.bf16.mxu0 %v13257_v53  ;;  %v13309_v53 = vld [vmem:[%s18115_s1 + $0x1208] ss:$12 sps:$4 sm:$0xff]  }
 0x277   :  { %11925 = vmatpush3.bf16.msra.mxu1 %v13259_v63  ;;  %v13310_v63 = vld [vmem:[%s18115_s1 + $0x15c0] ss:$12 sps:$4 sm:$0xff]  }
 0x278   :  { %8409 = vmatpush1.bf16.msra.mxu0 %v13255_v21  ;;  %11926 = vmatprep.subr.bf16.mxu1 %v13263_v22  ;;  %v13313_v21 = vld [vmem:[%s18115_s1 + $0x12e0] ss:$12 sps:$4 sm:$0xff]   ;;  %v13317_v22 = vld [vmem:[%s18115_s1 + $0x15dc] ss:$12 sps:$4 sm:$0xff]  }
 0x279   :  { %8410 = vmatprep.subr.bf16.mxu0 %v13262_v54  ;;  %v13314_v54 = vld [vmem:[%s18115_s1 + $0x1220] ss:$12 sps:$4 sm:$0xff]  }
 0x27b   :  { %11927 = vmatpush3.bf16.msra.mxu1 %v13264_v27  ;;  %v13319_v27 = vld [vmem:[%s18115_s1 + $0x1238] ss:$12 sps:$4 sm:$0xff]  }
 0x27c   :  { %8411 = vmatpush1.bf16.msra.mxu0 %v13260_v26  ;;  %11934 = vmatprep.subr.bf16.mxu1 %v13268_v58  ;;  %v13318_v26 = vld [vmem:[%s18115_s1 + $0x12f8] ss:$12 sps:$4 sm:$0xff]   ;;  %v13323_v58 = vld [vmem:[%s18115_s1 + $0x1310] ss:$12 sps:$4 sm:$0xff]  }
 0x27d   :  { %8412 = vmatprep.subr.bf16.mxu0 %v13267_v55  ;;  %v13322_v55 = vld [vmem:[%s18115_s1 + $0x15f4] ss:$12 sps:$4 sm:$0xff]  }
 0x27e   :  { %9266 = vmatmul.mubr.bf16.vlgmr.msra.gmra.mrb[48].mxu1 %v15623_v2  ;;  %v13275_v2 = vld [vmem:[%s18115_s1 + $0x1518] ss:$12 sps:$4 sm:$0xff]  }
 0x27f   :  { %11935 = vmatpush3.bf16.msra.mxu1 %v13269_v33  ;;  %9305 = vmatprep.mubr.bf16.mxu1 %v15638_v7  ;;  %v13283_v7 = vld [vmem:[%s18115_s1 + $0x1190] ss:$12 sps:$4 sm:$0xff]   ;;  %v13328_v33 = vld [vmem:[%s18115_s1 + $0x1328] ss:$12 sps:$4 sm:$0xff]  }
 0x280   :  { %8413 = vmatpush1.bf16.msra.mxu0 %v13265_v31  ;;  %11936 = vmatprep.subr.bf16.mxu1 %v13273_v35  ;;  %v13324_v31 = vld [vmem:[%s18115_s1 + $0x1250] ss:$12 sps:$4 sm:$0xff]   ;;  %v13329_v35 = vld [vmem:[%s18115_s1 + $0x1268] ss:$12 sps:$4 sm:$0xff]  }
 0x281   :  { %8423 = vmatprep.subr.bf16.mxu0 %v13272_v10  ;;  %v13325_v10 = vld [vmem:[%s18115_s1 + $0x1608] ss:$12 sps:$4 sm:$0xff]  }
 0x283   :  { %8415 = vmatmul.mubr.bf16.vlgmr.msra.gmra.mrb[0].mxu0 %v16257_v38  ;;  %11937 = vmatpush3.bf16.msra.mxu1 %v13274_v42  ;;  %v13330_v42 = vld [vmem:[%s18115_s1 + $0x1620] ss:$12 sps:$4 sm:$0xff]  }
 0x284   :  { %8424 = vmatpush1.bf16.msra.mxu0 %v13270_v37  ;;  %11938 = vmatprep.subr.bf16.mxu1 %v13278_v44  ;;  %v13332_v37 = vld [vmem:[%s18115_s1 + $0x1624] ss:$12 sps:$4 sm:$0xff]   ;;  %v13337_v44 = vld [vmem:[%s18115_s1 + $0x163c] ss:$12 sps:$4 sm:$0xff]  }
 0x285   :  { %8425 = vmatprep.subr.bf16.mxu0 %v13277_v11  ;;  %8455 = vmatprep.mubr.bf16.mxu0 %v16272_v48  ;;  %v13334_v11 = vld [vmem:[%s18115_s1 + $0x1280] ss:$12 sps:$4 sm:$0xff]  }
 0x287   :  { %11939 = vmatpush3.bf16.msra.mxu1 %v13279_v47  ;;  %v13335_v47 = vld [vmem:[%s18115_s1 + $0x1638] ss:$12 sps:$4 sm:$0xff]  }
 0x288   :  { %8426 = vmatpush1.bf16.msra.mxu0 %v13275_v2  ;;  %11940 = vmatprep.subr.bf16.mxu1 %v13283_v7  ;;  %v13338_v2 = vld [vmem:[%s18115_s1 + $0x1358] ss:$12 sps:$4 sm:$0xff]   ;;  %v13342_v7 = vld [vmem:[%s18115_s1 + $0x1654] ss:$12 sps:$4 sm:$0xff]  }
 0x289   :  { %8427 = vmatprep.subr.bf16.mxu0 %v13282_v17  ;;  %v13339_v17 = vld [vmem:[%s18115_s1 + $0x1298] ss:$12 sps:$4 sm:$0xff]  }
 0x28b   :  { %11941 = vmatpush3.bf16.msra.mxu1 %v13284_v50  ;;  %v13340_v50 = vld [vmem:[%s18115_s1 + $0x1650] ss:$12 sps:$4 sm:$0xff]  }
 0x28c   :  { %8428 = vmatpush1.bf16.msra.mxu0 %v13280_v61  ;;  %11942 = vmatprep.subr.bf16.mxu1 %v13288_v51  ;;  %v13343_v61 = vld [vmem:[%s18115_s1 + $0x1370] ss:$12 sps:$4 sm:$0xff]   ;;  %v13347_v51 = vld [vmem:[%s18115_s1 + $0x166c] ss:$12 sps:$4 sm:$0xff]  }
 0x28d   :  { %8429 = vmatprep.subr.bf16.mxu0 %v13287_v41  ;;  %v13344_v41 = vld [vmem:[%s18115_s1 + $0x12b0] ss:$12 sps:$4 sm:$0xff]  }
 0x28f   :  { %11943 = vmatpush3.bf16.msra.mxu1 %v13289_v57  ;;  %v13345_v57 = vld [vmem:[%s18115_s1 + $0x1668] ss:$12 sps:$4 sm:$0xff]  }
 0x290   :  { %8430 = vmatpush1.bf16.msra.mxu0 %v13285_v23  ;;  %11944 = vmatprep.subr.bf16.mxu1 %v13293_v29  ;;  %v13348_v23 = vld [vmem:[%s18115_s1 + $0x1448] ss:$12 sps:$4 sm:$0xff]  }
 0x291   :  { %8431 = vmatprep.subr.bf16.mxu0 %v13292_v45  ;;  %v161_v45 = vrot.slane %v16238_v32, %v14722_v52  ;;  %v13349_v29 = vld [vmem:[%s18115_s1 + $0x1388] ss:$12 sps:$4 sm:$0xff]  }
 0x293   :  { %11945 = vmatpush3.bf16.msra.mxu1 %v13294_v0  ;;  %v13353_v0 = vld [vmem:[%s18115_s1 + $0x1460] ss:$12 sps:$4 sm:$0xff]  }
 0x294   :  { %8432 = vmatpush1.bf16.msra.mxu0 %v13290_v59  ;;  %11946 = vmatprep.subr.bf16.mxu1 %v13298_v34  ;;  %v13352_v59 = vld [vmem:[%s18115_s1 + $0x1684] ss:$12 sps:$4 sm:$0xff]   ;;  %v173_v34 = vrot.slane %v16238_v32, %v14737_v60 }
 0x295   :  { %8433 = vmatprep.subr.bf16.mxu0 %v13297_v56  ;;  %v13350_v56 = vld [vmem:[%s18115_s1 + $0x1680] ss:$12 sps:$4 sm:$0xff]   ;;  %v13358_v32 = vld [vmem:[%s18115_s1 + $0x1478] ss:$12 sps:$4 sm:$0xff]  }
 0x297   :  { %11947 = vmatpush3.bf16.msra.mxu1 %v13299_v4  ;;  %v13354_v4 = vld [vmem:[%s18115_s1 + $0x13a0] ss:$12 sps:$4 sm:$0xff]  }
 0x298   :  { %8434 = vmatpush1.bf16.msra.mxu0 %v13295_v1  ;;  %11948 = vmatprep.subr.bf16.mxu1 %v13303_v15  ;;  %v16463_v1 = vpack.c.bf16 %v161_v45, %v161_v45  ;;  %v16478_v15 = vpack.c.bf16 %v173_v34, %v173_v34  ;;  %v13409_v45 = vld [vmem:[%s18115_s1 + $0x1568] ss:$12 sps:$4 sm:$0xff]  }
 0x299   :  { %8435 = vmatprep.subr.bf16.mxu0 %v13302_v5  ;;  %v13357_v5 = vld [vmem:[%s18115_s1 + $0x169c] ss:$12 sps:$4 sm:$0xff]  }
 0x29a   :  { %v13417_v34 = vld [vmem:[%s18115_s1 + $0x17bc] ss:$12 sps:$4 sm:$0xff]  }
 0x29b   :  { %11949 = vmatpush3.bf16.msra.mxu1 %v13304_v9  ;;  %v13362_v9 = vld [vmem:[%s18115_s1 + $0x16b4] ss:$12 sps:$4 sm:$0xff]  }
 0x29c   :  { %8436 = vmatpush1.bf16.msra.mxu0 %v13300_v18  ;;  %11956 = vmatprep.subr.bf16.mxu1 %v13308_v13  ;;  %v13359_v18 = vld [vmem:[%s18115_s1 + $0x13b8] ss:$12 sps:$4 sm:$0xff]   ;;  %v13364_v13 = vld [vmem:[%s18115_s1 + $0x13d0] ss:$12 sps:$4 sm:$0xff]  }
 0x29d   :  { %8437 = vmatprep.subr.bf16.mxu0 %v13307_v24  ;;  %v13360_v24 = vld [vmem:[%s18115_s1 + $0x16b0] ss:$12 sps:$4 sm:$0xff]  }
 0x29e   :  { %9306 = vmatmul.mubr.bf16.vlgmr.msra.gmra.mrb[52].mxu1 %v15836_v39  ;;  %v13315_v39 = vld [vmem:[%s18115_s1 + $0x15d8] ss:$12 sps:$4 sm:$0xff]  }
 0x29f   :  { %11957 = vmatpush3.bf16.msra.mxu1 %v13309_v53  ;;  %9345 = vmatprep.mubr.bf16.mxu1 %v15851_v49  ;;  %v13320_v49 = vld [vmem:[%s18115_s1 + $0x15f0] ss:$12 sps:$4 sm:$0xff]   ;;  %v13368_v53 = vld [vmem:[%s18115_s1 + $0x14a8] ss:$12 sps:$4 sm:$0xff]  }
 0x2a0   :  { %8438 = vmatpush1.bf16.msra.mxu0 %v13305_v28  ;;  %11958 = vmatprep.subr.bf16.mxu1 %v13313_v21  ;;  %v13367_v28 = vld [vmem:[%s18115_s1 + $0x16cc] ss:$12 sps:$4 sm:$0xff]   ;;  %v13369_v21 = vld [vmem:[%s18115_s1 + $0x13e8] ss:$12 sps:$4 sm:$0xff]  }
 0x2a1   :  { %8439 = vmatprep.subr.bf16.mxu0 %v13312_v20  ;;  %v13365_v20 = vld [vmem:[%s18115_s1 + $0x16c8] ss:$12 sps:$4 sm:$0xff]  }
 0x2a3   :  { %11959 = vmatpush3.bf16.msra.mxu1 %v13314_v54  ;;  %v13373_v54 = vld [vmem:[%s18115_s1 + $0x14c0] ss:$12 sps:$4 sm:$0xff]  }
 0x2a4   :  { %8440 = vmatpush1.bf16.msra.mxu0 %v13310_v63  ;;  %11960 = vmatprep.subr.bf16.mxu1 %v13318_v26  ;;  %v13372_v63 = vld [vmem:[%s18115_s1 + $0x16e4] ss:$12 sps:$4 sm:$0xff]   ;;  %v13374_v26 = vld [vmem:[%s18115_s1 + $0x1400] ss:$12 sps:$4 sm:$0xff]  }
 0x2a5   :  { %8441 = vmatprep.subr.bf16.mxu0 %v13317_v22  ;;  %v13370_v22 = vld [vmem:[%s18115_s1 + $0x16e0] ss:$12 sps:$4 sm:$0xff]  }
 0x2a7   :  { %11961 = vmatpush3.bf16.msra.mxu1 %v13319_v27  ;;  %v13378_v27 = vld [vmem:[%s18115_s1 + $0x14d8] ss:$12 sps:$4 sm:$0xff]  }
 0x2a8   :  { %8442 = vmatpush1.bf16.msra.mxu0 %v13315_v39  ;;  %11962 = vmatprep.subr.bf16.mxu1 %v13323_v58  ;;  %v13377_v39 = vld [vmem:[%s18115_s1 + $0x16fc] ss:$12 sps:$4 sm:$0xff]   ;;  %v13379_v58 = vld [vmem:[%s18115_s1 + $0x1418] ss:$12 sps:$4 sm:$0xff]  }
 0x2a9   :  { %8443 = vmatprep.subr.bf16.mxu0 %v13322_v55  ;;  %v13375_v55 = vld [vmem:[%s18115_s1 + $0x16f8] ss:$12 sps:$4 sm:$0xff]  }
 0x2ab   :  { %11963 = vmatpush3.bf16.msra.mxu1 %v13324_v31  ;;  %v13383_v31 = vld [vmem:[%s18115_s1 + $0x14f0] ss:$12 sps:$4 sm:$0xff]  }
 0x2ac   :  { %8444 = vmatpush1.bf16.msra.mxu0 %v13320_v49  ;;  %11964 = vmatprep.subr.bf16.mxu1 %v13328_v33  ;;  %v13382_v49 = vld [vmem:[%s18115_s1 + $0x1714] ss:$12 sps:$4 sm:$0xff]   ;;  %v13384_v33 = vld [vmem:[%s18115_s1 + $0x1430] ss:$12 sps:$4 sm:$0xff]  }
 0x2ad   :  { %8445 = vmatprep.subr.bf16.mxu0 %v13327_v62  ;;  %v13380_v62 = vld [vmem:[%s18115_s1 + $0x1710] ss:$12 sps:$4 sm:$0xff]  }
 0x2af   :  { %11965 = vmatpush3.bf16.msra.mxu1 %v13329_v35  ;;  %v13388_v35 = vld [vmem:[%s18115_s1 + $0x15c8] ss:$12 sps:$4 sm:$0xff]  }
 0x2b0   :  { %8446 = vmatpush1.bf16.msra.mxu0 %v13325_v10  ;;  %11966 = vmatprep.subr.bf16.mxu1 %v13333_v16  ;;  %v13387_v10 = vld [vmem:[%s18115_s1 + $0x172c] ss:$12 sps:$4 sm:$0xff]   ;;  %v13389_v16 = vld [vmem:[%s18115_s1 + $0x1508] ss:$12 sps:$4 sm:$0xff]  }
 0x2b1   :  { %8447 = vmatprep.subr.bf16.mxu0 %v13332_v37  ;;  %v13385_v37 = vld [vmem:[%s18115_s1 + $0x1728] ss:$12 sps:$4 sm:$0xff]  }
 0x2b3   :  { %11967 = vmatpush3.bf16.msra.mxu1 %v13334_v11  ;;  %v13393_v11 = vld [vmem:[%s18115_s1 + $0x15e0] ss:$12 sps:$4 sm:$0xff]  }
 0x2b4   :  { %8448 = vmatpush1.bf16.msra.mxu0 %v13330_v42  ;;  %11968 = vmatprep.subr.bf16.mxu1 %v13338_v2  ;;  %v13392_v42 = vld [vmem:[%s18115_s1 + $0x1744] ss:$12 sps:$4 sm:$0xff]   ;;  %v13394_v2 = vld [vmem:[%s18115_s1 + $0x1520] ss:$12 sps:$4 sm:$0xff]  }
 0x2b5   :  { %8449 = vmatprep.subr.bf16.mxu0 %v13337_v44  ;;  %v13390_v44 = vld [vmem:[%s18115_s1 + $0x1740] ss:$12 sps:$4 sm:$0xff]  }
 0x2b7   :  { %11969 = vmatpush3.bf16.msra.mxu1 %v13339_v17  ;;  %v13398_v17 = vld [vmem:[%s18115_s1 + $0x15f8] ss:$12 sps:$4 sm:$0xff]  }
 0x2b8   :  { %8450 = vmatpush1.bf16.msra.mxu0 %v13335_v47  ;;  %11970 = vmatprep.subr.bf16.mxu1 %v13343_v61  ;;  %v13397_v47 = vld [vmem:[%s18115_s1 + $0x175c] ss:$12 sps:$4 sm:$0xff]   ;;  %v13402_v61 = vld [vmem:[%s18115_s1 + $0x1774] ss:$12 sps:$4 sm:$0xff]  }
 0x2b9   :  { %8451 = vmatprep.subr.bf16.mxu0 %v13342_v7  ;;  %v13399_v7 = vld [vmem:[%s18115_s1 + $0x1538] ss:$12 sps:$4 sm:$0xff]  }
 0x2bb   :  { %11971 = vmatpush3.bf16.msra.mxu1 %v13344_v41  ;;  %v13404_v41 = vld [vmem:[%s18115_s1 + $0x1550] ss:$12 sps:$4 sm:$0xff]  }
 0x2bc   :  { %8452 = vmatpush1.bf16.msra.mxu0 %v13340_v50  ;;  %11978 = vmatprep.subr.bf16.mxu1 %v13348_v23  ;;  %v13403_v50 = vld [vmem:[%s18115_s1 + $0x1610] ss:$12 sps:$4 sm:$0xff]   ;;  %v13408_v23 = vld [vmem:[%s18115_s1 + $0x1628] ss:$12 sps:$4 sm:$0xff]  }
 0x2bd   :  { %8453 = vmatprep.subr.bf16.mxu0 %v13347_v51  ;;  %v13407_v51 = vld [vmem:[%s18115_s1 + $0x178c] ss:$12 sps:$4 sm:$0xff]  }
 0x2be   :  { %9346 = vmatmul.mubr.bf16.vlgmr.msra.gmra.mrb[56].mxu1 %v16046_v12  ;;  %v13355_v12 = vld [vmem:[%s18115_s1 + $0x1698] ss:$12 sps:$4 sm:$0xff]  }
 0x2bf   :  { %11979 = vmatpush3.bf16.msra.mxu1 %v13349_v29  ;;  %9385 = vmatprep.mubr.bf16.mxu1 %v16061_v14  ;;  %v13363_v14 = vld [vmem:[%s18115_s1 + $0x1490] ss:$12 sps:$4 sm:$0xff]  }
 0x2c0   :  { %8454 = vmatpush1.bf16.msra.mxu0 %v13345_v57  ;;  %11980 = vmatprep.subr.bf16.mxu1 %v13353_v0  ;;  %v13405_v57 = vld [vmem:[%s18115_s1 + $0x1788] ss:$12 sps:$4 sm:$0xff]   ;;  %v13412_v29 = vld [vmem:[%s18115_s1 + $0x17a4] ss:$12 sps:$4 sm:$0xff]   ;;  %v13410_v0 = vld [vmem:[%s18115_s1 + $0x17a0] ss:$12 sps:$4 sm:$0xff]  }
 0x2c1   :  { %8464 = vmatprep.subr.bf16.mxu0 %v13352_v59  ;;  %v13413_v59 = vld [vmem:[%s18115_s1 + $0x1640] ss:$12 sps:$4 sm:$0xff]  }
 0x2c3   :  { %8456 = vmatmul.mubr.bf16.vlgmr.msra.gmra.mrb[0].mxu0 %v16463_v1  ;;  %11981 = vmatpush3.bf16.msra.mxu1 %v13354_v4  ;;  %v13418_v4 = vld [vmem:[%s18115_s1 + $0x1658] ss:$12 sps:$4 sm:$0xff]  }
 0x2c4   :  { %8465 = vmatpush1.bf16.msra.mxu0 %v13350_v56  ;;  %11982 = vmatprep.subr.bf16.mxu1 %v13358_v32  ;;  %v13414_v56 = vld [vmem:[%s18115_s1 + $0x1580] ss:$12 sps:$4 sm:$0xff]   ;;  %v13419_v32 = vld [vmem:[%s18115_s1 + $0x1598] ss:$12 sps:$4 sm:$0xff]  }
 0x2c5   :  { %8466 = vmatprep.subr.bf16.mxu0 %v13357_v5  ;;  %8496 = vmatprep.mubr.bf16.mxu0 %v16478_v15  ;;  %v13415_v5 = vld [vmem:[%s18115_s1 + $0x17b8] ss:$12 sps:$4 sm:$0xff]  }
 0x2c7   :  { %11983 = vmatpush3.bf16.msra.mxu1 %v13359_v18  ;;  %v13423_v18 = vld [vmem:[%s18115_s1 + $0x1670] ss:$12 sps:$4 sm:$0xff]  }
 0x2c8   :  { %8467 = vmatpush1.bf16.msra.mxu0 %v13355_v12  ;;  %11984 = vmatprep.subr.bf16.mxu1 %v13363_v14  ;;  %v13422_v12 = vld [vmem:[%s18115_s1 + $0x17d4] ss:$12 sps:$4 sm:$0xff]   ;;  %v13424_v14 = vld [vmem:[%s18115_s1 + $0x15b0] ss:$12 sps:$4 sm:$0xff]  }
 0x2c9   :  { %8468 = vmatprep.subr.bf16.mxu0 %v13362_v9  ;;  %v13420_v9 = vld [vmem:[%s18115_s1 + $0x17d0] ss:$12 sps:$4 sm:$0xff]  }
 0x2cb   :  { %11985 = vmatpush3.bf16.msra.mxu1 %v13364_v13  ;;  %v13428_v13 = vld [vmem:[%s18115_s1 + $0x1748] ss:$12 sps:$4 sm:$0xff]  }
 0x2cc   :  { %8469 = vmatpush1.bf16.msra.mxu0 %v13360_v24  ;;  %11986 = vmatprep.subr.bf16.mxu1 %v13368_v53  ;;  %v13427_v24 = vld [vmem:[%s18115_s1 + $0x17ec] ss:$12 sps:$4 sm:$0xff]   ;;  %v13429_v53 = vld [vmem:[%s18115_s1 + $0x1688] ss:$12 sps:$4 sm:$0xff]  }
 0x2cd   :  { %8470 = vmatprep.subr.bf16.mxu0 %v13367_v28  ;;  %v13425_v28 = vld [vmem:[%s18115_s1 + $0x17e8] ss:$12 sps:$4 sm:$0xff]  }
 0x2cf   :  { %11987 = vmatpush3.bf16.msra.mxu1 %v13369_v21 }
 0x2d0   :  { %8471 = vmatpush1.bf16.msra.mxu0 %v13365_v20  ;;  %11988 = vmatprep.subr.bf16.mxu1 %v13373_v54  ;;  %v14001_v20 = vld [vmem:[%s18114_s0 + $0x18] sm:$0xff]  ;;  %v13433_v54 = vld [vmem:[%s18115_s1 + $0x1760] ss:$12 sps:$4 sm:$0xff]  }
 0x2d1   :  { %8472 = vmatprep.subr.bf16.mxu0 %v13372_v63  ;;  %v169_v21 = vrot.slane %v14001_v20, %v14953_v36  ;;  %v13432_v63 = vld [vmem:[%s18115_s1 + $0x1804] ss:$12 sps:$4 sm:$0xff]  }
 0x2d3   :  { %11989 = vmatpush3.bf16.msra.mxu1 %v13374_v26  ;;  %v13430_v26 = vld [vmem:[%s18115_s1 + $0x1800] ss:$12 sps:$4 sm:$0xff]  }
 0x2d4   :  { %8473 = vmatpush1.bf16.msra.mxu0 %v13370_v22  ;;  %11990 = vmatprep.subr.bf16.mxu1 %v13378_v27  ;;  %v16668_v22 = vld [vmem:[%s18114_s0 + $0x20] sm:$0xff] }
 0x2d5   :  { %8474 = vmatprep.subr.bf16.mxu0 %v13377_v39  ;;  %v16674_v39 = vpack.c.bf16 %v169_v21, %v169_v21  ;;  %v13434_v27 = vld [vmem:[%s18115_s1 + $0x16a0] ss:$12 sps:$4 sm:$0xff]  }
 0x2d7   :  { %11991 = vmatpush3.bf16.msra.mxu1 %v13379_v58  ;;  %v181_v58 = vrot.slane %v16668_v22, %v14221_v46 }
 0x2d8   :  { %8475 = vmatpush1.bf16.msra.mxu0 %v13375_v55  ;;  %11992 = vmatprep.subr.bf16.mxu1 %v13383_v31  ;;  %v13437_v55 = vld [vmem:[%s18115_s1 + $0x181c] ss:$12 sps:$4 sm:$0xff]   ;;  %v13439_v31 = vld [vmem:[%s18115_s1 + $0x16b8] ss:$12 sps:$4 sm:$0xff]  }
 0x2d9   :  { %8476 = vmatprep.subr.bf16.mxu0 %v13382_v49  ;;  %v13435_v49 = vld [vmem:[%s18115_s1 + $0x1818] ss:$12 sps:$4 sm:$0xff]  }
 0x2db   :  { %11993 = vmatpush3.bf16.msra.mxu1 %v13384_v33  ;;  %v16698_v33 = vpack.c.bf16 %v181_v58, %v181_v58 }
 0x2dc   :  { %8477 = vmatpush1.bf16.msra.mxu0 %v13380_v62  ;;  %12000 = vmatprep.subr.bf16.mxu1 %v13388_v35  ;;  %v13442_v62 = vld [vmem:[%s18115_s1 + $0x1834] ss:$12 sps:$4 sm:$0xff]   ;;  %v13444_v35 = vld [vmem:[%s18115_s1 + $0x16d0] ss:$12 sps:$4 sm:$0xff]  }
 0x2dd   :  { %8478 = vmatprep.subr.bf16.mxu0 %v13387_v10  ;;  %v13440_v10 = vld [vmem:[%s18115_s1 + $0x1830] ss:$12 sps:$4 sm:$0xff]  }
 0x2de   :  { %9386 = vmatmul.mubr.bf16.vlgmr.msra.gmra.mrb[60].mxu1 %v16257_v38  ;;  %v13395_v38 = vld [vmem:[%s18115_s1 + $0x1758] ss:$12 sps:$4 sm:$0xff]  }
 0x2df   :  { %12001 = vmatpush3.bf16.msra.mxu1 %v13389_v16  ;;  %9425 = vmatprep.mubr.bf16.mxu1 %v16272_v48  ;;  %v13400_v48 = vld [vmem:[%s18115_s1 + $0x1770] ss:$12 sps:$4 sm:$0xff]   ;;  %v13448_v16 = vld [vmem:[%s18115_s1 + $0x17a8] ss:$12 sps:$4 sm:$0xff]  }
 0x2e0   :  { %8479 = vmatpush1.bf16.msra.mxu0 %v13385_v37  ;;  %12002 = vmatprep.subr.bf16.mxu1 %v13393_v11  ;;  %v13447_v37 = vld [vmem:[%s18115_s1 + $0x184c] ss:$12 sps:$4 sm:$0xff]   ;;  %v13449_v11 = vld [vmem:[%s18115_s1 + $0x16e8] ss:$12 sps:$4 sm:$0xff]  }
 0x2e1   :  { %8480 = vmatprep.subr.bf16.mxu0 %v13392_v42  ;;  %v13445_v42 = vld [vmem:[%s18115_s1 + $0x1848] ss:$12 sps:$4 sm:$0xff]  }
 0x2e3   :  { %12003 = vmatpush3.bf16.msra.mxu1 %v13394_v2  ;;  %v16725_v2 = vpop.f32.mrb[4].mxu1 }
 0x2e4   :  { %8481 = vmatpush1.bf16.msra.mxu0 %v13390_v44  ;;  %12004 = vmatprep.subr.bf16.mxu1 %v13398_v17  ;;  %v13452_v44 = vld [vmem:[%s18115_s1 + $0x1864] ss:$12 sps:$4 sm:$0xff]   ;;  %v16730_v17 = vpop.f32.mrb[5].mxu1 }
 0x2e5   :  { %8482 = vmatprep.subr.bf16.mxu0 %v13397_v47  ;;  %v13453_v47 = vld [vmem:[%s18115_s1 + $0x17c0] ss:$12 sps:$4 sm:$0xff]  }
 0x2e7   :  { %12005 = vmatpush3.bf16.msra.mxu1 %v13399_v7  ;;  %v8830_v7 = vpop.f32.mrb[6].mxu1 }
 0x2e8   :  { %8483 = vmatpush1.bf16.msra.mxu0 %v13395_v38  ;;  %12006 = vmatprep.subr.bf16.mxu1 %v13403_v50  ;;  %v13450_v38 = vld [vmem:[%s18115_s1 + $0x1860] ss:$12 sps:$4 sm:$0xff]  }
 0x2e9   :  { %8484 = vmatprep.subr.bf16.mxu0 %v13402_v61  ;;  %v8831_v61 = vpop.f32.mrb[7].mxu1  ;;  %v13454_v50 = vld [vmem:[%s18115_s1 + $0x1700] ss:$12 sps:$4 sm:$0xff]  }
 0x2ea   :  { %v13482_v7 = vld [vmem:[%s18115_s1 + $0x18f4] ss:$12 sps:$4 sm:$0xff]  }
 0x2eb   :  { %12007 = vmatpush3.bf16.msra.mxu1 %v13404_v41  ;;  %v1828_v41 = vld [vmem:[%s18116_s2] sm:$0x7] }
 0x2ec   :  { %8485 = vmatpush1.bf16.msra.mxu0 %v13400_v48  ;;  %12008 = vmatprep.subr.bf16.mxu1 %v13408_v23  ;;  %v13457_v48 = vld [vmem:[%s18115_s1 + $0x187c] ss:$12 sps:$4 sm:$0xff]   ;;  %v13455_v23 = vld [vmem:[%s18115_s1 + $0x1878] ss:$12 sps:$4 sm:$0xff]  }
 0x2ed   :  { %8486 = vmatprep.subr.bf16.mxu0 %v13407_v51  ;;  %v13458_v51 = vld [vmem:[%s18115_s1 + $0x17d8] ss:$12 sps:$4 sm:$0xff]  }
 0x2ef   :  { %12009 = vmatpush3.bf16.msra.mxu1 %v13409_v45  ;;  %v13462_v45 = vld [vmem:[%s18115_s1 + $0x1894] ss:$12 sps:$4 sm:$0xff]  }
 0x2f0   :  { %8487 = vmatpush1.bf16.msra.mxu0 %v13405_v57  ;;  %12010 = vmatprep.subr.bf16.mxu1 %v13413_v59  ;;  %v13459_v57 = vld [vmem:[%s18115_s1 + $0x1718] ss:$12 sps:$4 sm:$0xff]   ;;  %v7841_v59 = vrot.slane %v1828_v41, %v14504_v25  ;;  %v13480_v41 = vld [vmem:[%s18115_s1 + $0x18f0] ss:$12 sps:$4 sm:$0xff]  }
 0x2f1   :  { %8488 = vmatprep.subr.bf16.mxu0 %v13412_v29  ;;  %v11708_v29 = vpop.f32.mrb[8].mxu1 }
 0x2f3   :  { %12011 = vmatpush3.bf16.msra.mxu1 %v13414_v56  ;;  %v11709_v56 = vpop.f32.mrb[9].mxu1 }
 0x2f4   :  { %8489 = vmatpush1.bf16.msra.mxu0 %v13410_v0  ;;  %12012 = vmatprep.subr.bf16.mxu1 %v13418_v4  ;;  %v13463_v0 = vld [vmem:[%s18115_s1 + $0x17f0] ss:$12 sps:$4 sm:$0xff]   ;;  %v11710_v4 = vadd.f32 %v11709_v56, %v11708_v29  ;;  %v13487_v29 = vld [vmem:[%s18115_s1 + $0x190c] ss:$12 sps:$4 sm:$0xff]   ;;  %v13488_v56 = vld [vmem:[%s18115_s1 + $0x1928] ss:$12 sps:$4 sm:$0xff]  }
 0x2f5   :  { %8490 = vmatprep.subr.bf16.mxu0 %v13417_v34  ;;  %v13460_v34 = vld [vmem:[%s18115_s1 + $0x1890] ss:$12 sps:$4 sm:$0xff]  }
 0x2f7   :  { %12013 = vmatpush3.bf16.msra.mxu1 %v13419_v32 }
 0x2f8   :  { %8491 = vmatpush1.bf16.msra.mxu0 %v13415_v5  ;;  %12014 = vmatprep.subr.bf16.mxu1 %v13423_v18  ;;  %v11711_v5 = vpop.f32.mrb[10].mxu1  ;;  %v13467_v18 = vld [vmem:[%s18115_s1 + $0x18ac] ss:$12 sps:$4 sm:$0xff]  }
 0x2f9   :  { %8492 = vmatprep.subr.bf16.mxu0 %v13422_v12  ;;  %v11712_v32 = vpop.f32.mrb[11].mxu1  ;;  %v13464_v12 = vld [vmem:[%s18115_s1 + $0x1730] ss:$12 sps:$4 sm:$0xff]  }
 0x2fb   :  { %12015 = vmatpush3.bf16.msra.mxu1 %v13424_v14  ;;  %v11730_v14 = vpop.f32.mrb[12].mxu1 }
 0x2fc   :  { %8493 = vmatpush1.bf16.msra.mxu0 %v13420_v9  ;;  %12022 = vmatprep.subr.bf16.mxu1 %v13428_v13  ;;  %v8868_v9 = vadd.f32 %v11710_v4, %v7841_v59  ;;  %v11731_v13 = vpop.f32.mrb[13].mxu1  ;;  %v13485_v4 = vld [vmem:[%s18115_s1 + $0x1908] ss:$12 sps:$4 sm:$0xff]  }
 0x2fd   :  { %8494 = vmatprep.subr.bf16.mxu0 %v13427_v24  ;;  %v13468_v24 = vld [vmem:[%s18115_s1 + $0x18c8] ss:$12 sps:$4 sm:$0xff]   ;;  %v11733_v20 = vpop.f32.mrb[14].mxu1 }
 0x2fe   :  { %9426 = vmatmul.mubr.bf16.vlgmr.msra.gmra.mrb[64].mxu1 %v16463_v1  ;;  %v13438_v1 = vld [vmem:[%s18115_s1 + $0x1778] ss:$12 sps:$4 sm:$0xff]   ;;  %v11734_v21 = vpop.f32.mrb[15].mxu1 }
 0x2ff   :  { %12023 = vmatpush3.bf16.msra.mxu1 %v13429_v53  ;;  %9465 = vmatprep.mubr.bf16.mxu1 %v16478_v15  ;;  %v13443_v15 = vld [vmem:[%s18115_s1 + $0x1790] ss:$12 sps:$4 sm:$0xff]   ;;  %v11732_v53 = vadd.f32 %v11731_v13, %v11730_v14  ;;  %v13493_v13 = vld [vmem:[%s18115_s1 + $0x1940] ss:$12 sps:$4 sm:$0xff]  }
 0x300   :  { %8495 = vmatpush1.bf16.msra.mxu0 %v13425_v28  ;;  %12024 = vmatprep.subr.bf16.mxu1 %v13433_v54  ;;  %v13465_v28 = vld [vmem:[%s18115_s1 + $0x18a8] ss:$12 sps:$4 sm:$0xff]   ;;  %v13472_v54 = vld [vmem:[%s18115_s1 + $0x18c4] ss:$12 sps:$4 sm:$0xff]  }
 0x301   :  { %8505 = vmatprep.subr.bf16.mxu0 %v13432_v63  ;;  %v13469_v63 = vld [vmem:[%s18115_s1 + $0x1808] ss:$12 sps:$4 sm:$0xff]  }
 0x303   :  { %8497 = vmatmul.mubr.bf16.vlgmr.msra.gmra.mrb[0].mxu0 %v16674_v39  ;;  %12025 = vmatpush3.bf16.msra.mxu1 %v13434_v27  ;;  %v11752_v27 = vpop.f32.mrb[16].mxu1 }
 0x304   :  { %8506 = vmatpush1.bf16.msra.mxu0 %v13430_v26  ;;  %12026 = vmatprep.subr.bf16.mxu1 %v13438_v1  ;;  %v8908_v26 = vadd.f32 %v11732_v53, %v8868_v9  ;;  %v11753_v58 = vpop.f32.mrb[17].mxu1  ;;  %v13470_v1 = vld [vmem:[%s18115_s1 + $0x18c0] ss:$12 sps:$4 sm:$0xff]   ;;  %v13492_v9 = vld [vmem:[%s18115_s1 + $0x1924] ss:$12 sps:$4 sm:$0xff]  }
 0x305   :  { %8507 = vmatprep.subr.bf16.mxu0 %v13437_v55  ;;  %8537 = vmatprep.mubr.bf16.mxu0 %v16698_v33  ;;  %v13473_v55 = vld [vmem:[%s18115_s1 + $0x18e0] ss:$12 sps:$4 sm:$0xff]  }
 0x306   :  { %v13490_v53 = vld [vmem:[%s18115_s1 + $0x1920] ss:$12 sps:$4 sm:$0xff]  }
 0x307   :  { %12027 = vmatpush3.bf16.msra.mxu1 %v13439_v31  ;;  %v11755_v31 = vpop.f32.mrb[18].mxu1 }
 0x308   :  { %8508 = vmatpush1.bf16.msra.mxu0 %v13435_v49  ;;  %12028 = vmatprep.subr.bf16.mxu1 %v13443_v15  ;;  %v11754_v49 = vadd.f32 %v11753_v58, %v11752_v27  ;;  %v13474_v15 = vld [vmem:[%s18115_s1 + $0x1820] ss:$12 sps:$4 sm:$0xff]   ;;  %v13498_v58 = vld [vmem:[%s18115_s1 + $0x1958] ss:$12 sps:$4 sm:$0xff]  }
 0x309   :  { %8509 = vmatprep.subr.bf16.mxu0 %v13442_v62  ;;  %v11756_v62 = vpop.f32.mrb[19].mxu1 }
 0x30b   :  { %12029 = vmatpush3.bf16.msra.mxu1 %v13444_v35  ;;  %v8948_v35 = vadd.f32 %v11754_v49, %v8908_v26  ;;  %v13497_v26 = vld [vmem:[%s18115_s1 + $0x193c] ss:$12 sps:$4 sm:$0xff]   ;;  %v13495_v49 = vld [vmem:[%s18115_s1 + $0x1938] ss:$12 sps:$4 sm:$0xff]  }
 0x30c   :  { %8510 = vmatpush1.bf16.msra.mxu0 %v13440_v10  ;;  %12030 = vmatprep.subr.bf16.mxu1 %v13448_v16  ;;  %v13477_v10 = vld [vmem:[%s18115_s1 + $0x18dc] ss:$12 sps:$4 sm:$0xff]   ;;  %v13478_v16 = vld [vmem:[%s18115_s1 + $0x18f8] ss:$12 sps:$4 sm:$0xff]  }
 0x30d   :  { %8511 = vmatprep.subr.bf16.mxu0 %v13447_v37  ;;  %v11774_v37 = vpop.f32.mrb[20].mxu1 }
 0x30f   :  { %12031 = vmatpush3.bf16.msra.mxu1 %v13449_v11 }
 0x310   :  { %8512 = vmatpush1.bf16.msra.mxu0 %v13445_v42  ;;  %12032 = vmatprep.subr.bf16.mxu1 %v13453_v47  ;;  %v13475_v42 = vld [vmem:[%s18115_s1 + $0x18d8] ss:$12 sps:$4 sm:$0xff]  }
 0x311   :  { %8513 = vmatprep.subr.bf16.mxu0 %v13452_v44 }
 0x313   :  { %12033 = vmatpush3.bf16.msra.mxu1 %v13454_v50 }
 0x314   :  { %8514 = vmatpush1.bf16.msra.mxu0 %v13450_v38  ;;  %12034 = vmatprep.subr.bf16.mxu1 %v13458_v51  ;;  %v13479_v38 = vld [vmem:[%s18115_s1 + $0x1838] ss:$12 sps:$4 sm:$0xff]  }
 0x315   :  { %8515 = vmatprep.subr.bf16.mxu0 %v13457_v48 }
 0x317   :  { %12035 = vmatpush3.bf16.msra.mxu1 %v13459_v57 }
 0x318   :  { %8516 = vmatpush1.bf16.msra.mxu0 %v13455_v23  ;;  %12036 = vmatprep.subr.bf16.mxu1 %v13463_v0 }
 0x319   :  { %8517 = vmatprep.subr.bf16.mxu0 %v13462_v45  ;;  %v13484_v45 = vld [vmem:[%s18115_s1 + $0x1850] ss:$12 sps:$4 sm:$0xff]  }
 0x31b   :  { %12037 = vmatpush3.bf16.msra.mxu1 %v13464_v12 }
 0x31c   :  { %8518 = vmatpush1.bf16.msra.mxu0 %v13460_v34  ;;  %12044 = vmatprep.subr.bf16.mxu1 %v13468_v24 }
 0x31d   :  { %8519 = vmatprep.subr.bf16.mxu0 %v13467_v18  ;;  %v13489_v18 = vld [vmem:[%s18115_s1 + $0x1868] ss:$12 sps:$4 sm:$0xff]  }
 0x31e   :  { %9466 = vmatmul.mubr.bf16.vlgmr.msra.gmra.mrb[68].mxu1 %v16674_v39  ;;  %v11775_v39 = vpop.f32.mrb[21].mxu1 }
 0x31f   :  { %12045 = vmatpush3.bf16.msra.mxu1 %v13469_v63  ;;  %9505 = vmatprep.mubr.bf16.mxu1 %v16698_v33  ;;  %v11776_v11 = vadd.f32 %v11775_v39, %v11774_v37  ;;  %v11777_v44 = vpop.f32.mrb[22].mxu1  ;;  %v13483_v33 = vld [vmem:[%s18115_s1 + $0x1910] ss:$12 sps:$4 sm:$0xff]  }
 0x320   :  { %8520 = vmatpush1.bf16.msra.mxu0 %v13465_v28  ;;  %12046 = vmatprep.subr.bf16.mxu1 %v13473_v55  ;;  %v11778_v47 = vpop.f32.mrb[23].mxu1  ;;  %v13503_v39 = vld [vmem:[%s18115_s1 + $0x1970] ss:$12 sps:$4 sm:$0xff]  }
 0x321   :  { %8521 = vmatprep.subr.bf16.mxu0 %v13472_v54  ;;  %v8988_v61 = vadd.f32 %v11776_v11, %v8948_v35  ;;  %v11796_v50 = vpop.f32.mrb[24].mxu1  ;;  %v13494_v54 = vld [vmem:[%s18115_s1 + $0x1880] ss:$12 sps:$4 sm:$0xff]   ;;  %v13500_v11 = vld [vmem:[%s18115_s1 + $0x1950] ss:$12 sps:$4 sm:$0xff]  }
 0x322   :  { %v11797_v48 = vpop.f32.mrb[25].mxu1  ;;  %v13502_v35 = vld [vmem:[%s18115_s1 + $0x1954] ss:$12 sps:$4 sm:$0xff]  }
 0x323   :  { %12047 = vmatpush3.bf16.msra.mxu1 %v13474_v15  ;;  %v11798_v51 = vadd.f32 %v11797_v48, %v11796_v50  ;;  %v11799_v23 = vpop.f32.mrb[26].mxu1  ;;  %v13507_v50 = vld [vmem:[%s18115_s1 + $0x196c] ss:$12 sps:$4 sm:$0xff]  }
 0x324   :  { %8522 = vmatpush1.bf16.msra.mxu0 %v13470_v1  ;;  %12048 = vmatprep.subr.bf16.mxu1 %v13478_v16  ;;  %v11800_v57 = vpop.f32.mrb[27].mxu1  ;;  %v13505_v23 = vld [vmem:[%s18115_s1 + $0x1968] ss:$12 sps:$4 sm:$0xff]  }
 0x325   :  { %8523 = vmatprep.subr.bf16.mxu0 %v13477_v10  ;;  %v9028_v59 = vadd.f32 %v11798_v51, %v8988_v61  ;;  %v11818_v0 = vpop.f32.mrb[28].mxu1  ;;  %v13499_v10 = vld [vmem:[%s18115_s1 + $0x1898] ss:$12 sps:$4 sm:$0xff]   ;;  %v13504_v61 = vld [vmem:[%s18115_s1 + $0x18b0] ss:$12 sps:$4 sm:$0xff]   ;;  %v189_v57 = vrot.slane %v16668_v22, %v14301_v8 }
 0x326   :  { %v11819_v34 = vpop.f32.mrb[29].mxu1 }
 0x327   :  { %12049 = vmatpush3.bf16.msra.mxu1 %v13479_v38  ;;  %v11820_v5 = vadd.f32 %v11819_v34, %v11818_v0  ;;  %v11821_v32 = vpop.f32.mrb[30].mxu1  ;;  %v177_v38 = vrot.slane %v16668_v22, %v14286_v3  ;;  %v13512_v34 = vld [vmem:[%s18115_s1 + $0x1984] ss:$12 sps:$4 sm:$0xff]  }
 0x328   :  { %8524 = vmatpush1.bf16.msra.mxu0 %v13475_v42  ;;  %12050 = vmatprep.subr.bf16.mxu1 %v13483_v33  ;;  %v11822_v12 = vpop.f32.mrb[31].mxu1  ;;  %v13510_v32 = vld [vmem:[%s18115_s1 + $0x1980] ss:$12 sps:$4 sm:$0xff]  }
 0x329   :  { %8525 = vmatprep.subr.bf16.mxu0 %v13482_v7  ;;  %v9068_v14 = vadd.f32 %v11820_v5, %v9028_v59  ;;  %v11840_v24 = vpop.f32.mrb[32].mxu1  ;;  %v313_v59 = vpack.c.bf16 %v177_v38, %v177_v38  ;;  %v13513_v5 = vld [vmem:[%s18115_s1 + $0x1a60] ss:$12 sps:$4 sm:$0xff]   ;;  %v316_v12 = vpack.c.bf16 %v189_v57, %v189_v57 }
 0x32a   :  { %v11841_v28 = vpop.f32.mrb[33].mxu1 }
 0x32b   :  { %12051 = vmatpush3.bf16.msra.mxu1 %v13484_v45  ;;  %v11842_v20 = vadd.f32 %v11841_v28, %v11840_v24  ;;  %v11843_v21 = vpop.f32.mrb[34].mxu1  ;;  %v13515_v24 = vld [vmem:[%s18115_s1 + $0x1998] ss:$12 sps:$4 sm:$0xff]   ;;  %v13522_v28 = vld [vmem:[%s18115_s1 + $0x19b4] ss:$12 sps:$4 sm:$0xff]  }
 0x32c   :  { %8526 = vmatpush1.bf16.msra.mxu0 %v13480_v41  ;;  %12052 = vmatprep.subr.bf16.mxu1 %v13488_v56  ;;  %v11844_v63 = vpop.f32.mrb[35].mxu1  ;;  %v13508_v41 = vld [vmem:[%s18115_s1 + $0x1a48] ss:$12 sps:$4 sm:$0xff]   ;;  %v13524_v21 = vld [vmem:[%s18115_s1 + $0x19d0] ss:$12 sps:$4 sm:$0xff]  }
 0x32d   :  { %8527 = vmatprep.subr.bf16.mxu0 %v13487_v29  ;;  %v9108_v27 = vadd.f32 %v11842_v20, %v9068_v14  ;;  %v11862_v55 = vpop.f32.mrb[36].mxu1  ;;  %v13509_v56 = vld [vmem:[%s18115_s1 + $0x1988] ss:$12 sps:$4 sm:$0xff]   ;;  %v13518_v14 = vld [vmem:[%s18115_s1 + $0x1a78] ss:$12 sps:$4 sm:$0xff]  }
 0x32e   :  { %v11863_v1 = vpop.f32.mrb[37].mxu1  ;;  %v13520_v20 = vld [vmem:[%s18115_s1 + $0x19b0] ss:$12 sps:$4 sm:$0xff]   ;;  %v13527_v63 = vld [vmem:[%s18115_s1 + $0x19cc] ss:$12 sps:$4 sm:$0xff]  }
 0x32f   :  { %12053 = vmatpush3.bf16.msra.mxu1 %v13489_v18  ;;  %v11864_v31 = vadd.f32 %v11863_v1, %v11862_v55  ;;  %v11865_v62 = vpop.f32.mrb[38].mxu1  ;;  %v13514_v18 = vld [vmem:[%s18115_s1 + $0x19a0] ss:$12 sps:$4 sm:$0xff]   ;;  %v13532_v55 = vld [vmem:[%s18115_s1 + $0x19e4] ss:$12 sps:$4 sm:$0xff]  }
 0x330   :  { %8528 = vmatpush1.bf16.msra.mxu0 %v13485_v4  ;;  %12054 = vmatprep.subr.bf16.mxu1 %v13493_v13  ;;  %v11866_v15 = vpop.f32.mrb[39].mxu1  ;;  %v13519_v13 = vld [vmem:[%s18115_s1 + $0x19b8] ss:$12 sps:$4 sm:$0xff]   ;;  %v13530_v1 = vld [vmem:[%s18115_s1 + $0x19e0] ss:$12 sps:$4 sm:$0xff]  }
 0x331   :  { %8529 = vmatprep.subr.bf16.mxu0 %v13492_v9  ;;  %v9148_v37 = vadd.f32 %v11864_v31, %v9108_v27  ;;  %v11884_v16 = vpop.f32.mrb[40].mxu1  ;;  %v13517_v9 = vld [vmem:[%s18115_s1 + $0x199c] ss:$12 sps:$4 sm:$0xff]  }
 0x332   :  { %v11885_v42 = vpop.f32.mrb[41].mxu1  ;;  %v13529_v27 = vld [vmem:[%s18115_s1 + $0x19e8] ss:$12 sps:$4 sm:$0xff]  }
 0x333   :  { %12055 = vmatpush3.bf16.msra.mxu1 %v13494_v54  ;;  %v11886_v44 = vadd.f32 %v11885_v42, %v11884_v16  ;;  %v11887_v47 = vpop.f32.mrb[42].mxu1  ;;  %v13528_v54 = vld [vmem:[%s18115_s1 + $0x1aa8] ss:$12 sps:$4 sm:$0xff]  }
 0x334   :  { %8530 = vmatpush1.bf16.msra.mxu0 %v13490_v53  ;;  %12056 = vmatprep.subr.bf16.mxu1 %v13498_v58  ;;  %v11888_v7 = vpop.f32.mrb[43].mxu1  ;;  %v13523_v53 = vld [vmem:[%s18115_s1 + $0x1a90] ss:$12 sps:$4 sm:$0xff]   ;;  %v13533_v58 = vld [vmem:[%s18115_s1 + $0x1ac0] ss:$12 sps:$4 sm:$0xff]  }
 0x335   :  { %8531 = vmatprep.subr.bf16.mxu0 %v13497_v26  ;;  %v9188_v33 = vadd.f32 %v11886_v44, %v9148_v37  ;;  %v11906_v48 = vpop.f32.mrb[44].mxu1  ;;  %v13525_v26 = vld [vmem:[%s18115_s1 + $0x19c8] ss:$12 sps:$4 sm:$0xff]  }
 0x336   :  { %v11907_v51 = vpop.f32.mrb[45].mxu1 }
 0x337   :  { %12057 = vmatpush3.bf16.msra.mxu1 %v13499_v10  ;;  %v11908_v45 = vadd.f32 %v11907_v51, %v11906_v48  ;;  %v11909_v29 = vpop.f32.mrb[46].mxu1 }
 0x338   :  { %8532 = vmatpush1.bf16.msra.mxu0 %v13495_v49  ;;  %12058 = vmatprep.subr.bf16.mxu1 %v13503_v39  ;;  %v11910_v0 = vpop.f32.mrb[47].mxu1  ;;  %v13534_v49 = vld [vmem:[%s18115_s1 + $0x1a00] ss:$12 sps:$4 sm:$0xff]  }
 0x339   :  { %8533 = vmatprep.subr.bf16.mxu0 %v13502_v35  ;;  %v16883_v4 = vadd.f32 %v11908_v45, %v9188_v33 }
 0x33b   :  { %12059 = vmatpush3.bf16.msra.mxu1 %v13504_v61 }
 0x33c   :  { %8534 = vmatpush1.bf16.msra.mxu0 %v13500_v11  ;;  %12066 = vmatprep.subr.bf16.mxu1 %v13508_v41 }
 0x33d   :  { %8535 = vmatprep.subr.bf16.mxu0 %v13507_v50 }
 0x33e   :  { %9506 = vmatmul.mubr.bf16.vlgmr.msra.gmra.mrb[72].mxu1 %v313_v59 }
 0x33f   :  { %12067 = vmatpush3.bf16.msra.mxu1 %v13509_v56  ;;  %9545 = vmatprep.mubr.bf16.mxu1 %v316_v12 }
 0x340   :  { %8536 = vmatpush1.bf16.msra.mxu0 %v13505_v23  ;;  %12068 = vmatprep.subr.bf16.mxu1 %v13513_v5 }
 0x341   :  { %8546 = vmatprep.subr.bf16.mxu0 %v13512_v34 }
 0x343   :  { %8538 = vmatmul.mubr.bf16.vlgmr.msra.gmra.mrb[0].mxu0 %v313_v59  ;;  %12069 = vmatpush3.bf16.msra.mxu1 %v13514_v18 }
 0x344   :  { %8547 = vmatpush1.bf16.msra.mxu0 %v13510_v32  ;;  %12070 = vmatprep.subr.bf16.mxu1 %v13518_v14 }
 0x345   :  { %8548 = vmatprep.subr.bf16.mxu0 %v13517_v9  ;;  %8578 = vmatprep.mubr.bf16.mxu0 %v316_v12 }
 0x347   :  { %12071 = vmatpush3.bf16.msra.mxu1 %v13519_v13 }
 0x348   :  { %8549 = vmatpush1.bf16.msra.mxu0 %v13515_v24  ;;  %12072 = vmatprep.subr.bf16.mxu1 %v13523_v53 }
 0x349   :  { %8550 = vmatprep.subr.bf16.mxu0 %v13522_v28 }
 0x34b   :  { %12073 = vmatpush3.bf16.msra.mxu1 %v13524_v21 }
 0x34c   :  { %8551 = vmatpush1.bf16.msra.mxu0 %v13520_v20  ;;  %12074 = vmatprep.subr.bf16.mxu1 %v13528_v54 }
 0x34d   :  { %8552 = vmatprep.subr.bf16.mxu0 %v13527_v63 }
 0x34f   :  { %12075 = vmatpush3.bf16.msra.mxu1 %v13529_v27 }
 0x350   :  { %8553 = vmatpush1.bf16.msra.mxu0 %v13525_v26 }
 0x351   :  { %14 = vsyncpa [#allocation3], 0  ;;  %8554 = vmatprep.subr.bf16.mxu0 %v13532_v55  ;;  %12076 = vmatprep.subr.bf16.mxu1 %v13533_v58  ;;  %v13537_v31 = vld [vmem:[%s18115_s1 + $0x19fc] ss:$12 sps:$4 sm:$0xff]   ;;  %v13538_v62 = vld [vmem:[%s18115_s1 + $0x1ad8] ss:$12 sps:$4 sm:$0xff]   ;;  %v185_v38 = vrot.slane %v16668_v22, %v14504_v25  ;;  %v197_v48 = vrot.slane %v16668_v22, %v14519_v30 }
 0x352   :  { %v11928_v15 = vpop.f32.mrb[48].mxu1  ;;  %v13535_v35 = vld [vmem:[%s18115_s1 + $0x19f8] ss:$12 sps:$4 sm:$0xff]   ;;  %v13542_v42 = vld [vmem:[%s18115_s1 + $0x1a14] ss:$12 sps:$4 sm:$0xff]   ;;  %vm14031_vm1 = vmmov 0  }
 0x353   :  { %v11929_v10 = vpop.f32.mrb[49].mxu1  ;;  %12077 = vmatpush3.bf16.msra.mxu1 %v13534_v49  ;;  %v13539_v37 = vld [vmem:[%s18115_s1 + $0x1a18] ss:$12 sps:$4 sm:$0xff]   ;;  %v13543_v11 = vld [vmem:[%s18115_s1 + $0x1af0] ss:$12 sps:$4 sm:$0xff]   ;;  %v16979_v41 = vpack.c.bf16 %v185_v38, %v185_v38  ;;  %v16993_v45 = vpack.c.bf16 %v197_v48, %v197_v48  ;;  %vm9813_vm2 = vcmask 228352  }
 0x354   :  { %8555 = vmatpush1.bf16.msra.mxu0 %v13530_v1  ;;  %v11930_v16 = vadd.f32 %v11929_v10, %v11928_v15  ;;  %v11931_v39 = vpop.f32.mrb[50].mxu1  ;;  %12078 = vmatprep.subr.bf16.mxu1 %v13538_v62  ;;  %v13540_v7 = vld [vmem:[%s18115_s1 + $0x1a10] ss:$12 sps:$4 sm:$0xff]   ;;  %v13547_v50 = vld [vmem:[%s18115_s1 + $0x1a2c] ss:$12 sps:$4 sm:$0xff]   ;;  %s14033_s17 = smov 72  }
 0x355   :  { %8556 = vmatprep.subr.bf16.mxu0 %v13537_v31  ;;  %v11932_v44 = vpop.f32.mrb[51].mxu1  ;;  %v13544_v61 = vld [vmem:[%s18115_s1 + $0x1a30] ss:$12 sps:$4 sm:$0xff]   ;;  %v13548_v33 = vld [vmem:[%s18115_s1 + $0x1bc8] ss:$12 sps:$4 sm:$0xff]   ;;  %vm9985_vm3 = vcmask 1041408  }
 0x356   :  { %v16961_v47 = vadd.f32 %v11930_v16, %v16883_v4  ;;  %v13545_v51 = vld [vmem:[%s18115_s1 + $0x1a28] ss:$12 sps:$4 sm:$0xff]   ;;  %v13552_v57 = vld [vmem:[%s18115_s1 + $0x1a44] ss:$12 sps:$4 sm:$0xff]   ;;  %v13553_v22 = vld [vmem:[%s18115_s1 + $0x1be0] ss:$12 sps:$4 sm:$0xff]  }
 0x357   :  { %12079 = vmatpush3.bf16.msra.mxu1 %v13539_v37  ;;  %v13549_v23 = vld [vmem:[%s18115_s1 + $0x1b08] ss:$12 sps:$4 sm:$0xff]   ;;  %v13550_v29 = vld [vmem:[%s18115_s1 + $0x1a40] ss:$12 sps:$4 sm:$0xff]   ;;  %v13558_v56 = vld [vmem:[%s18115_s1 + $0x1bf8] ss:$12 sps:$4 sm:$0xff]  }
 0x358   :  { %8557 = vmatpush1.bf16.msra.mxu0 %v13535_v35  ;;  %12080 = vmatprep.subr.bf16.mxu1 %v13543_v11  ;;  %v13554_v59 = vld [vmem:[%s18115_s1 + $0x1b20] ss:$12 sps:$4 sm:$0xff]   ;;  %v13557_v0 = vld [vmem:[%s18115_s1 + $0x1a5c] ss:$12 sps:$4 sm:$0xff]   ;;  %v13555_v34 = vld [vmem:[%s18115_s1 + $0x1a58] ss:$12 sps:$4 sm:$0xff]  }
 0x359   :  { %8558 = vmatprep.subr.bf16.mxu0 %v13542_v42  ;;  %v13559_v4 = vld [vmem:[%s18115_s1 + $0x1b38] ss:$12 sps:$4 sm:$0xff]   ;;  %v13562_v5 = vld [vmem:[%s18115_s1 + $0x1a74] ss:$12 sps:$4 sm:$0xff]   ;;  %v13563_v32 = vld [vmem:[%s18115_s1 + $0x1c10] ss:$12 sps:$4 sm:$0xff]  }
 0x35a   :  { %v13560_v12 = vld [vmem:[%s18115_s1 + $0x1a70] ss:$12 sps:$4 sm:$0xff]   ;;  %v13567_v9 = vld [vmem:[%s18115_s1 + $0x1a8c] ss:$12 sps:$4 sm:$0xff]   ;;  %v13568_v14 = vld [vmem:[%s18115_s1 + $0x1c28] ss:$12 sps:$4 sm:$0xff]  }
 0x35b   :  { %12081 = vmatpush3.bf16.msra.mxu1 %v13544_v61  ;;  %v13564_v18 = vld [vmem:[%s18115_s1 + $0x1b50] ss:$12 sps:$4 sm:$0xff]   ;;  %v13565_v24 = vld [vmem:[%s18115_s1 + $0x1a88] ss:$12 sps:$4 sm:$0xff]   ;;  %v13573_v53 = vld [vmem:[%s18115_s1 + $0x1c40] ss:$12 sps:$4 sm:$0xff]  }
 0x35c   :  { %8559 = vmatpush1.bf16.msra.mxu0 %v13540_v7  ;;  %12088 = vmatprep.subr.bf16.mxu1 %v13548_v33  ;;  %v13569_v13 = vld [vmem:[%s18115_s1 + $0x1b68] ss:$12 sps:$4 sm:$0xff]   ;;  %v13572_v28 = vld [vmem:[%s18115_s1 + $0x1aa4] ss:$12 sps:$4 sm:$0xff]   ;;  %v13570_v20 = vld [vmem:[%s18115_s1 + $0x1aa0] ss:$12 sps:$4 sm:$0xff]  }
 0x35d   :  { %8560 = vmatprep.subr.bf16.mxu0 %v13547_v50  ;;  %v13574_v21 = vld [vmem:[%s18115_s1 + $0x1b80] ss:$12 sps:$4 sm:$0xff]   ;;  %v13577_v63 = vld [vmem:[%s18115_s1 + $0x1abc] ss:$12 sps:$4 sm:$0xff]   ;;  %v13578_v54 = vld [vmem:[%s18115_s1 + $0x1c58] ss:$12 sps:$4 sm:$0xff]  }
 0x35e   :  { %9546 = vmatmul.mubr.bf16.vlgmr.msra.gmra.mrb[76].mxu1 %v16979_v41  ;;  %v13575_v55 = vld [vmem:[%s18115_s1 + $0x1ab8] ss:$12 sps:$4 sm:$0xff]   ;;  %v13582_v31 = vld [vmem:[%s18115_s1 + $0x1ad4] ss:$12 sps:$4 sm:$0xff]   ;;  %v13583_v62 = vld [vmem:[%s18115_s1 + $0x1c70] ss:$12 sps:$4 sm:$0xff]  }
 0x35f   :  { %12089 = vmatpush3.bf16.msra.mxu1 %v13549_v23  ;;  %9585 = vmatprep.mubr.bf16.mxu1 %v16993_v45  ;;  %v13579_v58 = vld [vmem:[%s18115_s1 + $0x1b98] ss:$12 sps:$4 sm:$0xff]   ;;  %v13580_v16 = vld [vmem:[%s18115_s1 + $0x1ad0] ss:$12 sps:$4 sm:$0xff]   ;;  %v13588_v11 = vld [vmem:[%s18115_s1 + $0x1d48] ss:$12 sps:$4 sm:$0xff]  }
 0x360   :  { %8561 = vmatpush1.bf16.msra.mxu0 %v13545_v51  ;;  %12090 = vmatprep.subr.bf16.mxu1 %v13553_v22  ;;  %v17075_v35 = vld [vmem:[%s18114_s0 + $0x20] sm:$0xff]  ;;  %v13584_v39 = vld [vmem:[%s18115_s1 + $0x1bb0] ss:$12 sps:$4 sm:$0xff]   ;;  %v13587_v42 = vld [vmem:[%s18115_s1 + $0x1aec] ss:$12 sps:$4 sm:$0xff]   ;;  %s14034_s28 = smov 56  }
 0x361   :  { %8562 = vmatprep.subr.bf16.mxu0 %v13552_v57  ;;  %v193_v37 = vrot.slane %v17075_v35, %v14722_v52  ;;  %v205_v44 = vrot.slane %v17075_v35, %v14737_v60  ;;  %v13585_v38 = vld [vmem:[%s18115_s1 + $0x1ae8] ss:$12 sps:$4 sm:$0xff]   ;;  %v13592_v61 = vld [vmem:[%s18115_s1 + $0x1b04] ss:$12 sps:$4 sm:$0xff]   ;;  %v13593_v60 = vld [vmem:[%s18115_s1 + $0x1d60] ss:$12 sps:$4 sm:$0xff]  }
 0x362   :  { %v13589_v7 = vld [vmem:[%s18115_s1 + $0x1c88] ss:$12 sps:$4 sm:$0xff]   ;;  %v13590_v33 = vld [vmem:[%s18115_s1 + $0x1b00] ss:$12 sps:$4 sm:$0xff]   ;;  %v13598_v23 = vld [vmem:[%s18115_s1 + $0x1d78] ss:$12 sps:$4 sm:$0xff]  }
 0x363   :  { %12091 = vmatpush3.bf16.msra.mxu1 %v13554_v59  ;;  %v17107_v50 = vpack.c.bf16 %v205_v44, %v205_v44  ;;  %v13594_v48 = vld [vmem:[%s18115_s1 + $0x1ca0] ss:$12 sps:$4 sm:$0xff]   ;;  %v13597_v51 = vld [vmem:[%s18115_s1 + $0x1b1c] ss:$12 sps:$4 sm:$0xff]   ;;  %v13595_v57 = vld [vmem:[%s18115_s1 + $0x1b18] ss:$12 sps:$4 sm:$0xff]  }
 0x364   :  { %8563 = vmatpush1.bf16.msra.mxu0 %v13550_v29  ;;  %12092 = vmatprep.subr.bf16.mxu1 %v13558_v56  ;;  %v13599_v22 = vld [vmem:[%s18115_s1 + $0x1cb8] ss:$12 sps:$4 sm:$0xff]   ;;  %v13602_v29 = vld [vmem:[%s18115_s1 + $0x1b34] ss:$12 sps:$4 sm:$0xff]   ;;  %v13600_v59 = vld [vmem:[%s18115_s1 + $0x1b30] ss:$12 sps:$4 sm:$0xff]  }
 0x365   :  { %8564 = vmatprep.subr.bf16.mxu0 %v13557_v0  ;;  %v13604_v0 = vld [vmem:[%s18115_s1 + $0x1cd0] ss:$12 sps:$4 sm:$0xff]   ;;  %v13607_v56 = vld [vmem:[%s18115_s1 + $0x1b4c] ss:$12 sps:$4 sm:$0xff]   ;;  %vm9859_vm4 = vcmask 457728   ;;  %vm9981_vm5 = vcmask 818176  }
 0x366   :  { %v13637_v44 = vld [vmem:[%s18115_s1 + $0x1bdc] ss:$12 sps:$4 sm:$0xff]   ;;  %s14035_s29 = smov [#allocation2]   ;;  %vm10493_vm6 = vcmask 16384  }
 0x367   :  { %12093 = vmatpush3.bf16.msra.mxu1 %v13559_v4  ;;  %v13609_v4 = vld [vmem:[%s18115_s1 + $0x1ce8] ss:$12 sps:$4 sm:$0xff]   ;;  %s10501_s30 = sshll.u32 %s14035_s29, 4  ;;  %s10502_s30 = int_to_ptr.vmem [resolvable:$true] %s10501_s30 }
 0x368   :  { %8565 = vmatpush1.bf16.msra.mxu0 %v13555_v34  ;;  %12094 = vmatprep.subr.bf16.mxu1 %v13563_v32  ;;  %v13605_v34 = vld [vmem:[%s18115_s1 + $0x1b48] ss:$12 sps:$4 sm:$0xff]   ;;  %v13613_v32 = vld [vmem:[%s18115_s1 + $0x1dc0] ss:$12 sps:$4 sm:$0xff]   ;;  %s14009_s10 = scalar_lea.vmem %s10502_s30, 32  ;;  %p14010_p1 = scmp.lt.s32.totalorder %s10502_s30, %s10502_s30 }
 0x369   :  { %8566 = vmatprep.subr.bf16.mxu0 %v13562_v5  ;;  %v13612_v5 = vld [vmem:[%s18115_s1 + $0x1b64] ss:$12 sps:$4 sm:$0xff]  }
 0x36b   :  { %12095 = vmatpush3.bf16.msra.mxu1 %v13564_v18  ;;  %v13614_v18 = vld [vmem:[%s18115_s1 + $0x1d00] ss:$12 sps:$4 sm:$0xff]  }
 0x36c   :  { %8567 = vmatpush1.bf16.msra.mxu0 %v13560_v12  ;;  %12096 = vmatprep.subr.bf16.mxu1 %v13568_v14  ;;  %v13610_v12 = vld [vmem:[%s18115_s1 + $0x1b60] ss:$12 sps:$4 sm:$0xff]   ;;  %v13618_v14 = vld [vmem:[%s18115_s1 + $0x1dd8] ss:$12 sps:$4 sm:$0xff]  }
 0x36d   :  { %8568 = vmatprep.subr.bf16.mxu0 %v13567_v9  ;;  %v13617_v9 = vld [vmem:[%s18115_s1 + $0x1b7c] ss:$12 sps:$4 sm:$0xff]  }
 0x36f   :  { %12097 = vmatpush3.bf16.msra.mxu1 %v13569_v13 }
 0x370   :  { %8569 = vmatpush1.bf16.msra.mxu0 %v13565_v24  ;;  %12098 = vmatprep.subr.bf16.mxu1 %v13573_v53  ;;  %v13619_v53 = vld [vmem:[%s18115_s1 + $0x1d18] ss:$12 sps:$4 sm:$0xff]  }
 0x371   :  { %8570 = vmatprep.subr.bf16.mxu0 %v13572_v28  ;;  %v11950_v26 = vpop.f32.mrb[52].mxu1  ;;  %v13615_v28 = vld [vmem:[%s18115_s1 + $0x1b78] ss:$12 sps:$4 sm:$0xff]  }
 0x372   :  { %v11951_v27 = vpop.f32.mrb[53].mxu1 }
 0x373   :  { %12099 = vmatpush3.bf16.msra.mxu1 %v13574_v21  ;;  %v11952_v1 = vadd.f32 %v11951_v27, %v11950_v26  ;;  %v11953_v49 = vpop.f32.mrb[54].mxu1 }
 0x374   :  { %8571 = vmatpush1.bf16.msra.mxu0 %v13570_v20  ;;  %12100 = vmatprep.subr.bf16.mxu1 %v13578_v54  ;;  %v11954_v15 = vpop.f32.mrb[55].mxu1  ;;  %v13623_v54 = vld [vmem:[%s18115_s1 + $0x1df0] ss:$12 sps:$4 sm:$0xff]   ;;  %v13627_v49 = vld [vmem:[%s18115_s1 + $0x1bac] ss:$12 sps:$4 sm:$0xff]  }
 0x375   :  { %8572 = vmatprep.subr.bf16.mxu0 %v13577_v63  ;;  %v17070_v10 = vadd.f32 %v11952_v1, %v16961_v47  ;;  %v17093_v47 = vpack.c.bf16 %v193_v37, %v193_v37  ;;  %v13622_v63 = vld [vmem:[%s18115_s1 + $0x1b94] ss:$12 sps:$4 sm:$0xff]   ;;  %v13624_v1 = vld [vmem:[%s18115_s1 + $0x1d30] ss:$12 sps:$4 sm:$0xff]  }
 0x376   :  { %v13632_v37 = vld [vmem:[%s18115_s1 + $0x1bc4] ss:$12 sps:$4 sm:$0xff]  }
 0x377   :  { %12101 = vmatpush3.bf16.msra.mxu1 %v13579_v58  ;;  %v13620_v58 = vld [vmem:[%s18115_s1 + $0x1b90] ss:$12 sps:$4 sm:$0xff]  }
 0x378   :  { %8573 = vmatpush1.bf16.msra.mxu0 %v13575_v55  ;;  %12102 = vmatprep.subr.bf16.mxu1 %v13583_v62  ;;  %v201_v55 = vrot.slane %v17075_v35, %v14953_v36  ;;  %v13628_v36 = vld [vmem:[%s18115_s1 + $0x1ec8] ss:$12 sps:$4 sm:$0xff]  }
 0x379   :  { %8574 = vmatprep.subr.bf16.mxu0 %v13582_v31  ;;  %v17205_v31 = vld [vmem:[%s18114_s0 + $0x28] sm:$0x7f] }
 0x37a   :  { %v213_v62 = vrot.slane %v17205_v31, %v14221_v46  ;;  %v17209_v15 = vpack.c.bf16 %v201_v55, %v201_v55  ;;  %v13629_v35 = vld [vmem:[%s18115_s1 + $0x1e08] ss:$12 sps:$4 sm:$0xff]  }
 0x37b   :  { %12103 = vmatpush3.bf16.msra.mxu1 %v13584_v39  ;;  %v13665_v55 = vld [vmem:[%s18115_s1 + $0x1c68] ss:$12 sps:$4 sm:$0xff]  }
 0x37c   :  { %8575 = vmatpush1.bf16.msra.mxu0 %v13580_v16  ;;  %12110 = vmatprep.subr.bf16.mxu1 %v13588_v11  ;;  %v13633_v16 = vld [vmem:[%s18115_s1 + $0x1ee0] ss:$12 sps:$4 sm:$0xff]   ;;  %v17223_v39 = vpack.c.bf16 %v213_v62, %v213_v62 }
 0x37d   :  { %8576 = vmatprep.subr.bf16.mxu0 %v13587_v42  ;;  %v13630_v42 = vld [vmem:[%s18115_s1 + $0x1bc0] ss:$12 sps:$4 sm:$0xff]  }
 0x37e   :  { %9586 = vmatmul.mubr.bf16.vlgmr.msra.gmra.mrb[80].mxu1 %v17093_v47  ;;  %v13634_v11 = vld [vmem:[%s18115_s1 + $0x1e20] ss:$12 sps:$4 sm:$0xff]  }
 0x37f   :  { %12111 = vmatpush3.bf16.msra.mxu1 %v13589_v7  ;;  %9625 = vmatprep.mubr.bf16.mxu1 %v17107_v50  ;;  %v13635_v7 = vld [vmem:[%s18115_s1 + $0x1bd8] ss:$12 sps:$4 sm:$0xff]   ;;  %v13674_v62 = vld [vmem:[%s18115_s1 + $0x1fa0] ss:$12 sps:$4 sm:$0xff]  }
 0x380   :  { %8577 = vmatpush1.bf16.msra.mxu0 %v13585_v38  ;;  %12112 = vmatprep.subr.bf16.mxu1 %v13593_v60  ;;  %v13638_v38 = vld [vmem:[%s18115_s1 + $0x1ef8] ss:$12 sps:$4 sm:$0xff]   ;;  %v13642_v60 = vld [vmem:[%s18115_s1 + $0x1bf4] ss:$12 sps:$4 sm:$0xff]  }
 0x381   :  { %8587 = vmatprep.subr.bf16.mxu0 %v13592_v61  ;;  %v13639_v61 = vld [vmem:[%s18115_s1 + $0x1e38] ss:$12 sps:$4 sm:$0xff]  }
 0x383   :  { %8579 = vmatmul.mubr.bf16.vlgmr.msra.gmra.mrb[0].mxu0 %v16979_v41  ;;  %12113 = vmatpush3.bf16.msra.mxu1 %v13594_v48  ;;  %v13603_v41 = vld [vmem:[%s18115_s1 + $0x1d90] ss:$12 sps:$4 sm:$0xff]  }
 0x384   :  { %8588 = vmatpush1.bf16.msra.mxu0 %v13590_v33  ;;  %12114 = vmatprep.subr.bf16.mxu1 %v13598_v23  ;;  %v13643_v33 = vld [vmem:[%s18115_s1 + $0x1f10] ss:$12 sps:$4 sm:$0xff]   ;;  %v13647_v23 = vld [vmem:[%s18115_s1 + $0x1c0c] ss:$12 sps:$4 sm:$0xff]  }
 0x385   :  { %8589 = vmatprep.subr.bf16.mxu0 %v13597_v51  ;;  %8619 = vmatprep.mubr.bf16.mxu0 %v16993_v45  ;;  %v13608_v45 = vld [vmem:[%s18115_s1 + $0x1da8] ss:$12 sps:$4 sm:$0xff]   ;;  %v13640_v48 = vld [vmem:[%s18115_s1 + $0x1bf0] ss:$12 sps:$4 sm:$0xff]  }
 0x386   :  { %v13644_v51 = vld [vmem:[%s18115_s1 + $0x1e50] ss:$12 sps:$4 sm:$0xff]  }
 0x387   :  { %12115 = vmatpush3.bf16.msra.mxu1 %v13599_v22  ;;  %v13645_v22 = vld [vmem:[%s18115_s1 + $0x1c08] ss:$12 sps:$4 sm:$0xff]  }
 0x388   :  { %8590 = vmatpush1.bf16.msra.mxu0 %v13595_v57  ;;  %12116 = vmatprep.subr.bf16.mxu1 %v13603_v41  ;;  %v13648_v57 = vld [vmem:[%s18115_s1 + $0x1f28] ss:$12 sps:$4 sm:$0xff]   ;;  %v13652_v41 = vld [vmem:[%s18115_s1 + $0x1c24] ss:$12 sps:$4 sm:$0xff]  }
 0x389   :  { %8591 = vmatprep.subr.bf16.mxu0 %v13602_v29  ;;  %v13649_v29 = vld [vmem:[%s18115_s1 + $0x1e68] ss:$12 sps:$4 sm:$0xff]  }
 0x38b   :  { %12117 = vmatpush3.bf16.msra.mxu1 %v13604_v0  ;;  %v13650_v0 = vld [vmem:[%s18115_s1 + $0x1c20] ss:$12 sps:$4 sm:$0xff]  }
 0x38c   :  { %8592 = vmatpush1.bf16.msra.mxu0 %v13600_v59  ;;  %12118 = vmatprep.subr.bf16.mxu1 %v13608_v45  ;;  %v13653_v59 = vld [vmem:[%s18115_s1 + $0x1f40] ss:$12 sps:$4 sm:$0xff]   ;;  %v13657_v45 = vld [vmem:[%s18115_s1 + $0x1c3c] ss:$12 sps:$4 sm:$0xff]  }
 0x38d   :  { %8593 = vmatprep.subr.bf16.mxu0 %v13607_v56  ;;  %v13654_v56 = vld [vmem:[%s18115_s1 + $0x1e80] ss:$12 sps:$4 sm:$0xff]  }
 0x38f   :  { %12119 = vmatpush3.bf16.msra.mxu1 %v13609_v4 }
 0x390   :  { %8594 = vmatpush1.bf16.msra.mxu0 %v13605_v34  ;;  %12120 = vmatprep.subr.bf16.mxu1 %v13613_v32  ;;  %v13658_v34 = vld [vmem:[%s18115_s1 + $0x1f58] ss:$12 sps:$4 sm:$0xff]  }
 0x391   :  { %8595 = vmatprep.subr.bf16.mxu0 %v13612_v5  ;;  %v11972_v24 = vpop.f32.mrb[56].mxu1  ;;  %v13655_v32 = vld [vmem:[%s18115_s1 + $0x1c38] ss:$12 sps:$4 sm:$0xff]  }
 0x392   :  { %v11973_v13 = vpop.f32.mrb[57].mxu1 }
 0x393   :  { %12121 = vmatpush3.bf16.msra.mxu1 %v13614_v18  ;;  %v11974_v20 = vadd.f32 %v11973_v13, %v11972_v24  ;;  %v11975_v21 = vpop.f32.mrb[58].mxu1  ;;  %v13663_v24 = vld [vmem:[%s18115_s1 + $0x1f70] ss:$12 sps:$4 sm:$0xff]  }
 0x394   :  { %8596 = vmatpush1.bf16.msra.mxu0 %v13610_v12  ;;  %12122 = vmatprep.subr.bf16.mxu1 %v13618_v14  ;;  %v11976_v26 = vpop.f32.mrb[59].mxu1  ;;  %v13659_v12 = vld [vmem:[%s18115_s1 + $0x1e98] ss:$12 sps:$4 sm:$0xff]   ;;  %v13662_v14 = vld [vmem:[%s18115_s1 + $0x1c54] ss:$12 sps:$4 sm:$0xff]  }
 0x395   :  { %8597 = vmatprep.subr.bf16.mxu0 %v13617_v9  ;;  %v17186_v27 = vadd.f32 %v11974_v20, %v17070_v10  ;;  %v13625_v10 = vld [vmem:[%s18115_s1 + $0x1ba8] ss:$12 sps:$4 sm:$0xff]   ;;  %v13660_v20 = vld [vmem:[%s18115_s1 + $0x1c50] ss:$12 sps:$4 sm:$0xff]   ;;  %v221_v26 = vrot.slane %v17205_v31, %v14301_v8  ;;  %v13673_v8 = vld [vmem:[%s18115_s1 + $0x2060] ss:$12 sps:$4 sm:$0xff]  }
 0x396   :  { %v13664_v21 = vld [vmem:[%s18115_s1 + $0x1eb0] ss:$12 sps:$4 sm:$0xff]  }
 0x397   :  { %12123 = vmatpush3.bf16.msra.mxu1 %v13619_v53  ;;  %v209_v53 = vrot.slane %v17205_v31, %v14286_v3 }
 0x398   :  { %8598 = vmatpush1.bf16.msra.mxu0 %v13615_v28  ;;  %12124 = vmatprep.subr.bf16.mxu1 %v13623_v54  ;;  %v13668_v54 = vld [vmem:[%s18115_s1 + $0x2048] ss:$12 sps:$4 sm:$0xff]  }
 0x399   :  { %8599 = vmatprep.subr.bf16.mxu0 %v13622_v63  ;;  %v13667_v63 = vld [vmem:[%s18115_s1 + $0x1c6c] ss:$12 sps:$4 sm:$0xff]  }
 0x39b   :  { %12125 = vmatpush3.bf16.msra.mxu1 %v13624_v1  ;;  %v13672_v1 = vld [vmem:[%s18115_s1 + $0x1c84] ss:$12 sps:$4 sm:$0xff]  }
 0x39c   :  { %8600 = vmatpush1.bf16.msra.mxu0 %v13620_v58  ;;  %12132 = vmatprep.subr.bf16.mxu1 %v13628_v36  ;;  %v13669_v58 = vld [vmem:[%s18115_s1 + $0x1f88] ss:$12 sps:$4 sm:$0xff]   ;;  %v13670_v36 = vld [vmem:[%s18115_s1 + $0x1c80] ss:$12 sps:$4 sm:$0xff]  }
 0x39d   :  { %8601 = vmatprep.subr.bf16.mxu0 %v13627_v49  ;;  %v17332_v49 = vpack.c.bf16 %v221_v26, %v221_v26  ;;  %v13717_v26 = vld [vmem:[%s18115_s1 + $0x1d5c] ss:$12 sps:$4 sm:$0xff]  }
 0x39e   :  { %9626 = vmatmul.mubr.bf16.vlgmr.msra.gmra.mrb[84].mxu1 %v17209_v15 }
 0x39f   :  { %12133 = vmatpush3.bf16.msra.mxu1 %v13629_v35  ;;  %9665 = vmatprep.mubr.bf16.mxu1 %v17223_v39  ;;  %v13678_v35 = vld [vmem:[%s18115_s1 + $0x2078] ss:$12 sps:$4 sm:$0xff]  }
 0x3a0   :  { %8602 = vmatpush1.bf16.msra.mxu0 %v13625_v10  ;;  %12134 = vmatprep.subr.bf16.mxu1 %v13633_v16  ;;  %v13677_v10 = vld [vmem:[%s18115_s1 + $0x1c9c] ss:$12 sps:$4 sm:$0xff]   ;;  %v13679_v16 = vld [vmem:[%s18115_s1 + $0x1fb8] ss:$12 sps:$4 sm:$0xff]  }
 0x3a1   :  { %8603 = vmatprep.subr.bf16.mxu0 %v13632_v37  ;;  %v13675_v37 = vld [vmem:[%s18115_s1 + $0x1c98] ss:$12 sps:$4 sm:$0xff]  }
 0x3a3   :  { %12135 = vmatpush3.bf16.msra.mxu1 %v13634_v11  ;;  %v13680_v11 = vld [vmem:[%s18115_s1 + $0x1cb0] ss:$12 sps:$4 sm:$0xff]  }
 0x3a4   :  { %8604 = vmatpush1.bf16.msra.mxu0 %v13630_v42  ;;  %12136 = vmatprep.subr.bf16.mxu1 %v13638_v38  ;;  %v13682_v42 = vld [vmem:[%s18115_s1 + $0x1cb4] ss:$12 sps:$4 sm:$0xff]   ;;  %v13687_v38 = vld [vmem:[%s18115_s1 + $0x1ccc] ss:$12 sps:$4 sm:$0xff]  }
 0x3a5   :  { %8605 = vmatprep.subr.bf16.mxu0 %v13637_v44  ;;  %v13684_v44 = vld [vmem:[%s18115_s1 + $0x1fd0] ss:$12 sps:$4 sm:$0xff]  }
 0x3a7   :  { %12137 = vmatpush3.bf16.msra.mxu1 %v13639_v61  ;;  %v13689_v61 = vld [vmem:[%s18115_s1 + $0x1fe8] ss:$12 sps:$4 sm:$0xff]  }
 0x3a8   :  { %8606 = vmatpush1.bf16.msra.mxu0 %v13635_v7  ;;  %12138 = vmatprep.subr.bf16.mxu1 %v13643_v33  ;;  %v13685_v7 = vld [vmem:[%s18115_s1 + $0x1cc8] ss:$12 sps:$4 sm:$0xff]   ;;  %v13693_v33 = vld [vmem:[%s18115_s1 + $0x20c0] ss:$12 sps:$4 sm:$0xff]  }
 0x3a9   :  { %8607 = vmatprep.subr.bf16.mxu0 %v13642_v60  ;;  %v13692_v60 = vld [vmem:[%s18115_s1 + $0x1ce4] ss:$12 sps:$4 sm:$0xff]  }
 0x3ab   :  { %12139 = vmatpush3.bf16.msra.mxu1 %v13644_v51  ;;  %v13694_v51 = vld [vmem:[%s18115_s1 + $0x2000] ss:$12 sps:$4 sm:$0xff]  }
 0x3ac   :  { %8608 = vmatpush1.bf16.msra.mxu0 %v13640_v48  ;;  %12140 = vmatprep.subr.bf16.mxu1 %v13648_v57  ;;  %v13690_v48 = vld [vmem:[%s18115_s1 + $0x1ce0] ss:$12 sps:$4 sm:$0xff]   ;;  %v13698_v57 = vld [vmem:[%s18115_s1 + $0x20d8] ss:$12 sps:$4 sm:$0xff]  }
 0x3ad   :  { %8609 = vmatprep.subr.bf16.mxu0 %v13647_v23  ;;  %v13697_v23 = vld [vmem:[%s18115_s1 + $0x1cfc] ss:$12 sps:$4 sm:$0xff]  }
 0x3af   :  { %12141 = vmatpush3.bf16.msra.mxu1 %v13649_v29 }
 0x3b0   :  { %8610 = vmatpush1.bf16.msra.mxu0 %v13645_v22  ;;  %12142 = vmatprep.subr.bf16.mxu1 %v13653_v59  ;;  %v13695_v59 = vld [vmem:[%s18115_s1 + $0x1cf8] ss:$12 sps:$4 sm:$0xff]  }
 0x3b1   :  { %8611 = vmatprep.subr.bf16.mxu0 %v13652_v41  ;;  %v11994_v4 = vpop.f32.mrb[60].mxu1 }
 0x3b2   :  { %v11995_v5 = vpop.f32.mrb[61].mxu1 }
 0x3b3   :  { %12143 = vmatpush3.bf16.msra.mxu1 %v13654_v56  ;;  %v11996_v18 = vadd.f32 %v11995_v5, %v11994_v4  ;;  %v11997_v9 = vpop.f32.mrb[62].mxu1 }
 0x3b4   :  { %8612 = vmatpush1.bf16.msra.mxu0 %v13650_v0  ;;  %12144 = vmatprep.subr.bf16.mxu1 %v13658_v34  ;;  %v11998_v13 = vpop.f32.mrb[63].mxu1  ;;  %v13699_v0 = vld [vmem:[%s18115_s1 + $0x2018] ss:$12 sps:$4 sm:$0xff]   ;;  %v13703_v34 = vld [vmem:[%s18115_s1 + $0x20f0] ss:$12 sps:$4 sm:$0xff]  }
 0x3b5   :  { %8613 = vmatprep.subr.bf16.mxu0 %v13657_v45  ;;  %v17300_v28 = vadd.f32 %v11996_v18, %v17186_v27  ;;  %v17318_v27 = vpack.c.bf16 %v209_v53, %v209_v53  ;;  %v13702_v45 = vld [vmem:[%s18115_s1 + $0x1d14] ss:$12 sps:$4 sm:$0xff]   ;;  %v13704_v18 = vld [vmem:[%s18115_s1 + $0x2030] ss:$12 sps:$4 sm:$0xff]   ;;  %v13707_v9 = vld [vmem:[%s18115_s1 + $0x1d2c] ss:$12 sps:$4 sm:$0xff]  }
 0x3b6   :  { %v13709_v53 = vld [vmem:[%s18115_s1 + $0x2108] ss:$12 sps:$4 sm:$0xff]  }
 0x3b7   :  { %12145 = vmatpush3.bf16.msra.mxu1 %v13659_v12  ;;  %v13700_v12 = vld [vmem:[%s18115_s1 + $0x1d10] ss:$12 sps:$4 sm:$0xff]  }
 0x3b8   :  { %8614 = vmatpush1.bf16.msra.mxu0 %v13655_v32  ;;  %12146 = vmatprep.subr.bf16.mxu1 %v13663_v24  ;;  %v217_v32 = vrot.slane %v17205_v31, %v14504_v25  ;;  %v229_v24 = vrot.slane %v17205_v31, %v14519_v30  ;;  %v13713_v30 = vld [vmem:[%s18115_s1 + $0x21e0] ss:$12 sps:$4 sm:$0xff]  }
 0x3b9   :  { %8615 = vmatprep.subr.bf16.mxu0 %v13662_v14  ;;  %v13708_v14 = vld [vmem:[%s18115_s1 + $0x21c8] ss:$12 sps:$4 sm:$0xff]  }
 0x3ba   :  { %v17429_v13 = vpack.c.bf16 %v217_v32, %v217_v32  ;;  %v13749_v32 = vld [vmem:[%s18115_s1 + $0x1e00] ss:$12 sps:$4 sm:$0xff]  }
 0x3bb   :  { %12147 = vmatpush3.bf16.msra.mxu1 %v13664_v21  ;;  %v17443_v21 = vpack.c.bf16 %v229_v24, %v229_v24  ;;  %v13759_v24 = vld [vmem:[%s18115_s1 + $0x1e34] ss:$12 sps:$4 sm:$0xff]  }
 0x3bc   :  { %8616 = vmatpush1.bf16.msra.mxu0 %v13660_v20  ;;  %12154 = vmatprep.subr.bf16.mxu1 %v13668_v54  ;;  %v13712_v20 = vld [vmem:[%s18115_s1 + $0x1d44] ss:$12 sps:$4 sm:$0xff]   ;;  %v13714_v54 = vld [vmem:[%s18115_s1 + $0x2120] ss:$12 sps:$4 sm:$0xff]  }
 0x3bd   :  { %8617 = vmatprep.subr.bf16.mxu0 %v13667_v63  ;;  %v13710_v63 = vld [vmem:[%s18115_s1 + $0x1d40] ss:$12 sps:$4 sm:$0xff]  }
 0x3be   :  { %9666 = vmatmul.mubr.bf16.vlgmr.msra.gmra.mrb[88].mxu1 %v17318_v27 }
 0x3bf   :  { %12155 = vmatpush3.bf16.msra.mxu1 %v13669_v58  ;;  %9705 = vmatprep.mubr.bf16.mxu1 %v17332_v49  ;;  %v13715_v58 = vld [vmem:[%s18115_s1 + $0x1d58] ss:$12 sps:$4 sm:$0xff]  }
 0x3c0   :  { %8618 = vmatpush1.bf16.msra.mxu0 %v13665_v55  ;;  %12156 = vmatprep.subr.bf16.mxu1 %v13673_v8  ;;  %v13718_v55 = vld [vmem:[%s18115_s1 + $0x21f8] ss:$12 sps:$4 sm:$0xff]   ;;  %v13722_v8 = vld [vmem:[%s18115_s1 + $0x1d74] ss:$12 sps:$4 sm:$0xff]  }
 0x3c1   :  { %8628 = vmatprep.subr.bf16.mxu0 %v13672_v1  ;;  %v13719_v1 = vld [vmem:[%s18115_s1 + $0x2138] ss:$12 sps:$4 sm:$0xff]  }
 0x3c3   :  { %8620 = vmatmul.mubr.bf16.vlgmr.msra.gmra.mrb[0].mxu0 %v17093_v47  ;;  %12157 = vmatpush3.bf16.msra.mxu1 %v13674_v62  ;;  %v13683_v47 = vld [vmem:[%s18115_s1 + $0x2090] ss:$12 sps:$4 sm:$0xff]  }
 0x3c4   :  { %8629 = vmatpush1.bf16.msra.mxu0 %v13670_v36  ;;  %12158 = vmatprep.subr.bf16.mxu1 %v13678_v35  ;;  %v13723_v36 = vld [vmem:[%s18115_s1 + $0x2210] ss:$12 sps:$4 sm:$0xff]   ;;  %v13727_v35 = vld [vmem:[%s18115_s1 + $0x1d8c] ss:$12 sps:$4 sm:$0xff]  }
 0x3c5   :  { %8630 = vmatprep.subr.bf16.mxu0 %v13677_v10  ;;  %8660 = vmatprep.mubr.bf16.mxu0 %v17107_v50  ;;  %v13688_v50 = vld [vmem:[%s18115_s1 + $0x20a8] ss:$12 sps:$4 sm:$0xff]   ;;  %v13720_v62 = vld [vmem:[%s18115_s1 + $0x1d70] ss:$12 sps:$4 sm:$0xff]  }
 0x3c6   :  { %v13724_v10 = vld [vmem:[%s18115_s1 + $0x2150] ss:$12 sps:$4 sm:$0xff]  }
 0x3c7   :  { %12159 = vmatpush3.bf16.msra.mxu1 %v13679_v16  ;;  %v13725_v16 = vld [vmem:[%s18115_s1 + $0x1d88] ss:$12 sps:$4 sm:$0xff]  }
 0x3c8   :  { %8631 = vmatpush1.bf16.msra.mxu0 %v13675_v37  ;;  %12160 = vmatprep.subr.bf16.mxu1 %v13683_v47  ;;  %v13728_v37 = vld [vmem:[%s18115_s1 + $0x2228] ss:$12 sps:$4 sm:$0xff]   ;;  %v13732_v47 = vld [vmem:[%s18115_s1 + $0x1da4] ss:$12 sps:$4 sm:$0xff]  }
 0x3c9   :  { %8632 = vmatprep.subr.bf16.mxu0 %v13682_v42  ;;  %v13729_v42 = vld [vmem:[%s18115_s1 + $0x2168] ss:$12 sps:$4 sm:$0xff]  }
 0x3cb   :  { %12161 = vmatpush3.bf16.msra.mxu1 %v13684_v44  ;;  %v13730_v44 = vld [vmem:[%s18115_s1 + $0x1da0] ss:$12 sps:$4 sm:$0xff]  }
 0x3cc   :  { %8633 = vmatpush1.bf16.msra.mxu0 %v13680_v11  ;;  %12162 = vmatprep.subr.bf16.mxu1 %v13688_v50  ;;  %v13733_v11 = vld [vmem:[%s18115_s1 + $0x2240] ss:$12 sps:$4 sm:$0xff]   ;;  %v13737_v50 = vld [vmem:[%s18115_s1 + $0x1dbc] ss:$12 sps:$4 sm:$0xff]  }
 0x3cd   :  { %8634 = vmatprep.subr.bf16.mxu0 %v13687_v38  ;;  %v13734_v38 = vld [vmem:[%s18115_s1 + $0x2180] ss:$12 sps:$4 sm:$0xff]  }
 0x3cf   :  { %12163 = vmatpush3.bf16.msra.mxu1 %v13689_v61 }
 0x3d0   :  { %8635 = vmatpush1.bf16.msra.mxu0 %v13685_v7  ;;  %12164 = vmatprep.subr.bf16.mxu1 %v13693_v33  ;;  %v13738_v7 = vld [vmem:[%s18115_s1 + $0x2258] ss:$12 sps:$4 sm:$0xff]  }
 0x3d1   :  { %8636 = vmatprep.subr.bf16.mxu0 %v13692_v60  ;;  %v12016_v22 = vpop.f32.mrb[64].mxu1 }
 0x3d2   :  { %v12017_v29 = vpop.f32.mrb[65].mxu1 }
 0x3d3   :  { %v12018_v41 = vadd.f32 %v12017_v29, %v12016_v22  ;;  %12165 = vmatpush3.bf16.msra.mxu1 %v13694_v51  ;;  %v12019_v56 = vpop.f32.mrb[66].mxu1  ;;  %v13739_v51 = vld [vmem:[%s18115_s1 + $0x2198] ss:$12 sps:$4 sm:$0xff]   ;;  %v13743_v22 = vld [vmem:[%s18115_s1 + $0x2270] ss:$12 sps:$4 sm:$0xff]  }
 0x3d4   :  { %8637 = vmatpush1.bf16.msra.mxu0 %v13690_v48  ;;  %12166 = vmatprep.subr.bf16.mxu1 %v13698_v57  ;;  %v12020_v4 = vpop.f32.mrb[67].mxu1  ;;  %v13735_v48 = vld [vmem:[%s18115_s1 + $0x1db8] ss:$12 sps:$4 sm:$0xff]   ;;  %v13742_v57 = vld [vmem:[%s18115_s1 + $0x1dd4] ss:$12 sps:$4 sm:$0xff]  }
 0x3d5   :  { %8638 = vmatprep.subr.bf16.mxu0 %v13697_v23  ;;  %v17411_v5 = vadd.f32 %v12018_v41, %v17300_v28  ;;  %v13705_v28 = vld [vmem:[%s18115_s1 + $0x1d28] ss:$12 sps:$4 sm:$0xff]   ;;  %v13744_v56 = vld [vmem:[%s18115_s1 + $0x21b0] ss:$12 sps:$4 sm:$0xff]   ;;  %v14030_v4 = vmov 0.0  }
 0x3d7   :  { %12167 = vmatpush3.bf16.msra.mxu1 %v13699_v0  ;;  %v13740_v0 = vld [vmem:[%s18115_s1 + $0x1dd0] ss:$12 sps:$4 sm:$0xff]  }
 0x3d8   :  { %8639 = vmatpush1.bf16.msra.mxu0 %v13695_v59  ;;  %12168 = vmatprep.subr.bf16.mxu1 %v13703_v34  ;;  %v225_v59 = vrot.slane %v17205_v31, %v14722_v52  ;;  %v13745_v52 = vld [vmem:[%s18115_s1 + $0x1de8] ss:$12 sps:$4 sm:$0xff]  }
 0x3d9   :  { %8640 = vmatprep.subr.bf16.mxu0 %v13702_v45  ;;  %v13747_v45 = vld [vmem:[%s18115_s1 + $0x1dec] ss:$12 sps:$4 sm:$0xff]   ;;  %v13748_v31 = vld [vmem:[%s18115_s1 + $0x2288] ss:$12 sps:$4 sm:$0xff]  }
 0x3da   :  { %v17533_v34 = vpack.c.bf16 %v225_v59, %v225_v59  ;;  %v13799_v59 = vld [vmem:[%s18115_s1 + $0x1f54] ss:$12 sps:$4 sm:$0xff]  }
 0x3db   :  { %12169 = vmatpush3.bf16.msra.mxu1 %v13704_v18  ;;  %v13755_v18 = vld [vmem:[%s18115_s1 + $0x1e1c] ss:$12 sps:$4 sm:$0xff]  }
 0x3dc   :  { %8641 = vmatpush1.bf16.msra.mxu0 %v13700_v12  ;;  %12176 = vmatprep.subr.bf16.mxu1 %v13708_v14  ;;  %v13752_v12 = vld [vmem:[%s18115_s1 + $0x22a0] ss:$12 sps:$4 sm:$0xff]   ;;  %v13756_v14 = vld [vmem:[%s18115_s1 + $0x22b8] ss:$12 sps:$4 sm:$0xff]  }
 0x3dd   :  { %8642 = vmatprep.subr.bf16.mxu0 %v13707_v9  ;;  %v13753_v9 = vld [vmem:[%s18115_s1 + $0x1e18] ss:$12 sps:$4 sm:$0xff]  }
 0x3de   :  { %9706 = vmatmul.mubr.bf16.vlgmr.msra.gmra.mrb[92].mxu1 %v17429_v13 }
 0x3df   :  { %12177 = vmatpush3.bf16.msra.mxu1 %v13709_v53  ;;  %9745 = vmatprep.mubr.bf16.mxu1 %v17443_v21  ;;  %v13763_v53 = vld [vmem:[%s18115_s1 + $0x1e4c] ss:$12 sps:$4 sm:$0xff]  }
 0x3e0   :  { %8643 = vmatpush1.bf16.msra.mxu0 %v13705_v28  ;;  %12178 = vmatprep.subr.bf16.mxu1 %v13713_v30  ;;  %v13760_v28 = vld [vmem:[%s18115_s1 + $0x22d0] ss:$12 sps:$4 sm:$0xff]  }
 0x3e1   :  { %8644 = vmatprep.subr.bf16.mxu0 %v13712_v20  ;;  %v13764_v20 = vld [vmem:[%s18115_s1 + $0x22e8] ss:$12 sps:$4 sm:$0xff]   ;;  %v13767_v30 = vld [vmem:[%s18115_s1 + $0x1e64] ss:$12 sps:$4 sm:$0xff]  }
 0x3e3   :  { %12179 = vmatpush3.bf16.msra.mxu1 %v13714_v54  ;;  %v13768_v54 = vld [vmem:[%s18115_s1 + $0x2300] ss:$12 sps:$4 sm:$0xff]  }
 0x3e4   :  { %8645 = vmatpush1.bf16.msra.mxu0 %v13710_v63  ;;  %12180 = vmatprep.subr.bf16.mxu1 %v13718_v55  ;;  %v13765_v63 = vld [vmem:[%s18115_s1 + $0x1e60] ss:$12 sps:$4 sm:$0xff]  }
 0x3e5   :  { %8646 = vmatprep.subr.bf16.mxu0 %v13717_v26  ;;  %v13771_v26 = vld [vmem:[%s18115_s1 + $0x1e7c] ss:$12 sps:$4 sm:$0xff]  }
 0x3e7   :  { %12181 = vmatpush3.bf16.msra.mxu1 %v13719_v1 }
 0x3e8   :  { %8647 = vmatpush1.bf16.msra.mxu0 %v13715_v58  ;;  %12182 = vmatprep.subr.bf16.mxu1 %v13723_v36  ;;  %v13772_v36 = vld [vmem:[%s18115_s1 + $0x2318] ss:$12 sps:$4 sm:$0xff]  }
 0x3e9   :  { %8648 = vmatprep.subr.bf16.mxu0 %v13722_v8  ;;  %v13769_v8 = vld [vmem:[%s18115_s1 + $0x1e78] ss:$12 sps:$4 sm:$0xff]  }
 0x3eb   :  { %12183 = vmatpush3.bf16.msra.mxu1 %v13724_v10  ;;  %v13775_v10 = vld [vmem:[%s18115_s1 + $0x1e94] ss:$12 sps:$4 sm:$0xff]  }
 0x3ec   :  { %8649 = vmatpush1.bf16.msra.mxu0 %v13720_v62  ;;  %12184 = vmatprep.subr.bf16.mxu1 %v13728_v37 }
 0x3ed   :  { %8650 = vmatprep.subr.bf16.mxu0 %v13727_v35 }
 0x3ef   :  { %12185 = vmatpush3.bf16.msra.mxu1 %v13729_v42  ;;  %v13778_v42 = vld [vmem:[%s18115_s1 + $0x1eac] ss:$12 sps:$4 sm:$0xff]  }
 0x3f0   :  { %8651 = vmatpush1.bf16.msra.mxu0 %v13725_v16  ;;  %12186 = vmatprep.subr.bf16.mxu1 %v13733_v11  ;;  %v13773_v16 = vld [vmem:[%s18115_s1 + $0x1e90] ss:$12 sps:$4 sm:$0xff]  }
 0x3f1   :  { %8652 = vmatprep.subr.bf16.mxu0 %v13732_v47  ;;  %v12038_v61 = vpop.f32.mrb[68].mxu1  ;;  %v13776_v47 = vld [vmem:[%s18115_s1 + $0x1ea8] ss:$12 sps:$4 sm:$0xff]   ;;  %v13781_v11 = vld [vmem:[%s18115_s1 + $0x1ec4] ss:$12 sps:$4 sm:$0xff]  }
 0x3f2   :  { %v12039_v60 = vpop.f32.mrb[69].mxu1 }
 0x3f3   :  { %v12040_v33 = vadd.f32 %v12039_v60, %v12038_v61  ;;  %12187 = vmatpush3.bf16.msra.mxu1 %v13734_v38  ;;  %v12041_v23 = vpop.f32.mrb[70].mxu1  ;;  %v13782_v38 = vld [vmem:[%s18115_s1 + $0x1ed8] ss:$12 sps:$4 sm:$0xff]   ;;  %v13788_v60 = vld [vmem:[%s18115_s1 + $0x1f08] ss:$12 sps:$4 sm:$0xff]  }
 0x3f4   :  { %8653 = vmatpush1.bf16.msra.mxu0 %v13730_v44  ;;  %12188 = vmatprep.subr.bf16.mxu1 %v13738_v7  ;;  %v12042_v29 = vpop.f32.mrb[71].mxu1  ;;  %v13779_v44 = vld [vmem:[%s18115_s1 + $0x1ec0] ss:$12 sps:$4 sm:$0xff]   ;;  %v13785_v7 = vld [vmem:[%s18115_s1 + $0x1ef0] ss:$12 sps:$4 sm:$0xff]  }
 0x3f5   :  { %8654 = vmatprep.subr.bf16.mxu0 %v13737_v50  ;;  %v17520_v41 = vadd.f32 %v12040_v33, %v17411_v5  ;;  %v13751_v5 = vld [vmem:[%s18115_s1 + $0x1e04] ss:$12 sps:$4 sm:$0xff]   ;;  %v13787_v50 = vld [vmem:[%s18115_s1 + $0x1ef4] ss:$12 sps:$4 sm:$0xff]   ;;  %v13790_v61 = vld [vmem:[%s18115_s1 + $0x1f0c] ss:$12 sps:$4 sm:$0xff]  }
 0x3f6   :  { %v13793_v33 = vld [vmem:[%s18115_s1 + $0x1f24] ss:$12 sps:$4 sm:$0xff]  }
 0x3f7   :  { %12189 = vmatpush3.bf16.msra.mxu1 %v13739_v51  ;;  %v13796_v51 = vld [vmem:[%s18115_s1 + $0x1f3c] ss:$12 sps:$4 sm:$0xff]   ;;  %v13794_v29 = vld [vmem:[%s18115_s1 + $0x1f38] ss:$12 sps:$4 sm:$0xff]  }
 0x3f8   :  { %8655 = vmatpush1.bf16.msra.mxu0 %v13735_v48  ;;  %12190 = vmatprep.subr.bf16.mxu1 %v13743_v22  ;;  %v13791_v48 = vld [vmem:[%s18115_s1 + $0x1f20] ss:$12 sps:$4 sm:$0xff]  }
 0x3f9   :  { %8656 = vmatprep.subr.bf16.mxu0 %v13742_v57 }
 0x3fb   :  { %12191 = vmatpush3.bf16.msra.mxu1 %v13744_v56 }
 0x3fc   :  { %8657 = vmatpush1.bf16.msra.mxu0 %v13740_v0  ;;  %12230 = vmatprep.subr.bf16.mxu1 %v14030_v4 }
 0x3fd   :  { %8658 = vmatprep.subr.bf16.mxu0 %v13747_v45  ;;  %v13797_v45 = vld [vmem:[%s18115_s1 + $0x1f50] ss:$12 sps:$4 sm:$0xff]  }
 0x3fe   :  { %9746 = vmatmul.mubr.bf16.vlgmr.msra.gmra.mrb[96].mxu1 %v17533_v34 }
 0x3ff   :  { %12231 = vmatpush3.bf16.msra.mxu1 %v13748_v31  ;;  %12244 = vmatprep.mubr.msk.bf16.mxu1 %vm14031_vm1, %v14030_v4  ;;  %v13800_v31 = vld [vmem:[%s18115_s1 + $0x1f68] ss:$12 sps:$4 sm:$0xff]  }
 0x400   :  { %8659 = vmatpush1.bf16.msra.mxu0 %v13745_v52  ;;  %12232 = vmatprep.subr.bf16.mxu1 %v14030_v4  ;;  %v13802_v52 = vld [vmem:[%s18115_s1 + $0x1f6c] ss:$12 sps:$4 sm:$0xff]  }
 0x401   :  { %8669 = vmatprep.subr.bf16.mxu0 %v13751_v5  ;;  %v13805_v5 = vld [vmem:[%s18115_s1 + $0x1f84] ss:$12 sps:$4 sm:$0xff]  }
 0x403   :  { %8661 = vmatmul.mubr.bf16.vlgmr.msra.gmra.mrb[0].mxu0 %v17209_v15  ;;  %12233 = vmatpush3.bf16.msra.mxu1 %v13752_v12  ;;  %v13757_v15 = vld [vmem:[%s18115_s1 + $0x1e30] ss:$12 sps:$4 sm:$0xff]  }
 0x404   :  { %8670 = vmatpush1.bf16.msra.mxu0 %v13749_v32  ;;  %12234 = vmatprep.subr.bf16.mxu1 %v14030_v4  ;;  %v13803_v32 = vld [vmem:[%s18115_s1 + $0x1f80] ss:$12 sps:$4 sm:$0xff]   ;;  %v13808_v12 = vld [vmem:[%s18115_s1 + $0x1f9c] ss:$12 sps:$4 sm:$0xff]  }
 0x405   :  { %8671 = vmatprep.subr.bf16.mxu0 %v13755_v18  ;;  %8701 = vmatprep.mubr.bf16.mxu0 %v17223_v39  ;;  %v13761_v39 = vld [vmem:[%s18115_s1 + $0x1e48] ss:$12 sps:$4 sm:$0xff]   ;;  %v13806_v18 = vld [vmem:[%s18115_s1 + $0x1f98] ss:$12 sps:$4 sm:$0xff]  }
 0x407   :  { %12235 = vmatpush3.bf16.msra.mxu1 %v13756_v14  ;;  %v13809_v14 = vld [vmem:[%s18115_s1 + $0x1fb0] ss:$12 sps:$4 sm:$0xff]  }
 0x408   :  { %8672 = vmatpush1.bf16.msra.mxu0 %v13753_v9  ;;  %12236 = vmatprep.subr.bf16.mxu1 %v14030_v4  ;;  %v13811_v9 = vld [vmem:[%s18115_s1 + $0x1fb4] ss:$12 sps:$4 sm:$0xff]  }
 0x409   :  { %8673 = vmatprep.subr.bf16.mxu0 %v13759_v24  ;;  %v13817_v24 = vld [vmem:[%s18115_s1 + $0x1fe4] ss:$12 sps:$4 sm:$0xff]  }
 0x40b   :  { %12237 = vmatpush3.bf16.msra.mxu1 %v13760_v28  ;;  %v13820_v28 = vld [vmem:[%s18115_s1 + $0x1ffc] ss:$12 sps:$4 sm:$0xff]  }
 0x40c   :  { %8674 = vmatpush1.bf16.msra.mxu0 %v13757_v15  ;;  %12238 = vmatprep.subr.bf16.mxu1 %v14030_v4  ;;  %v13815_v15 = vld [vmem:[%s18115_s1 + $0x1fe0] ss:$12 sps:$4 sm:$0xff]  }
 0x40d   :  { %8675 = vmatprep.subr.bf16.mxu0 %v13763_v53 }
 0x40f   :  { %12239 = vmatpush3.bf16.msra.mxu1 %v13764_v20 }
 0x410   :  { %8676 = vmatpush1.bf16.msra.mxu0 %v13761_v39  ;;  %12240 = vmatprep.subr.bf16.mxu1 %v14030_v4 }
 0x411   :  { %8677 = vmatprep.subr.bf16.mxu0 %v13767_v30  ;;  %v12060_v55 = vpop.f32.mrb[72].mxu1  ;;  %v13818_v30 = vld [vmem:[%s18115_s1 + $0x1ff8] ss:$12 sps:$4 sm:$0xff]  }
 0x412   :  { %v12061_v58 = vpop.f32.mrb[73].mxu1 }
 0x413   :  { %v12062_v1 = vadd.f32 %v12061_v58, %v12060_v55  ;;  %12241 = vmatpush3.bf16.msra.mxu1 %v13768_v54  ;;  %v12063_v62 = vpop.f32.mrb[74].mxu1  ;;  %v13823_v54 = vld [vmem:[%s18115_s1 + $0x2014] ss:$12 sps:$4 sm:$0xff]   ;;  %v13821_v58 = vld [vmem:[%s18115_s1 + $0x2010] ss:$12 sps:$4 sm:$0xff]  }
 0x414   :  { %8678 = vmatpush1.bf16.msra.mxu0 %v13765_v63  ;;  %12242 = vmatprep.subr.bf16.mxu1 %v14030_v4  ;;  %v12064_v35 = vpop.f32.mrb[75].mxu1  ;;  %v13827_v62 = vld [vmem:[%s18115_s1 + $0x2040] ss:$12 sps:$4 sm:$0xff]  }
 0x415   :  { %8679 = vmatprep.subr.bf16.mxu0 %v13771_v26  ;;  %v9508_v37 = vadd.f32 %v12062_v1, %v17520_v41  ;;  %v13826_v1 = vld [vmem:[%s18115_s1 + $0x202c] ss:$12 sps:$4 sm:$0xff]  }
 0x416   :  { %v13830_v35 = vld [vmem:[%s18115_s1 + $0x2058] ss:$12 sps:$4 sm:$0xff]  }
 0x417   :  { %12243 = vmatpush3.bf16.msra.mxu1 %v13772_v36  ;;  %v13829_v36 = vld [vmem:[%s18115_s1 + $0x2044] ss:$12 sps:$4 sm:$0xff]  }
 0x418   :  { %8680 = vmatpush1.bf16.msra.mxu0 %v13769_v8  ;;  %v13824_v8 = vld [vmem:[%s18115_s1 + $0x2028] ss:$12 sps:$4 sm:$0xff]  }
 0x419   :  { %8681 = vmatprep.subr.bf16.mxu0 %v13775_v10  ;;  %v13832_v10 = vld [vmem:[%s18115_s1 + $0x205c] ss:$12 sps:$4 sm:$0xff]  }
 0x41a   :  { %12245 = vmatmul.mubr.msk.bf16.vlgmr.msra.gmra.mrb[100].mxu1 %vm7845_vm0, %v15088_v43  ;;  %v13784_v43 = vld [vmem:[%s18115_s1 + $0x1edc] ss:$12 sps:$4 sm:$0xff]  }
 0x41b   :  { %10027 = vmatprep.mubr.bf16.mxu1 %v14029_v6 }
 0x41c   :  { %8682 = vmatpush1.bf16.msra.mxu0 %v13773_v16  ;;  %v13833_v16 = vld [vmem:[%s18115_s1 + $0x2070] ss:$12 sps:$4 sm:$0xff]  }
 0x41d   :  { %8683 = vmatprep.subr.bf16.mxu0 %v13778_v42  ;;  %v13838_v42 = vld [vmem:[%s18115_s1 + $0x208c] ss:$12 sps:$4 sm:$0xff]  }
 0x420   :  { %8684 = vmatpush1.bf16.msra.mxu0 %v13776_v47  ;;  %v13836_v47 = vld [vmem:[%s18115_s1 + $0x2088] ss:$12 sps:$4 sm:$0xff]  }
 0x421   :  { %8685 = vmatprep.subr.bf16.mxu0 %v13781_v11  ;;  %v13841_v11 = vld [vmem:[%s18115_s1 + $0x20a4] ss:$12 sps:$4 sm:$0xff]  }
 0x424   :  { %8686 = vmatpush1.bf16.msra.mxu0 %v13779_v44  ;;  %v13839_v44 = vld [vmem:[%s18115_s1 + $0x20a0] ss:$12 sps:$4 sm:$0xff]  }
 0x425   :  { %8687 = vmatprep.subr.bf16.mxu0 %v13784_v43  ;;  %v13844_v43 = vld [vmem:[%s18115_s1 + $0x20bc] ss:$12 sps:$4 sm:$0xff]  }
 0x428   :  { %8688 = vmatpush1.bf16.msra.mxu0 %v13782_v38 }
 0x429   :  { %8689 = vmatprep.subr.bf16.mxu0 %v13787_v50 }
 0x42c   :  { %8690 = vmatpush1.bf16.msra.mxu0 %v13785_v7 }
 0x42d   :  { %8691 = vmatprep.subr.bf16.mxu0 %v13790_v61  ;;  %v13842_v61 = vld [vmem:[%s18115_s1 + $0x20b8] ss:$12 sps:$4 sm:$0xff]  }
 0x430   :  { %8692 = vmatpush1.bf16.msra.mxu0 %v13788_v60 }
 0x431   :  { %8693 = vmatprep.subr.bf16.mxu0 %v13793_v33  ;;  %v12082_v23 = vpop.f32.mrb[76].mxu1  ;;  %v13847_v33 = vld [vmem:[%s18115_s1 + $0x20d4] ss:$12 sps:$4 sm:$0xff]  }
 0x432   :  { %v12083_v57 = vpop.f32.mrb[77].mxu1 }
 0x433   :  { %v12084_v22 = vadd.f32 %v12083_v57, %v12082_v23  ;;  %v12085_v41 = vpop.f32.mrb[78].mxu1  ;;  %v13845_v23 = vld [vmem:[%s18115_s1 + $0x20d0] ss:$12 sps:$4 sm:$0xff]   ;;  %v13850_v57 = vld [vmem:[%s18115_s1 + $0x20ec] ss:$12 sps:$4 sm:$0xff]  }
 0x434   :  { %8694 = vmatpush1.bf16.msra.mxu0 %v13791_v48  ;;  %v12086_v0 = vpop.f32.mrb[79].mxu1  ;;  %v13851_v41 = vld [vmem:[%s18115_s1 + $0x2100] ss:$12 sps:$4 sm:$0xff]  }
 0x435   :  { %8695 = vmatprep.subr.bf16.mxu0 %v13796_v51  ;;  %v9548_v56 = vadd.f32 %v12084_v22, %v9508_v37  ;;  %v13835_v37 = vld [vmem:[%s18115_s1 + $0x2074] ss:$12 sps:$4 sm:$0xff]   ;;  %v13854_v0 = vld [vmem:[%s18115_s1 + $0x2118] ss:$12 sps:$4 sm:$0xff]  }
 0x436   :  { %v13848_v22 = vld [vmem:[%s18115_s1 + $0x20e8] ss:$12 sps:$4 sm:$0xff]  }
 0x438   :  { %8696 = vmatpush1.bf16.msra.mxu0 %v13794_v29  ;;  %v13853_v29 = vld [vmem:[%s18115_s1 + $0x2104] ss:$12 sps:$4 sm:$0xff]  }
 0x439   :  { %8697 = vmatprep.subr.bf16.mxu0 %v13799_v59  ;;  %v13856_v59 = vld [vmem:[%s18115_s1 + $0x211c] ss:$12 sps:$4 sm:$0xff]  }
 0x43c   :  { %8698 = vmatpush1.bf16.msra.mxu0 %v13797_v45  ;;  %v13857_v45 = vld [vmem:[%s18115_s1 + $0x2130] ss:$12 sps:$4 sm:$0xff]  }
 0x43d   :  { %8699 = vmatprep.subr.bf16.mxu0 %v13802_v52  ;;  %v13865_v52 = vld [vmem:[%s18115_s1 + $0x2164] ss:$12 sps:$4 sm:$0xff]  }
 0x440   :  { %8700 = vmatpush1.bf16.msra.mxu0 %v13800_v31  ;;  %v13863_v31 = vld [vmem:[%s18115_s1 + $0x2160] ss:$12 sps:$4 sm:$0xff]  }
 0x441   :  { %8710 = vmatprep.subr.bf16.mxu0 %v13805_v5  ;;  %v13868_v5 = vld [vmem:[%s18115_s1 + $0x217c] ss:$12 sps:$4 sm:$0xff]  }
 0x443   :  { %8702 = vmatmul.mubr.bf16.vlgmr.msra.gmra.mrb[0].mxu0 %v17318_v27  ;;  %v13814_v27 = vld [vmem:[%s18115_s1 + $0x1fcc] ss:$12 sps:$4 sm:$0xff]  }
 0x444   :  { %8711 = vmatpush1.bf16.msra.mxu0 %v13803_v32  ;;  %8742 = vmatprep.mubr.bf16.mxu0 %v17332_v49  ;;  %v13812_v49 = vld [vmem:[%s18115_s1 + $0x1fc8] ss:$12 sps:$4 sm:$0xff]  }
 0x445   :  { %8712 = vmatprep.subr.bf16.mxu0 %v13808_v12 }
 0x448   :  { %8713 = vmatpush1.bf16.msra.mxu0 %v13806_v18 }
 0x449   :  { %8714 = vmatprep.subr.bf16.mxu0 %v13811_v9  ;;  %v13866_v9 = vld [vmem:[%s18115_s1 + $0x2178] ss:$12 sps:$4 sm:$0xff]  }
 0x44c   :  { %8715 = vmatpush1.bf16.msra.mxu0 %v13809_v14 }
 0x44d   :  { %8716 = vmatprep.subr.bf16.mxu0 %v13814_v27  ;;  %v13871_v27 = vld [vmem:[%s18115_s1 + $0x2194] ss:$12 sps:$4 sm:$0xff]  }
 0x450   :  { %8717 = vmatpush1.bf16.msra.mxu0 %v13812_v49 }
 0x451   :  { %8718 = vmatprep.subr.bf16.mxu0 %v13817_v24  ;;  %v12104_v53 = vpop.f32.mrb[80].mxu1 }
 0x452   :  { %v12105_v39 = vpop.f32.mrb[81].mxu1 }
 0x453   :  { %v12106_v20 = vadd.f32 %v12105_v39, %v12104_v53  ;;  %v12107_v63 = vpop.f32.mrb[82].mxu1  ;;  %v13872_v53 = vld [vmem:[%s18115_s1 + $0x21a8] ss:$12 sps:$4 sm:$0xff]   ;;  %v13877_v39 = vld [vmem:[%s18115_s1 + $0x21c4] ss:$12 sps:$4 sm:$0xff]  }
 0x454   :  { %8719 = vmatpush1.bf16.msra.mxu0 %v13815_v15  ;;  %v12108_v26 = vpop.f32.mrb[83].mxu1  ;;  %v13869_v15 = vld [vmem:[%s18115_s1 + $0x2190] ss:$12 sps:$4 sm:$0xff]   ;;  %v13878_v63 = vld [vmem:[%s18115_s1 + $0x21d8] ss:$12 sps:$4 sm:$0xff]  }
 0x455   :  { %8720 = vmatprep.subr.bf16.mxu0 %v13820_v28  ;;  %v9588_v55 = vadd.f32 %v12106_v20, %v9548_v56  ;;  %v13859_v56 = vld [vmem:[%s18115_s1 + $0x2134] ss:$12 sps:$4 sm:$0xff]   ;;  %v13874_v28 = vld [vmem:[%s18115_s1 + $0x21ac] ss:$12 sps:$4 sm:$0xff]   ;;  %v13881_v26 = vld [vmem:[%s18115_s1 + $0x21f0] ss:$12 sps:$4 sm:$0xff]  }
 0x456   :  { %v13875_v20 = vld [vmem:[%s18115_s1 + $0x21c0] ss:$12 sps:$4 sm:$0xff]  }
 0x458   :  { %8721 = vmatpush1.bf16.msra.mxu0 %v13818_v30  ;;  %v13880_v30 = vld [vmem:[%s18115_s1 + $0x21dc] ss:$12 sps:$4 sm:$0xff]  }
 0x459   :  { %8722 = vmatprep.subr.bf16.mxu0 %v13823_v54  ;;  %v13883_v54 = vld [vmem:[%s18115_s1 + $0x21f4] ss:$12 sps:$4 sm:$0xff]  }
 0x45c   :  { %8723 = vmatpush1.bf16.msra.mxu0 %v13821_v58  ;;  %v13884_v58 = vld [vmem:[%s18115_s1 + $0x2208] ss:$12 sps:$4 sm:$0xff]  }
 0x45d   :  { %8724 = vmatprep.subr.bf16.mxu0 %v13826_v1  ;;  %v13889_v1 = vld [vmem:[%s18115_s1 + $0x2224] ss:$12 sps:$4 sm:$0xff]  }
 0x460   :  { %8725 = vmatpush1.bf16.msra.mxu0 %v13824_v8  ;;  %v13887_v8 = vld [vmem:[%s18115_s1 + $0x2220] ss:$12 sps:$4 sm:$0xff]  }
 0x461   :  { %8726 = vmatprep.subr.bf16.mxu0 %v13829_v36  ;;  %v13892_v36 = vld [vmem:[%s18115_s1 + $0x223c] ss:$12 sps:$4 sm:$0xff]  }
 0x464   :  { %8727 = vmatpush1.bf16.msra.mxu0 %v13827_v62 }
 0x465   :  { %8728 = vmatprep.subr.bf16.mxu0 %v13832_v10 }
 0x468   :  { %8729 = vmatpush1.bf16.msra.mxu0 %v13830_v35 }
 0x469   :  { %8730 = vmatprep.subr.bf16.mxu0 %v13835_v37  ;;  %v13890_v37 = vld [vmem:[%s18115_s1 + $0x2238] ss:$12 sps:$4 sm:$0xff]  }
 0x46c   :  { %8731 = vmatpush1.bf16.msra.mxu0 %v13833_v16 }
 0x46d   :  { %8732 = vmatprep.subr.bf16.mxu0 %v13838_v42  ;;  %v13895_v42 = vld [vmem:[%s18115_s1 + $0x2254] ss:$12 sps:$4 sm:$0xff]  }
 0x470   :  { %8733 = vmatpush1.bf16.msra.mxu0 %v13836_v47 }
 0x471   :  { %8734 = vmatprep.subr.bf16.mxu0 %v13841_v11  ;;  %v12126_v38 = vpop.f32.mrb[84].mxu1 }
 0x472   :  { %v12127_v50 = vpop.f32.mrb[85].mxu1 }
 0x473   :  { %v12128_v7 = vadd.f32 %v12127_v50, %v12126_v38  ;;  %v12129_v60 = vpop.f32.mrb[86].mxu1  ;;  %v13896_v38 = vld [vmem:[%s18115_s1 + $0x2268] ss:$12 sps:$4 sm:$0xff]  }
 0x474   :  { %8735 = vmatpush1.bf16.msra.mxu0 %v13839_v44  ;;  %v12130_v48 = vpop.f32.mrb[87].mxu1  ;;  %v13893_v44 = vld [vmem:[%s18115_s1 + $0x2250] ss:$12 sps:$4 sm:$0xff]  }
 0x475   :  { %8736 = vmatprep.subr.bf16.mxu0 %v13844_v43  ;;  %v9628_v51 = vadd.f32 %v12128_v7, %v9588_v55  ;;  %v13886_v55 = vld [vmem:[%s18115_s1 + $0x220c] ss:$12 sps:$4 sm:$0xff]  }
 0x476   :  { %v13898_v43 = vld [vmem:[%s18115_s1 + $0x226c] ss:$12 sps:$4 sm:$0xff]  }
 0x478   :  { %8737 = vmatpush1.bf16.msra.mxu0 %v13842_v61 }
 0x479   :  { %8738 = vmatprep.subr.bf16.mxu0 %v13847_v33 }
 0x47c   :  { %8739 = vmatpush1.bf16.msra.mxu0 %v13845_v23 }
 0x47d   :  { %8740 = vmatprep.subr.bf16.mxu0 %v13850_v57 }
 0x480   :  { %8741 = vmatpush1.bf16.msra.mxu0 %v13848_v22 }
 0x481   :  { %8751 = vmatprep.subr.bf16.mxu0 %v13853_v29 }
 0x483   :  { %8743 = vmatmul.mubr.bf16.vlgmr.msra.gmra.mrb[0].mxu0 %v17429_v13  ;;  %v13862_v13 = vld [vmem:[%s18115_s1 + $0x214c] ss:$12 sps:$4 sm:$0xff]  }
 0x484   :  { %8752 = vmatpush1.bf16.msra.mxu0 %v13851_v41  ;;  %8783 = vmatprep.mubr.bf16.mxu0 %v17443_v21  ;;  %v13860_v21 = vld [vmem:[%s18115_s1 + $0x2148] ss:$12 sps:$4 sm:$0xff]   ;;  %v14004_v41 = vld [vmem:[%s18116_s2] sm:$0x7]  ;;  %s14032_s1 = smov 28  }
 0x485   :  { %8753 = vmatprep.subr.bf16.mxu0 %v13856_v59  ;;  %v7833_v59 = vrot.slane %v14004_v41, %v14286_v3 }
 0x488   :  { %8754 = vmatpush1.bf16.msra.mxu0 %v13854_v0  ;;  %v12302_v0 = vadd.f32 %v15986_v40, %v7833_v59  ;;  %v13923_v59 = vld [vmem:[%s18117_s3 + $0x68] ss:$12 sps:$4 sm:$0xff]  }
 0x489   :  { %8755 = vmatprep.subr.bf16.mxu0 %v13859_v56 }
 0x48c   :  { %8756 = vmatpush1.bf16.msra.mxu0 %v13857_v45 }
 0x48d   :  { %8757 = vmatprep.subr.bf16.mxu0 %v13862_v13 }
 0x490   :  { %8758 = vmatpush1.bf16.msra.mxu0 %v13860_v21 }
 0x491   :  { %8759 = vmatprep.subr.bf16.mxu0 %v13865_v52  ;;  %v12148_v32 = vpop.f32.mrb[88].mxu1 }
 0x492   :  { %v12149_v12 = vpop.f32.mrb[89].mxu1 }
 0x493   :  { %v12150_v18 = vadd.f32 %v12149_v12, %v12148_v32  ;;  %v12151_v14 = vpop.f32.mrb[90].mxu1 }
 0x494   :  { %8760 = vmatpush1.bf16.msra.mxu0 %v13863_v31  ;;  %v12152_v49 = vpop.f32.mrb[91].mxu1 }
 0x495   :  { %8761 = vmatprep.subr.bf16.mxu0 %v13868_v5  ;;  %v9668_v24 = vadd.f32 %v12150_v18, %v9628_v51 }
 0x498   :  { %8762 = vmatpush1.bf16.msra.mxu0 %v13866_v9 }
 0x499   :  { %8763 = vmatprep.subr.bf16.mxu0 %v13871_v27 }
 0x49c   :  { %8764 = vmatpush1.bf16.msra.mxu0 %v13869_v15  ;;  %v13899_v15 = vld [vmem:[%s18117_s3] ss:$12 sps:$4 sm:$0xff]  }
 0x49d   :  { %8765 = vmatprep.subr.bf16.mxu0 %v13874_v28  ;;  %v13901_v28 = vld [vmem:[%s18117_s3 + $0x4] ss:$12 sps:$4 sm:$0xff]  }
 0x49e   :  { %9995 = vmatprep.subr.bf16.mxu1 %v13901_v28 }
 0x49f   :  { %9996 = vmatpush1.bf16.msra.mxu1 %v13899_v15 }
 0x4a0   :  { %8766 = vmatpush1.bf16.msra.mxu0 %v13872_v53  ;;  %v13904_v53 = vld [vmem:[%s18117_s3 + $0x1c] ss:$12 sps:$4 sm:$0xff]  }
 0x4a1   :  { %8767 = vmatprep.subr.bf16.mxu0 %v13877_v39  ;;  %v13902_v39 = vld [vmem:[%s18117_s3 + $0x18] ss:$12 sps:$4 sm:$0xff]   ;;  %9997 = vmatprep.subr.bf16.mxu1 %v13904_v53 }
 0x4a3   :  { %9998 = vmatpush1.bf16.msra.mxu1 %v13902_v39 }
 0x4a4   :  { %8768 = vmatpush1.bf16.msra.mxu0 %v13875_v20  ;;  %v13907_v20 = vld [vmem:[%s18117_s3 + $0x34] ss:$12 sps:$4 sm:$0xff]  }
 0x4a5   :  { %8769 = vmatprep.subr.bf16.mxu0 %v13880_v30  ;;  %v13905_v30 = vld [vmem:[%s18117_s3 + $0x30] ss:$12 sps:$4 sm:$0xff]   ;;  %9999 = vmatprep.subr.bf16.mxu1 %v13907_v20  ;;  %v13926_v20 = vld [vmem:[%s18119_s5] ss:$12 sps:$4 sm:$0xff]  }
 0x4a7   :  { %10000 = vmatpush1.bf16.msra.mxu1 %v13905_v30  ;;  %v13928_v30 = vld [vmem:[%s18119_s5 + $0x4] ss:$12 sps:$4 sm:$0xff]  }
 0x4a8   :  { %8770 = vmatpush1.bf16.msra.mxu0 %v13878_v63 }
 0x4a9   :  { %8771 = vmatprep.subr.bf16.mxu0 %v13883_v54  ;;  %v13910_v54 = vld [vmem:[%s18117_s3 + $0x4c] ss:$12 sps:$4 sm:$0xff]  }
 0x4aa   :  { %10001 = vmatprep.subr.bf16.mxu1 %v13910_v54  ;;  %v13929_v54 = vld [vmem:[%s18119_s5 + $0x18] ss:$12 sps:$4 sm:$0xff]  }
 0x4ac   :  { %8772 = vmatpush1.bf16.msra.mxu0 %v13881_v26  ;;  %v13908_v26 = vld [vmem:[%s18117_s3 + $0x48] ss:$12 sps:$4 sm:$0xff]  }
 0x4ad   :  { %8773 = vmatprep.subr.bf16.mxu0 %v13886_v55  ;;  %v13913_v55 = vld [vmem:[%s18117_s3 + $0x64] ss:$12 sps:$4 sm:$0xff]   ;;  %10002 = vmatpush1.bf16.msra.mxu1 %v13908_v26  ;;  %v13934_v26 = vld [vmem:[%s18119_s5 + $0x34] ss:$12 sps:$4 sm:$0xff]  }
 0x4ae   :  { %10003 = vmatprep.subr.bf16.mxu1 %v13913_v55  ;;  %v13932_v55 = vld [vmem:[%s18119_s5 + $0x30] ss:$12 sps:$4 sm:$0xff]  }
 0x4b0   :  { %8774 = vmatpush1.bf16.msra.mxu0 %v13884_v58  ;;  %v13911_v58 = vld [vmem:[%s18117_s3 + $0x60] ss:$12 sps:$4 sm:$0xff]  }
 0x4b1   :  { %8775 = vmatprep.subr.bf16.mxu0 %v13889_v1  ;;  %v12170_v62 = vpop.f32.mrb[92].mxu1  ;;  %v13916_v1 = vld [vmem:[%s18117_s3 + $0x7c] ss:$12 sps:$4 sm:$0xff]   ;;  %10004 = vmatpush1.bf16.msra.mxu1 %v13911_v58 }
 0x4b2   :  { %v12171_v10 = vpop.f32.mrb[93].mxu1  ;;  %10005 = vmatprep.subr.bf16.mxu1 %v13916_v1  ;;  %v13937_v1 = vld [vmem:[%s18119_s5 + $0x4c] ss:$12 sps:$4 sm:$0xff]  }
 0x4b3   :  { %v12172_v35 = vadd.f32 %v12171_v10, %v12170_v62  ;;  %v12173_v16 = vpop.f32.mrb[94].mxu1 }
 0x4b4   :  { %8776 = vmatpush1.bf16.msra.mxu0 %v13887_v8  ;;  %v12174_v47 = vpop.f32.mrb[95].mxu1  ;;  %v9850_v8 = vld [vmem:[%s18117_s3 + $0x90] sm:$0x33] }
 0x4b5   :  { %8777 = vmatprep.subr.bf16.mxu0 %v13892_v36  ;;  %v9708_v11 = vadd.f32 %v12172_v35, %v9668_v24  ;;  %v13914_v36 = vld [vmem:[%s18117_s3 + $0x78] ss:$12 sps:$4 sm:$0xff]   ;;  %v11655_v62 = vcombine.high %v9850_v8, %v9850_v8  ;;  %v11654_v10 = vcombine.low %v9850_v8, %v9850_v8  ;;  %v13935_v8 = vld [vmem:[%s18119_s5 + $0x48] ss:$12 sps:$4 sm:$0xff]  }
 0x4b6   :  { %10006 = vmatpush1.bf16.msra.mxu1 %v13914_v36  ;;  %v13940_v36 = vld [vmem:[%s18119_s5 + $0x64] ss:$12 sps:$4 sm:$0xff]  }
 0x4b7   :  { %11657 = vmatprep.subr.msk.bf16.mxu1 %vm9985_vm3, %v11655_v62  ;;  %v9987_v35 = vsel %vm9985_vm3, %v11654_v10, 0  ;;  %v13938_v62 = vld [vmem:[%s18119_s5 + $0x60] ss:$12 sps:$4 sm:$0xff]   ;;  %v13943_v10 = vld [vmem:[%s18119_s5 + $0x7c] ss:$12 sps:$4 sm:$0xff]  }
 0x4b8   :  { %8778 = vmatpush1.bf16.msra.mxu0 %v13890_v37 }
 0x4b9   :  { %8779 = vmatprep.subr.bf16.mxu0 %v13895_v42 }
 0x4ba   :  { %10008 = vmatpush1.bf16.msra.mxu1 %v9987_v35  ;;  %v10132_v35 = vld [vmem:[%s18119_s5 + $0x90] sm:$0x33] }
 0x4bb   :  { %12248 = vmatprep.subr.bf16.mxu1 %v14030_v4 }
 0x4bc   :  { %8780 = vmatpush1.bf16.msra.mxu0 %v13893_v44 }
 0x4bd   :  { %8781 = vmatprep.subr.bf16.mxu0 %v13898_v43 }
 0x4c0   :  { %8782 = vmatpush1.bf16.msra.mxu0 %v13896_v38 }
 0x4c3   :  { %8784 = vmatmul.mubr.bf16.vlgmr.msra.gmra.mrb[0].mxu0 %v17533_v34  ;;  %v7837_v34 = vrot.slane %v14004_v41, %v14221_v46  ;;  %v13922_v41 = vld [vmem:[%s18117_s3 + $0x50] ss:$12 sps:$4 sm:$0xff]  }
 0x4c5   :  { %v12305_v56 = vadd.f32 %v15997_v19, %v7837_v34  ;;  %v13924_v34 = vld [vmem:[%s18117_s3 + $0x80] ss:$12 sps:$4 sm:$0xff]  }
 0x4d1   :  { %v12192_v50 = vpop.f32.mrb[96].mxu1 }
 0x4d2   :  { %v12193_v7 = vpop.f32.mrb[97].mxu1 }
 0x4d3   :  { %v12194_v61 = vadd.f32 %v12193_v7, %v12192_v50  ;;  %v12195_v60 = vpop.f32.mrb[98].mxu1 }
 0x4d4   :  { %v12196_v33 = vpop.f32.mrb[99].mxu1 }
 0x4d5   :  { %v9748_v48 = vadd.f32 %v12194_v61, %v9708_v11 }
 0x4ed   :  { %v9787_v51 = vpop.f32.mrb[100].mxu1 }
 0x4ee   :  { %v17868_v23 = vadd.f32 %v9787_v51, %v9748_v48  ;;  %v12246_v57 = vpop.f32.mrb[101].mxu1  ;;  %v13919_v48 = vld [vmem:[%s18117_s3 + $0x8] ss:$12 sps:$4 sm:$0xff]  }
 0x4ef   :  { %v9790_v22 = vpop.f32.mrb[102].mxu1 }
 0x4f0   :  { %v12247_v29 = vpop.f32.mrb[103].mxu1  ;;  %v9800_v37 = vmul.f32 0.5, %v17868_v23  ;;  %v13920_v22 = vld [vmem:[%s18117_s3 + $0x20] ss:$12 sps:$4 sm:$0xff]  }
 0x4f1   :  { %v13921_v29 = vld [vmem:[%s18117_s3 + $0x38] ss:$12 sps:$4 sm:$0xff]  }
 0x596   :  { %v8785_v45 = vpop.f32.mrb[0].mxu0 }
 0x597   :  { %v12303_v13 = vadd.f32 %v12302_v0, %v8785_v45  ;;  %v8787_v21 = vpop.f32.mrb[1].mxu0  ;;  %v13925_v0 = vld [vmem:[%s18117_s3 + $0x98] ss:$0 sps:$4 sm:$0x33]   ;;  %v17965_v45 = vld [vmem:[%s18118_s4] sm:$0x7] }
 0x598   :  { %v12306_v52 = vadd.f32 %v12305_v56, %v8787_v21  ;;  %v8789_v31 = vpop.f32.mrb[2].mxu0  ;;  %v9993_v56 = vsel %vm9985_vm3, %v13925_v0, 0  ;;  %v9973_v21 = vrot.slane %v17965_v45, %v14221_v46 }
 0x599   :  { %v12304_v5 = vadd.f32 %v12303_v13, %v16725_v2  ;;  %v8790_v32 = vpop.f32.mrb[3].mxu0  ;;  %v9969_v13 = vrot.slane %v17965_v45, %v14286_v3 }
 0x59a   :  { %v12307_v12 = vadd.f32 %v12306_v52, %v16730_v17 }
 0x59b   :  { %13960 = vtanh.f32 %v12304_v5  ;;  %v9793_v40 = vmul.f32 0.5, %v12304_v5 }
 0x59c   :  { %13962 = vtanh.f32 %v12307_v12  ;;  %v9799_v16 = vmul.f32 0.5, %v12307_v12 }
 0x59d   :  { %13964 = vtanh.f32 %v9793_v40 }
 0x5a5   :  { %v13961_v18 = vpop.eup %13960 }
 0x5a6   :  { %9809 = vrot.lane.b32.xlu0 %v13961_v18, %s14032_s1  ;;  %v13963_v9 = vpop.eup %13962 }
 0x5a7   :  { %v13965_v19 = vpop.eup %13964 }
 0x5a8   :  { %v9795_v27 = vadd.f32 1.0, %v13965_v19 }
 0x5aa   :  { %9811 = vrot.lane.b32.xlu0 %v13963_v9, %s14032_s1  ;;  %v9796_v2 = vmul.f32 0.5, %v9795_v27 }
 0x618   :  { %v9810_v14 = vpop.permute.xlu0 %9809 }
 0x61c   :  { %v9812_v49 = vpop.permute.xlu0 %9811 }
 0x61d   :  { %v9814_v24 = vsel %vm9813_vm2, %v9810_v14, %v9812_v49 }
 0x61e   :  { %v9816_v17 = vmul.f32 %v9814_v24, %v9796_v2 }
 0x620   :  { %13966 = vtanh.f32 %v9816_v17 }
 0x621   :  { %13968 = vtanh.f32 %v9800_v37  ;;  %v13941_v37 = vld [vmem:[%s18119_s5 + $0x78] ss:$12 sps:$4 sm:$0xff]  }
 0x622   :  { %13970 = vtanh.f32 %v9799_v16  ;;  %v11679_v16 = vcombine.high %v10132_v35, %v10132_v35 }
 0x62a   :  { %v13967_v63 = vpop.eup %13966 }
 0x62b   :  { %9819 = vrot.lane.b32.xlu1 %v13967_v63, %s14033_s17  ;;  %v13969_v42 = vpop.eup %13968  ;;  %v13931_v63 = vld [vmem:[%s18119_s5 + $0x1c] ss:$12 sps:$4 sm:$0xff]  }
 0x62c   :  { %v13971_v47 = vpop.eup %13970  ;;  %v9804_v44 = vadd.f32 1.0, %v13969_v42  ;;  %v11678_v42 = vcombine.low %v10132_v35, %v10132_v35 }
 0x62d   :  { %v9803_v11 = vadd.f32 1.0, %v13971_v47 }
 0x62e   :  { %v9806_v38 = vmul.f32 0.5, %v9804_v44  ;;  %v10266_v47 = vsel %vm9985_vm3, %v11678_v42, 0 }
 0x62f   :  { %v9805_v43 = vmul.f32 0.5, %v9803_v11  ;;  %v9977_v11 = vrot.slane %v17965_v45, %v14504_v25  ;;  %v13948_v45 = vld [vmem:[%s18119_s5 + $0x38] ss:$12 sps:$4 sm:$0xff]  }
 0x69d   :  { %v9820_v50 = vpop.permute.xlu1 %9819 }
 0x69e   :  { %v9822_v7 = vmul.f32 %v9820_v50, %v9805_v43  ;;  %v9823_v61 = vmul.f32 %v9820_v50, %v9806_v38 }
 0x6a0   :  { %v9824_v60 = vpack.c.bf16 %v9822_v7, %v9822_v7  ;;  %v9825_v33 = vpack.c.bf16 %v9823_v61, %v9823_v61 }
 0x6a2   :  { %9857 = vrot.lane.b32.xlu0 %v9825_v33, %s14034_s28  ;;  %9855 = vrot.lane.b32.xlu1 %v9824_v60, %s14034_s28 }
 0x714   :  { %v9858_v51 = vpop.permute.xlu0 %9857  ;;  %v9856_v23 = vpop.permute.xlu1 %9855 }
 0x715   :  { %v9860_v57 = vsel %vm9859_vm4, %v9856_v23, %v9858_v51 }
 0x716   :  { %11658 = vmatmul.mubr.msk.bf16.vlgmr.msra.gmra.mrb[104].mxu1 %vm9981_vm5, %v9860_v57 }
 0x717   :  { %12249 = vmatpush3.bf16.msra.mxu1 %v13919_v48  ;;  %12262 = vmatprep.mubr.msk.bf16.mxu1 %vm14031_vm1, %v14030_v4 }
 0x718   :  { %12250 = vmatprep.subr.bf16.mxu1 %v14030_v4 }
 0x71b   :  { %12251 = vmatpush3.bf16.msra.mxu1 %v13920_v22 }
 0x71c   :  { %12252 = vmatprep.subr.bf16.mxu1 %v14030_v4 }
 0x71f   :  { %12253 = vmatpush3.bf16.msra.mxu1 %v13921_v29 }
 0x720   :  { %12254 = vmatprep.subr.bf16.mxu1 %v14030_v4 }
 0x723   :  { %12255 = vmatpush3.bf16.msra.mxu1 %v13922_v41  ;;  %v13946_v41 = vld [vmem:[%s18119_s5 + $0x8] ss:$12 sps:$4 sm:$0xff]  }
 0x724   :  { %12256 = vmatprep.subr.bf16.mxu1 %v14030_v4 }
 0x727   :  { %12257 = vmatpush3.bf16.msra.mxu1 %v13923_v59 }
 0x728   :  { %12258 = vmatprep.subr.bf16.mxu1 %v14030_v4 }
 0x72b   :  { %12259 = vmatpush3.bf16.msra.mxu1 %v13924_v34 }
 0x72c   :  { %12260 = vmatprep.subr.bf16.mxu1 %v14030_v4 }
 0x72f   :  { %12261 = vmatpush3.bf16.msra.mxu1 %v9993_v56  ;;  %v13947_v56 = vld [vmem:[%s18119_s5 + $0x20] ss:$12 sps:$4 sm:$0xff]  }
 0x730   :  { %10274 = vmatprep.subr.bf16.mxu1 %v13928_v30 }
 0x732   :  { %12263 = vmatmul.mubr.msk.bf16.vlgmr.msra.gmra.mrb[108].mxu1 %vm9981_vm5, %v9860_v57 }
 0x733   :  { %10306 = vmatprep.mubr.bf16.mxu1 %v14029_v6  ;;  %10275 = vmatpush1.bf16.msra.mxu1 %v13926_v20 }
 0x734   :  { %10276 = vmatprep.subr.bf16.mxu1 %v13931_v63 }
 0x737   :  { %10277 = vmatpush1.bf16.msra.mxu1 %v13929_v54 }
 0x738   :  { %10278 = vmatprep.subr.bf16.mxu1 %v13934_v26  ;;  %v13953_v26 = vld [vmem:[%s18121_s7] sm:$0xff]  }
 0x73b   :  { %10279 = vmatpush1.bf16.msra.mxu1 %v13932_v55  ;;  %v13954_v55 = vld [vmem:[%s18121_s7 + $0x8] sm:$0xff]  }
 0x73c   :  { %10280 = vmatprep.subr.bf16.mxu1 %v13937_v1 }
 0x73f   :  { %10281 = vmatpush1.bf16.msra.mxu1 %v13935_v8  ;;  %v13956_v8 = vld [vmem:[%s18121_s7 + $0x18] sm:$0xff]  }
 0x740   :  { %10282 = vmatprep.subr.bf16.mxu1 %v13940_v36  ;;  %v13957_v36 = vld [vmem:[%s18121_s7 + $0x20] sm:$0xff]  }
 0x743   :  { %10283 = vmatpush1.bf16.msra.mxu1 %v13938_v62  ;;  %v13958_v62 = vld [vmem:[%s18121_s7 + $0x28] sm:$0xff]  }
 0x744   :  { %10284 = vmatprep.subr.bf16.mxu1 %v13943_v10  ;;  %v13959_v10 = vld [vmem:[%s18121_s7 + $0x30] ss:$0 sps:$4 sm:$0x33]  }
 0x745   :  { %v10451_v35 = vsel %vm9985_vm3, %v13959_v10, 0 }
 0x747   :  { %10285 = vmatpush1.bf16.msra.mxu1 %v13941_v37 }
 0x748   :  { %11681 = vmatprep.subr.msk.bf16.mxu1 %vm9985_vm3, %v11679_v16 }
 0x74b   :  { %10287 = vmatpush1.bf16.msra.mxu1 %v10266_v47 }
 0x74c   :  { %12266 = vmatprep.subr.bf16.mxu1 %v14030_v4 }
 0x7e9   :  { %v10029_v52 = vpop.f32.mrb[104].mxu1 }
 0x7ea   :  { %v10030_v31 = vadd.f32 %v10029_v52, %v9969_v13  ;;  %v10031_v5 = vpop.f32.mrb[105].mxu1  ;;  %v13949_v13 = vld [vmem:[%s18119_s5 + $0x50] ss:$12 sps:$4 sm:$0xff]   ;;  %v13951_v52 = vld [vmem:[%s18119_s5 + $0x80] ss:$12 sps:$4 sm:$0xff]  }
 0x7eb   :  { %v10032_v32 = vadd.f32 %v10031_v5, %v9973_v21  ;;  %v10033_v12 = vpop.f32.mrb[106].mxu1  ;;  %v13950_v21 = vld [vmem:[%s18119_s5 + $0x68] ss:$12 sps:$4 sm:$0xff]  }
 0x7ec   :  { %13972 = vtanh.f32 %v10030_v31  ;;  %v10034_v18 = vpop.f32.mrb[107].mxu1  ;;  %v10076_v49 = vmul.f32 0.5, %v10030_v31  ;;  %v13952_v31 = vld [vmem:[%s18119_s5 + $0x98] ss:$0 sps:$4 sm:$0x33]  }
 0x7ed   :  { %13974 = vtanh.f32 %v10032_v32  ;;  %v10082_v43 = vmul.f32 0.5, %v10032_v32  ;;  %v10272_v5 = vsel %vm9985_vm3, %v13952_v31, 0  ;;  %v10134_v32 = vld [vmem:[%s18120_s6] sm:$0x7] }
 0x7ee   :  { %13976 = vtanh.f32 %v10076_v49  ;;  %v10250_v12 = vrot.slane %v10134_v32, %v14286_v3  ;;  %v10254_v18 = vrot.slane %v10134_v32, %v14221_v46  ;;  %v10258_v37 = vrot.slane %v10134_v32, %v14504_v25 }
 0x7f6   :  { %v13973_v6 = vpop.eup %13972 }
 0x7f7   :  { %v13975_v9 = vpop.eup %13974  ;;  %10092 = vrot.lane.b32.xlu1 %v13973_v6, %s14032_s1 }
 0x7f8   :  { %10094 = vrot.lane.b32.xlu0 %v13975_v9, %s14032_s1  ;;  %v13977_v2 = vpop.eup %13976 }
 0x7f9   :  { %v10078_v24 = vadd.f32 1.0, %v13977_v2 }
 0x7fb   :  { %v10079_v28 = vmul.f32 0.5, %v10078_v24 }
 0x805   :  { %v10070_v40 = vpop.f32.mrb[108].mxu1 }
 0x806   :  { %v12264_v19 = vpop.f32.mrb[109].mxu1  ;;  %v10071_v44 = vadd.f32 %v10070_v40, %v9977_v11 }
 0x807   :  { %v10073_v14 = vpop.f32.mrb[110].mxu1 }
 0x808   :  { %v12265_v27 = vpop.f32.mrb[111].mxu1  ;;  %v10083_v38 = vmul.f32 0.5, %v10071_v44 }
 0x869   :  { %v10093_v17 = vpop.permute.xlu1 %10092 }
 0x86a   :  { %v10095_v15 = vpop.permute.xlu0 %10094 }
 0x86b   :  { %v10096_v53 = vsel %vm9813_vm2, %v10093_v17, %v10095_v15 }
 0x86c   :  { %v10098_v39 = vmul.f32 %v10096_v53, %v10079_v28 }
 0x86e   :  { %13978 = vtanh.f32 %v10098_v39 }
 0x86f   :  { %13980 = vtanh.f32 %v10082_v43 }
 0x870   :  { %13982 = vtanh.f32 %v10083_v38 }
 0x878   :  { %v13979_v58 = vpop.eup %13978 }
 0x879   :  { %10101 = vrot.lane.b32.xlu1 %v13979_v58, %s14033_s17  ;;  %v13981_v50 = vpop.eup %13980  ;;  %v13955_v58 = vld [vmem:[%s18121_s7 + $0x10] sm:$0xff]  }
 0x87a   :  { %v13983_v7 = vpop.eup %13982  ;;  %v10086_v61 = vadd.f32 1.0, %v13981_v50 }
 0x87b   :  { %v10087_v60 = vadd.f32 1.0, %v13983_v7 }
 0x87c   :  { %v10088_v33 = vmul.f32 0.5, %v10086_v61 }
 0x87d   :  { %v10089_v48 = vmul.f32 0.5, %v10087_v60 }
 0x8eb   :  { %v10102_v51 = vpop.permute.xlu1 %10101 }
 0x8ec   :  { %v10104_v23 = vmul.f32 %v10102_v51, %v10088_v33  ;;  %v10105_v57 = vmul.f32 %v10102_v51, %v10089_v48 }
 0x8ee   :  { %v10106_v22 = vpack.c.bf16 %v10104_v23, %v10104_v23  ;;  %v10107_v29 = vpack.c.bf16 %v10105_v57, %v10105_v57  ;;  %v10400_v57 = vld [vmem:[%s18122_s8] sm:$0x1] }
 0x8f0   :  { %10139 = vrot.lane.b32.xlu1 %v10107_v29, %s14034_s28  ;;  %10137 = vrot.lane.b32.xlu0 %v10106_v22, %s14034_s28 }
 0x962   :  { %v10140_v59 = vpop.permute.xlu1 %10139  ;;  %v10138_v34 = vpop.permute.xlu0 %10137 }
 0x963   :  { %v10141_v0 = vsel %vm9859_vm4, %v10138_v34, %v10140_v59 }
 0x964   :  { %11682 = vmatmul.mubr.msk.bf16.vlgmr.msra.gmra.mrb[112].mxu1 %vm9981_vm5, %v10141_v0 }
 0x965   :  { %12267 = vmatpush3.bf16.msra.mxu1 %v13946_v41  ;;  %12280 = vmatprep.mubr.msk.bf16.mxu1 %vm14031_vm1, %v14030_v4 }
 0x966   :  { %12268 = vmatprep.subr.bf16.mxu1 %v14030_v4 }
 0x969   :  { %12269 = vmatpush3.bf16.msra.mxu1 %v13947_v56 }
 0x96a   :  { %12270 = vmatprep.subr.bf16.mxu1 %v14030_v4 }
 0x96d   :  { %12271 = vmatpush3.bf16.msra.mxu1 %v13948_v45 }
 0x96e   :  { %12272 = vmatprep.subr.bf16.mxu1 %v14030_v4 }
 0x971   :  { %12273 = vmatpush3.bf16.msra.mxu1 %v13949_v13 }
 0x972   :  { %12274 = vmatprep.subr.bf16.mxu1 %v14030_v4 }
 0x975   :  { %12275 = vmatpush3.bf16.msra.mxu1 %v13950_v21 }
 0x976   :  { %12276 = vmatprep.subr.bf16.mxu1 %v14030_v4 }
 0x979   :  { %12277 = vmatpush3.bf16.msra.mxu1 %v13951_v52 }
 0x97a   :  { %12278 = vmatprep.subr.bf16.mxu1 %v14030_v4 }
 0x97d   :  { %12279 = vmatpush3.bf16.msra.mxu1 %v10272_v5 }
 0x97e   :  { %12284 = vmatprep.subr.bf16.mxu1 %v14030_v4 }
 0x980   :  { %12281 = vmatmul.mubr.msk.bf16.vlgmr.msra.gmra.mrb[116].mxu1 %vm9981_vm5, %v10141_v0 }
 0x981   :  { %12298 = vmatprep.mubr.msk.bf16.mxu1 %vm14031_vm1, %v14030_v4  ;;  %12285 = vmatpush3.bf16.msra.mxu1 %v13953_v26 }
 0x982   :  { %12286 = vmatprep.subr.bf16.mxu1 %v14030_v4 }
 0x985   :  { %12287 = vmatpush3.bf16.msra.mxu1 %v13954_v55 }
 0x986   :  { %12288 = vmatprep.subr.bf16.mxu1 %v14030_v4 }
 0x989   :  { %12289 = vmatpush3.bf16.msra.mxu1 %v13955_v58 }
 0x98a   :  { %12290 = vmatprep.subr.bf16.mxu1 %v14030_v4 }
 0x98d   :  { %12291 = vmatpush3.bf16.msra.mxu1 %v13956_v8 }
 0x98e   :  { %12292 = vmatprep.subr.bf16.mxu1 %v14030_v4 }
 0x991   :  { %12293 = vmatpush3.bf16.msra.mxu1 %v13957_v36 }
 0x992   :  { %12294 = vmatprep.subr.bf16.mxu1 %v14030_v4 }
 0x995   :  { %12295 = vmatpush3.bf16.msra.mxu1 %v13958_v62 }
 0x996   :  { %12296 = vmatprep.subr.bf16.mxu1 %v14030_v4 }
 0x999   :  { %12297 = vmatpush3.bf16.msra.mxu1 %v10451_v35 }
 0xa37   :  { %v10308_v6 = vpop.f32.mrb[112].mxu1 }
 0xa38   :  { %v10309_v9 = vadd.f32 %v10308_v6, %v10250_v12  ;;  %v10310_v40 = vpop.f32.mrb[113].mxu1 }
 0xa39   :  { %v10311_v19 = vadd.f32 %v10310_v40, %v10254_v18  ;;  %v10312_v14 = vpop.f32.mrb[114].mxu1 }
 0xa3a   :  { %13984 = vtanh.f32 %v10309_v9  ;;  %v10313_v27 = vpop.f32.mrb[115].mxu1  ;;  %v10355_v28 = vmul.f32 0.5, %v10309_v9 }
 0xa3b   :  { %13986 = vtanh.f32 %v10311_v19  ;;  %v10361_v42 = vmul.f32 0.5, %v10311_v19 }
 0xa3c   :  { %13988 = vtanh.f32 %v10355_v28 }
 0xa44   :  { %v13985_v49 = vpop.eup %13984 }
 0xa45   :  { %v13987_v2 = vpop.eup %13986  ;;  %10371 = vrot.lane.b32.xlu0 %v13985_v49, %s14032_s1 }
 0xa46   :  { %10373 = vrot.lane.b32.xlu1 %v13987_v2, %s14032_s1  ;;  %v13989_v46 = vpop.eup %13988 }
 0xa47   :  { %v10357_v53 = vadd.f32 1.0, %v13989_v46 }
 0xa49   :  { %v10358_v30 = vmul.f32 0.5, %v10357_v53 }
 0xa53   :  { %v10349_v24 = vpop.f32.mrb[116].mxu1 }
 0xa54   :  { %v12282_v17 = vpop.f32.mrb[117].mxu1  ;;  %v10350_v16 = vadd.f32 %v10349_v24, %v10258_v37 }
 0xa55   :  { %v10352_v15 = vpop.f32.mrb[118].mxu1 }
 0xa56   :  { %v12283_v3 = vpop.f32.mrb[119].mxu1  ;;  %v10362_v47 = vmul.f32 0.5, %v10350_v16 }
 0xab7   :  { %v10372_v39 = vpop.permute.xlu0 %10371 }
 0xab8   :  { %v10374_v20 = vpop.permute.xlu1 %10373 }
 0xab9   :  { %v10375_v63 = vsel %vm9813_vm2, %v10372_v39, %v10374_v20 }
 0xaba   :  { %v10377_v54 = vmul.f32 %v10375_v63, %v10358_v30 }
 0xabc   :  { %13990 = vtanh.f32 %v10377_v54 }
 0xabd   :  { %13992 = vtanh.f32 %v10361_v42 }
 0xabe   :  { %13994 = vtanh.f32 %v10362_v47 }
 0xac6   :  { %v13991_v1 = vpop.eup %13990 }
 0xac7   :  { %10380 = vrot.lane.b32.xlu0 %v13991_v1, %s14033_s17  ;;  %v13993_v11 = vpop.eup %13992 }
 0xac8   :  { %v13995_v44 = vpop.eup %13994  ;;  %v10365_v43 = vadd.f32 1.0, %v13993_v11 }
 0xac9   :  { %v10366_v38 = vadd.f32 1.0, %v13995_v44 }
 0xaca   :  { %v10367_v50 = vmul.f32 0.5, %v10365_v43 }
 0xacb   :  { %v10368_v7 = vmul.f32 0.5, %v10366_v38 }
 0xb39   :  { %v10381_v61 = vpop.permute.xlu0 %10380 }
 0xb3a   :  { %v10383_v60 = vmul.f32 %v10381_v61, %v10367_v50  ;;  %v10384_v33 = vmul.f32 %v10381_v61, %v10368_v7 }
 0xb3c   :  { %v10385_v4 = vpack.c.bf16 %v10383_v60, %v10383_v60  ;;  %v10386_v48 = vpack.c.bf16 %v10384_v33, %v10384_v33 }
 0xb3e   :  { %10405 = vrot.lane.b32.xlu0 %v10386_v48, %s14034_s28  ;;  %10403 = vrot.lane.b32.xlu1 %v10385_v4, %s14034_s28  ;;  %s14005_s28 = scalar_lea.vmem %s10502_s30, 16 }
 0xb3f   :  { %p14006_p0 = scmp.ne.s32.totalorder %s10502_s30, %s14005_s28  ;;  %p14011_p2 = scmp.lt.s32.totalorder %s14009_s10, %s14005_s28 }
 0xb41   :  { %p14012_p3 = por %p14011_p2, %p14010_p1 }
 0xb43   :  { %p14013_p4 = pnand %p14012_p3, %p14006_p0 }
 0xbb0   :  { %v10406_v25 = vpop.permute.xlu0 %10405  ;;  %v10404_v51 = vpop.permute.xlu1 %10403 }
 0xbb1   :  { %v10407_v23 = vsel %vm9859_vm4, %v10404_v51, %v10406_v25 }
 0xbb2   :  { %12299 = vmatmul.mubr.msk.bf16.vlgmr.msra.gmra.mrb[120].mxu1 %vm9981_vm5, %v10407_v23 }
 0xc85   :  { %v10487_v22 = vpop.f32.mrb[120].mxu1 }
 0xc86   :  { %v10488_v29 = vadd.f32 %v10487_v22, %v10400_v57  ;;  %v12300_v41 = vpop.f32.mrb[121].mxu1 }
 0xc87   :  { %v10490_v59 = vpop.f32.mrb[122].mxu1 }
 0xc88   :  { %v12301_v34 = vpop.f32.mrb[123].mxu1  ;;  %10494 = vst.msk [vmem:[#allocation2] sm:$0x1] %vm10493_vm6, %v10488_v29 }
 0xc89   :  { %14016 = shalt.err (!%p14013_p4)
}
 0xc8a   :  { %s14017_s12 = scalar_lea.hbm %s18123_s9, 16 }
 0xc8b   :  { %p14018_p5 = scmp.ne.s32.totalorder %s18123_s9, %s14017_s12  ;;  %p14021_p6 = scmp.lt.u32.totalorder %s14017_s12, %s18123_s9 }
 0xc8d   :  { %p14023_p7 = pnand %p14021_p6, %p14018_p5 }
 0xc8f   :  { %14026 = shalt.err (!%p14023_p7)
}
 0xc90   :  { %10504 = dma.vmem_to_hbm [thread:$0]  %s10502_s30, 16, %s18123_s9, [#allocation3]  }
 0xc91   :  { %14027 = dma.done.wait [#allocation3], 16  }
 0xc92   :  { %14028 = vsyncadd [#allocation3], 4294967280 }
 0xc93   :  { %10508 = vsyncpa [#allocation3], 1 }

</bundles_post_ra>
